<compile_context>
chip_gen: v5e
topology: v5e:2x2
jax: 0.10.0
libtpu: 0.0.40
codegen_flags: <defaults>
</compile_context>

<pallas_src>
import functools

import jax
import jax.numpy as jnp
from jax import lax
from jax.experimental import pallas as pl
from jax.experimental.pallas import tpu as pltpu


def _layernorm(v, g, b, eps=1e-5):
    # Two-pass variance (matches nn.LayerNorm, avoids catastrophic cancellation).
    mean = jnp.mean(v, axis=-1, keepdims=True)
    c = v - mean
    var = jnp.mean(c * c, axis=-1, keepdims=True)
    return c * lax.rsqrt(var + eps) * g + b


# ----------------------------------------------------------------------------
# Kernel: full transformer block for `block_b` batch elements per grid step.
# ----------------------------------------------------------------------------
def transformer_block_kernel(
    x_ref,                     # (Bb, T, D)          f32
    g1_ref, b1_ref,            # (1, D)              f32   LayerNorm 1
    g2_ref, b2_ref,            # (1, D)              f32   LayerNorm 2
    wqkv_ref,                  # (D, 2*H*hs + H*D)   bf16  fused Wq | Wk | Wv
    wp_ref, bp_ref,            # (H*D, D) bf16, (1, D)  f32
    w1_ref, bf1_ref,           # (D, 4D)  bf16, (1, 4D) f32
    w2_ref, bf2_ref,           # (4D, D)  bf16, (1, D)  f32
    o_ref,                     # (Bb, T, D)          f32
    *, num_heads, head_size,
):
    Bb, T, D = x_ref.shape
    H, hs = num_heads, head_size
    Dq = H * hs
    R = Bb * T
    scale = 1.0 / (hs ** 0.5)

    x = x_ref[...].reshape(R, D)                               # (R, D) f32

    # ---- LayerNorm 1 + single fused QKV projection (bf16 in, f32 acc) ------
    h1 = _layernorm(x, g1_ref[...], b1_ref[...]).astype(jnp.bfloat16)
    qkv = jnp.dot(h1, wqkv_ref[...], preferred_element_type=jnp.float32)

    q = qkv[:, :Dq].astype(jnp.bfloat16)                       # (R, H*hs)
    k = qkv[:, Dq:2 * Dq].astype(jnp.bfloat16)                 # (R, H*hs)
    v = qkv[:, 2 * Dq:].astype(jnp.bfloat16)                   # (R, H*D)

    # ---- Regroup heads into one (H*Bb)-batched layout -----------------------
    # Lane-aligned column slices + leading-axis concat only (relayout copies,
    # no MXU work, no 4-D transposes).  Batch index is h*Bb + b.
    qh = jnp.concatenate(
        [q[:, h * hs:(h + 1) * hs].reshape(Bb, T, hs) for h in range(H)], axis=0)
    kh = jnp.concatenate(
        [k[:, h * hs:(h + 1) * hs].reshape(Bb, T, hs) for h in range(H)], axis=0)
    vh = jnp.concatenate(
        [v[:, h * D:(h + 1) * D].reshape(Bb, T, D) for h in range(H)], axis=0)

    # Causal bias built in-kernel (finite additive bias, no HBM input).
    rows = lax.broadcasted_iota(jnp.int32, (T, T), 0)
    cols = lax.broadcasted_iota(jnp.int32, (T, T), 1)
    bias = jnp.where(cols <= rows, 0.0, -1e30).astype(jnp.float32)

    # ---- Attention: exactly two bf16 MXU einsums for all heads --------------
    s = jnp.einsum('bqc,bkc->bqk', qh, kh,
                   preferred_element_type=jnp.float32) * scale        # (H*Bb,T,T)
    s = s + bias[None]
    s = s - jnp.max(s, axis=-1, keepdims=True)
    p = jnp.exp(s)
    p = p * pl.reciprocal(jnp.sum(p, axis=-1, keepdims=True), approx=True)

    o = jnp.einsum('bqk,bkd->bqd', p.astype(jnp.bfloat16), vh,
                   preferred_element_type=jnp.float32)                 # (H*Bb,T,D)
    o = o.astype(jnp.bfloat16)

    # torch.cat([head_h], dim=-1): head h occupies columns [h*D:(h+1)*D].
    cat = jnp.concatenate(
        [o[h * Bb:(h + 1) * Bb].reshape(R, D) for h in range(H)], axis=-1)

    mha = jnp.dot(cat, wp_ref[...], preferred_element_type=jnp.float32)
    x1 = x + mha + bp_ref[...]                                  # residual 1

    # ---- LayerNorm 2 + FeedForward -------------------------------------------
    h2 = _layernorm(x1, g2_ref[...], b2_ref[...]).astype(jnp.bfloat16)
    ff = jnp.dot(h2, w1_ref[...], preferred_element_type=jnp.float32) + bf1_ref[...]
    ff = jnp.maximum(ff, 0.0).astype(jnp.bfloat16)
    ff = jnp.dot(ff, w2_ref[...], preferred_element_type=jnp.float32) + bf2_ref[...]

    o_ref[...] = (x1 + ff).reshape(Bb, T, D).astype(o_ref.dtype)  # residual 2


# ----------------------------------------------------------------------------
# Wrapper
# ----------------------------------------------------------------------------
def transformer_block(x, kp, num_heads, block_b=None):
    B, T, D = x.shape
    H = num_heads
    hs = (kp["wqkv"].shape[1] - H * D) // (2 * H)

    # Row blocking: reach >=256 rows per grid step (full MXU M-dim on
    # v6e/v7x, covers v5e's 128) before splitting into multiple steps, so a
    # multi-step split only happens when every step keeps >=256 rows.
    if block_b is None:
        target_rows = 256
        block_b = min(B, max(1, -(-target_rows // T)))
        while B % block_b:
            block_b += 1            # smallest divisor of B >= the target
    assert B % block_b == 0
    n_steps = B // block_b

    # Weights never change across grid steps: single-buffer them when there is
    # more than one step (halves resident weight VMEM; matters on v7x 64 MiB).
    weight_mode = pl.Buffered(1) if n_steps > 1 else None

    def const_spec(shape, is_weight=False):
        nd = len(shape)
        idx = lambda b, _nd=nd: (0,) * _nd
        if is_weight and weight_mode is not None:
            return pl.BlockSpec(shape, idx, pipeline_mode=weight_mode)
        return pl.BlockSpec(shape, idx)

    in_specs = [
        pl.BlockSpec((block_b, T, D), lambda b: (b, 0, 0)),           # x
        const_spec((1, D)), const_spec((1, D)),                       # ln1 g/b
        const_spec((1, D)), const_spec((1, D)),                       # ln2 g/b
        const_spec((D, 2 * H * hs + H * D), is_weight=True),          # Wqkv
        const_spec((H * D, D), is_weight=True), const_spec((1, D)),   # Wp, bp
        const_spec((D, 4 * D), is_weight=True), const_spec((1, 4 * D)),  # W1, b1
        const_spec((4 * D, D), is_weight=True), const_spec((1, D)),   # W2, b2
    ]

    # Explicit VMEM budget (v5e default scoped limit is only 16 MiB).
    w_bytes = 2 * (D * (2 * H * hs + H * D) + H * D * D + 8 * D * D)   # bf16
    act_bytes = 4 * block_b * T * (10 * D + 3 * H * D + 2 * H * hs)    # rough f32
    vmem_limit = int(min(max(32 << 20, 3 * (w_bytes + act_bytes)), 56 << 20))

    kernel = functools.partial(transformer_block_kernel,
                               num_heads=H, head_size=hs)

    return pl.pallas_call(
        kernel,
        out_shape=jax.ShapeDtypeStruct((B, T, D), jnp.float32),
        grid=(n_steps,),
        in_specs=in_specs,
        out_specs=pl.BlockSpec((block_b, T, D), lambda b: (b, 0, 0)),
        compiler_params=pltpu.CompilerParams(
            dimension_semantics=("parallel",),
            vmem_limit_bytes=vmem_limit),
    )(
        x,
        kp["g1"], kp["b1"], kp["g2"], kp["b2"],
        kp["wqkv"],
        kp["wp"], kp["bp"],
        kp["w1"], kp["bf1"], kp["w2"], kp["bf2"],
    )


# ----------------------------------------------------------------------------
# Parameters: PyTorch-like per-head layout (f32) + fused bf16 kernel layout.
# ----------------------------------------------------------------------------
def make_params(key, D, H):
    hs = D // H
    ks = jax.random.split(key, 9)
    n = lambda k, shape, s=0.02: jax.random.normal(k, shape, jnp.float32) * s
    return {
        "g1": jnp.ones((1, D), jnp.float32),
        "b1": jnp.zeros((1, D), jnp.float32),
        "g2": jnp.ones((1, D), jnp.float32),
        "b2": jnp.zeros((1, D), jnp.float32),
        "wk": n(ks[0], (H, D, hs)),       # per-head (in, out) layouts
        "wq": n(ks[1], (H, D, hs)),
        "wv": n(ks[2], (H, D, D)),
        "wp": n(ks[3], (H * D, D)),
        "bp": n(ks[4], (1, D)),
        "w1": n(ks[5], (D, 4 * D)),
        "bf1": n(ks[6], (1, 4 * D)),
        "w2": n(ks[7], (4 * D, D)),
        "bf2": n(ks[8], (1, D)),
    }


def prepare_kernel_params(p, D, H):
    """Fuse Wq|Wk|Wv along the output dim; cast all matmul weights to bf16."""
    hs = p["wq"].shape[2]
    fuse = lambda w, last: jnp.transpose(w, (1, 0, 2)).reshape(D, H * last)
    wqkv = jnp.concatenate(
        [fuse(p["wq"], hs), fuse(p["wk"], hs), fuse(p["wv"], D)], axis=1)
    return {
        "g1": p["g1"], "b1": p["b1"], "g2": p["g2"], "b2": p["b2"],
        "wqkv": wqkv.astype(jnp.bfloat16),
        "wp": p["wp"].astype(jnp.bfloat16), "bp": p["bp"],
        "w1": p["w1"].astype(jnp.bfloat16), "bf1": p["bf1"],
        "w2": p["w2"].astype(jnp.bfloat16), "bf2": p["bf2"],
    }


# ----------------------------------------------------------------------------
# Pure-JAX reference (mirrors the PyTorch forward; weights rounded to bf16 so
# the only kernel-vs-reference delta is activation rounding inside the kernel).
# ----------------------------------------------------------------------------
def reference_block(x, p, H):
    rb = lambda a: a.astype(jnp.bfloat16).astype(jnp.float32)

    def layernorm(v, g, b):
        mean = jnp.mean(v, axis=-1, keepdims=True)
        var = jnp.mean((v - mean) ** 2, axis=-1, keepdims=True)
        return (v - mean) / jnp.sqrt(var + 1e-5) * g[0] + b[0]

    B, T, D = x.shape
    hs = p["wq"].shape[2]
    mask = jnp.tril(jnp.ones((T, T), dtype=bool))

    h1 = layernorm(x, p["g1"], p["b1"])
    heads = []
    for h in range(H):
        K = h1 @ rb(p["wk"][h])
        Q = h1 @ rb(p["wq"][h])
        V = h1 @ rb(p["wv"][h])
        s = (Q @ jnp.swapaxes(K, -2, -1)) / (hs ** 0.5)
        s = jnp.where(mask, s, -jnp.inf)
        heads.append(jax.nn.softmax(s, axis=-1) @ V)
    cat = jnp.concatenate(heads, axis=-1)
    x1 = x + cat @ rb(p["wp"]) + p["bp"][0]

    h2 = layernorm(x1, p["g2"], p["b2"])
    ff = jnp.maximum(h2 @ rb(p["w1"]) + p["bf1"][0], 0.0)
    ff = ff @ rb(p["w2"]) + p["bf2"][0]
    return x1 + ff


# ----------------------------------------------------------------------------
if __name__ == "__main__":
    # Small shapes consistent with the module: embed divisible by num_heads,
    # T <= context_window_size.  head_size = 128 keeps every head boundary
    # lane-tile aligned; D and 4D are multiples of 256 for the MXU.
    B, T, D, H = 4, 8, 256, 2

    key = jax.random.PRNGKey(0)
    kx, kparam = jax.random.split(key)
    x = jax.random.normal(kx, (B, T, D), jnp.float32)

    params = make_params(kparam, D, H)
    kparams = prepare_kernel_params(params, D, H)

    out = jax.block_until_ready(transformer_block(x, kparams, num_heads=H))
    ref = reference_block(x, params, H)

    assert out.shape == (B, T, D)
    max_err = float(jnp.max(jnp.abs(out - ref)))
    assert jnp.allclose(out, ref, rtol=2e-2, atol=2e-2), max_err

    print("KERNEL_OK")
</pallas_src>

<mosaic_0001>
module attributes {stable_mosaic.version = 11 : i64} {
  func.func @transformer_block_kernel(%arg0: i32, %arg1: memref<4x8x256xf32, #tpu.memory_space<vmem>>, %arg2: memref<1x256xf32, #tpu.memory_space<vmem>>, %arg3: memref<1x256xf32, #tpu.memory_space<vmem>>, %arg4: memref<1x256xf32, #tpu.memory_space<vmem>>, %arg5: memref<1x256xf32, #tpu.memory_space<vmem>>, %arg6: memref<256x1024xbf16, #tpu.memory_space<vmem>>, %arg7: memref<512x256xbf16, #tpu.memory_space<vmem>>, %arg8: memref<1x256xf32, #tpu.memory_space<vmem>>, %arg9: memref<256x1024xbf16, #tpu.memory_space<vmem>>, %arg10: memref<1x1024xf32, #tpu.memory_space<vmem>>, %arg11: memref<1024x256xbf16, #tpu.memory_space<vmem>>, %arg12: memref<1x256xf32, #tpu.memory_space<vmem>>, %arg13: memref<4x8x256xf32, #tpu.memory_space<vmem>>) attributes {dimension_semantics = [#tpu.dimension_semantics<parallel>], iteration_bounds = array<i64: 1>, scalar_prefetch = 0 : i64, scratch_operands = 0 : i64, tpu.core_type = #tpu.core_type<tc>, window_params = [{transform_indices = @transform_0, window_bounds = array<i64: 4, 8, 256>}, {pipeline_mode = #tpu.pipeline_mode<synchronous>, transform_indices = @transform_1, window_bounds = array<i64: 1, 256>}, {pipeline_mode = #tpu.pipeline_mode<synchronous>, transform_indices = @transform_2, window_bounds = array<i64: 1, 256>}, {pipeline_mode = #tpu.pipeline_mode<synchronous>, transform_indices = @transform_3, window_bounds = array<i64: 1, 256>}, {pipeline_mode = #tpu.pipeline_mode<synchronous>, transform_indices = @transform_4, window_bounds = array<i64: 1, 256>}, {pipeline_mode = #tpu.pipeline_mode<synchronous>, transform_indices = @transform_5, window_bounds = array<i64: 256, 1024>}, {pipeline_mode = #tpu.pipeline_mode<synchronous>, transform_indices = @transform_6, window_bounds = array<i64: 512, 256>}, {pipeline_mode = #tpu.pipeline_mode<synchronous>, transform_indices = @transform_7, window_bounds = array<i64: 1, 256>}, {pipeline_mode = #tpu.pipeline_mode<synchronous>, transform_indices = @transform_8, window_bounds = array<i64: 256, 1024>}, {pipeline_mode = #tpu.pipeline_mode<synchronous>, transform_indices = @transform_9, window_bounds = array<i64: 1, 1024>}, {pipeline_mode = #tpu.pipeline_mode<synchronous>, transform_indices = @transform_10, window_bounds = array<i64: 1024, 256>}, {pipeline_mode = #tpu.pipeline_mode<synchronous>, transform_indices = @transform_11, window_bounds = array<i64: 1, 256>}, {transform_indices = @transform_12, window_bounds = array<i64: 4, 8, 256>}]} {
    %c0 = arith.constant 0 : index
    %c0_0 = arith.constant 0 : index
    %c0_1 = arith.constant 0 : index
    %0 = vector.load %arg1[%c0, %c0_0, %c0_1] : memref<4x8x256xf32, #tpu.memory_space<vmem>>, vector<4x8x256xf32>
    %1 = vector.shape_cast %0 : vector<4x8x256xf32> to vector<32x256xf32>
    %c0_2 = arith.constant 0 : index
    %c0_3 = arith.constant 0 : index
    %2 = vector.load %arg2[%c0_2, %c0_3] : memref<1x256xf32, #tpu.memory_space<vmem>>, vector<1x256xf32>
    %c0_4 = arith.constant 0 : index
    %c0_5 = arith.constant 0 : index
    %3 = vector.load %arg3[%c0_4, %c0_5] : memref<1x256xf32, #tpu.memory_space<vmem>>, vector<1x256xf32>
    %cst = arith.constant dense<0.000000e+00> : vector<32xf32>
    %4 = vector.multi_reduction <add>, %1, %cst [1] : vector<32x256xf32> to vector<32xf32>
    %5 = vector.shape_cast %4 : vector<32xf32> to vector<32x1xf32>
    %cst_6 = arith.constant 2.560000e+02 : f32
    %6 = vector.broadcast %cst_6 : f32 to vector<32x1xf32>
    %7 = arith.divf %5, %6 : vector<32x1xf32>
    %8 = vector.broadcast %7 : vector<32x1xf32> to vector<32x256xf32>
    %9 = arith.subf %1, %8 : vector<32x256xf32>
    %10 = arith.mulf %9, %9 : vector<32x256xf32>
    %cst_7 = arith.constant dense<0.000000e+00> : vector<32xf32>
    %11 = vector.multi_reduction <add>, %10, %cst_7 [1] : vector<32x256xf32> to vector<32xf32>
    %12 = vector.shape_cast %11 : vector<32xf32> to vector<32x1xf32>
    %cst_8 = arith.constant 2.560000e+02 : f32
    %13 = vector.broadcast %cst_8 : f32 to vector<32x1xf32>
    %14 = arith.divf %12, %13 : vector<32x1xf32>
    %cst_9 = arith.constant 9.99999974E-6 : f32
    %15 = vector.broadcast %cst_9 : f32 to vector<32x1xf32>
    %16 = arith.addf %14, %15 : vector<32x1xf32>
    %17 = math.rsqrt %16 : vector<32x1xf32>
    %18 = vector.broadcast %17 : vector<32x1xf32> to vector<32x256xf32>
    %19 = arith.mulf %9, %18 : vector<32x256xf32>
    %20 = vector.broadcast %2 : vector<1x256xf32> to vector<32x256xf32>
    %21 = arith.mulf %19, %20 : vector<32x256xf32>
    %22 = vector.broadcast %3 : vector<1x256xf32> to vector<32x256xf32>
    %23 = arith.addf %21, %22 : vector<32x256xf32>
    %24 = arith.truncf %23 : vector<32x256xf32> to vector<32x256xbf16>
    %c0_10 = arith.constant 0 : index
    %c0_11 = arith.constant 0 : index
    %25 = vector.load %arg6[%c0_10, %c0_11] : memref<256x1024xbf16, #tpu.memory_space<vmem>>, vector<256x1024xbf16>
    %cst_12 = arith.constant dense<0.000000e+00> : vector<32x1024xf32>
    %26 = tpu.matmul %24, %25, %cst_12 {dimension_numbers = #tpu.dot_dimension_numbers<[1], [0], [0], [1], [0, 0, 1, 1], [], []>} : vector<32x256xbf16>, vector<256x1024xbf16>, vector<32x1024xf32> -> vector<32x1024xf32>
    %27 = vector.extract_strided_slice %26 {offsets = [0, 0], sizes = [32, 256], strides = [1, 1]} : vector<32x1024xf32> to vector<32x256xf32>
    %28 = arith.truncf %27 : vector<32x256xf32> to vector<32x256xbf16>
    %29 = vector.extract_strided_slice %26 {offsets = [0, 256], sizes = [32, 256], strides = [1, 1]} : vector<32x1024xf32> to vector<32x256xf32>
    %30 = arith.truncf %29 : vector<32x256xf32> to vector<32x256xbf16>
    %31 = vector.extract_strided_slice %26 {offsets = [0, 512], sizes = [32, 512], strides = [1, 1]} : vector<32x1024xf32> to vector<32x512xf32>
    %32 = arith.truncf %31 : vector<32x512xf32> to vector<32x512xbf16>
    %33 = vector.extract_strided_slice %28 {offsets = [0, 0], sizes = [32, 128], strides = [1, 1]} : vector<32x256xbf16> to vector<32x128xbf16>
    %34 = vector.shape_cast %33 : vector<32x128xbf16> to vector<4x8x128xbf16>
    %35 = vector.extract_strided_slice %28 {offsets = [0, 128], sizes = [32, 128], strides = [1, 1]} : vector<32x256xbf16> to vector<32x128xbf16>
    %36 = vector.shape_cast %35 : vector<32x128xbf16> to vector<4x8x128xbf16>
    %37 = tpu.concatenate %34, %36 in 0 : vector<4x8x128xbf16>, vector<4x8x128xbf16> -> vector<8x8x128xbf16>
    %38 = vector.extract_strided_slice %30 {offsets = [0, 0], sizes = [32, 128], strides = [1, 1]} : vector<32x256xbf16> to vector<32x128xbf16>
    %39 = vector.shape_cast %38 : vector<32x128xbf16> to vector<4x8x128xbf16>
    %40 = vector.extract_strided_slice %30 {offsets = [0, 128], sizes = [32, 128], strides = [1, 1]} : vector<32x256xbf16> to vector<32x128xbf16>
    %41 = vector.shape_cast %40 : vector<32x128xbf16> to vector<4x8x128xbf16>
    %42 = tpu.concatenate %39, %41 in 0 : vector<4x8x128xbf16>, vector<4x8x128xbf16> -> vector<8x8x128xbf16>
    %43 = vector.extract_strided_slice %32 {offsets = [0, 0], sizes = [32, 256], strides = [1, 1]} : vector<32x512xbf16> to vector<32x256xbf16>
    %44 = vector.shape_cast %43 : vector<32x256xbf16> to vector<4x8x256xbf16>
    %45 = vector.extract_strided_slice %32 {offsets = [0, 256], sizes = [32, 256], strides = [1, 1]} : vector<32x512xbf16> to vector<32x256xbf16>
    %46 = vector.shape_cast %45 : vector<32x256xbf16> to vector<4x8x256xbf16>
    %47 = tpu.concatenate %44, %46 in 0 : vector<4x8x256xbf16>, vector<4x8x256xbf16> -> vector<8x8x256xbf16>
    %48 = tpu.iota {dimensions = array<i32: 0>} : vector<8x8xi32>
    %49 = tpu.iota {dimensions = array<i32: 1>} : vector<8x8xi32>
    %50 = arith.cmpi sle, %49, %48 : vector<8x8xi32>
    %cst_13 = arith.constant 0.000000e+00 : f32
    %cst_14 = arith.constant -1.000000e+30 : f32
    %51 = vector.broadcast %cst_13 : f32 to vector<8x8xf32>
    %52 = vector.broadcast %cst_14 : f32 to vector<8x8xf32>
    %53 = arith.select %50, %51, %52 : vector<8x8xi1>, vector<8x8xf32>
    "tpu.trace_start"() <{level = 10 : i32, message = "bqc,bkc->bqk"}> : () -> ()
    %cst_15 = arith.constant dense<0.000000e+00> : vector<8x8x8xf32>
    %54 = tpu.matmul %37, %42, %cst_15 {dimension_numbers = #tpu.dot_dimension_numbers<[2], [2], [1], [1], [0, 0, 0, 1, 1, 1], [0], [0]>} : vector<8x8x128xbf16>, vector<8x8x128xbf16>, vector<8x8x8xf32> -> vector<8x8x8xf32>
    "tpu.trace_stop"() : () -> ()
    %cst_16 = arith.constant 0.0883883461 : f32
    %55 = vector.broadcast %cst_16 : f32 to vector<8x8x8xf32>
    %56 = arith.mulf %54, %55 : vector<8x8x8xf32>
    %57 = vector.shape_cast %53 : vector<8x8xf32> to vector<1x8x8xf32>
    %58 = vector.broadcast %57 : vector<1x8x8xf32> to vector<8x8x8xf32>
    %59 = arith.addf %56, %58 : vector<8x8x8xf32>
    %cst_17 = arith.constant dense<0xFF800000> : vector<8x8xf32>
    %60 = vector.multi_reduction <maximumf>, %59, %cst_17 [2] : vector<8x8x8xf32> to vector<8x8xf32>
    %61 = vector.shape_cast %60 : vector<8x8xf32> to vector<8x8x1xf32>
    %62 = vector.broadcast %61 : vector<8x8x1xf32> to vector<8x8x8xf32>
    %63 = arith.subf %59, %62 : vector<8x8x8xf32>
    %64 = math.exp %63 : vector<8x8x8xf32>
    %cst_18 = arith.constant dense<0.000000e+00> : vector<8x8xf32>
    %65 = vector.multi_reduction <add>, %64, %cst_18 [2] : vector<8x8x8xf32> to vector<8x8xf32>
    %66 = vector.shape_cast %65 : vector<8x8xf32> to vector<8x8x1xf32>
    %67 = tpu.reciprocal %66 {approx = true} : vector<8x8x1xf32> -> vector<8x8x1xf32>
    %68 = vector.broadcast %67 : vector<8x8x1xf32> to vector<8x8x8xf32>
    %69 = arith.mulf %64, %68 : vector<8x8x8xf32>
    %70 = arith.truncf %69 : vector<8x8x8xf32> to vector<8x8x8xbf16>
    "tpu.trace_start"() <{level = 10 : i32, message = "bqk,bkd->bqd"}> : () -> ()
    %cst_19 = arith.constant dense<0.000000e+00> : vector<8x8x256xf32>
    %71 = tpu.matmul %70, %47, %cst_19 {dimension_numbers = #tpu.dot_dimension_numbers<[2], [1], [1], [2], [0, 0, 0, 1, 1, 2], [0], [0]>} : vector<8x8x8xbf16>, vector<8x8x256xbf16>, vector<8x8x256xf32> -> vector<8x8x256xf32>
    "tpu.trace_stop"() : () -> ()
    %72 = arith.truncf %71 : vector<8x8x256xf32> to vector<8x8x256xbf16>
    %73 = vector.extract_strided_slice %72 {offsets = [0, 0, 0], sizes = [4, 8, 256], strides = [1, 1, 1]} : vector<8x8x256xbf16> to vector<4x8x256xbf16>
    %74 = vector.shape_cast %73 : vector<4x8x256xbf16> to vector<32x256xbf16>
    %75 = vector.extract_strided_slice %72 {offsets = [4, 0, 0], sizes = [4, 8, 256], strides = [1, 1, 1]} : vector<8x8x256xbf16> to vector<4x8x256xbf16>
    %76 = vector.shape_cast %75 : vector<4x8x256xbf16> to vector<32x256xbf16>
    %77 = tpu.concatenate %74, %76 in 1 : vector<32x256xbf16>, vector<32x256xbf16> -> vector<32x512xbf16>
    %c0_20 = arith.constant 0 : index
    %c0_21 = arith.constant 0 : index
    %78 = vector.load %arg7[%c0_20, %c0_21] : memref<512x256xbf16, #tpu.memory_space<vmem>>, vector<512x256xbf16>
    %cst_22 = arith.constant dense<0.000000e+00> : vector<32x256xf32>
    %79 = tpu.matmul %77, %78, %cst_22 {dimension_numbers = #tpu.dot_dimension_numbers<[1], [0], [0], [1], [0, 0, 1, 1], [], []>} : vector<32x512xbf16>, vector<512x256xbf16>, vector<32x256xf32> -> vector<32x256xf32>
    %80 = arith.addf %1, %79 : vector<32x256xf32>
    %c0_23 = arith.constant 0 : index
    %c0_24 = arith.constant 0 : index
    %81 = vector.load %arg8[%c0_23, %c0_24] : memref<1x256xf32, #tpu.memory_space<vmem>>, vector<1x256xf32>
    %82 = vector.broadcast %81 : vector<1x256xf32> to vector<32x256xf32>
    %83 = arith.addf %80, %82 : vector<32x256xf32>
    %c0_25 = arith.constant 0 : index
    %c0_26 = arith.constant 0 : index
    %84 = vector.load %arg4[%c0_25, %c0_26] : memref<1x256xf32, #tpu.memory_space<vmem>>, vector<1x256xf32>
    %c0_27 = arith.constant 0 : index
    %c0_28 = arith.constant 0 : index
    %85 = vector.load %arg5[%c0_27, %c0_28] : memref<1x256xf32, #tpu.memory_space<vmem>>, vector<1x256xf32>
    %cst_29 = arith.constant dense<0.000000e+00> : vector<32xf32>
    %86 = vector.multi_reduction <add>, %83, %cst_29 [1] : vector<32x256xf32> to vector<32xf32>
    %87 = vector.shape_cast %86 : vector<32xf32> to vector<32x1xf32>
    %cst_30 = arith.constant 2.560000e+02 : f32
    %88 = vector.broadcast %cst_30 : f32 to vector<32x1xf32>
    %89 = arith.divf %87, %88 : vector<32x1xf32>
    %90 = vector.broadcast %89 : vector<32x1xf32> to vector<32x256xf32>
    %91 = arith.subf %83, %90 : vector<32x256xf32>
    %92 = arith.mulf %91, %91 : vector<32x256xf32>
    %cst_31 = arith.constant dense<0.000000e+00> : vector<32xf32>
    %93 = vector.multi_reduction <add>, %92, %cst_31 [1] : vector<32x256xf32> to vector<32xf32>
    %94 = vector.shape_cast %93 : vector<32xf32> to vector<32x1xf32>
    %cst_32 = arith.constant 2.560000e+02 : f32
    %95 = vector.broadcast %cst_32 : f32 to vector<32x1xf32>
    %96 = arith.divf %94, %95 : vector<32x1xf32>
    %cst_33 = arith.constant 9.99999974E-6 : f32
    %97 = vector.broadcast %cst_33 : f32 to vector<32x1xf32>
    %98 = arith.addf %96, %97 : vector<32x1xf32>
    %99 = math.rsqrt %98 : vector<32x1xf32>
    %100 = vector.broadcast %99 : vector<32x1xf32> to vector<32x256xf32>
    %101 = arith.mulf %91, %100 : vector<32x256xf32>
    %102 = vector.broadcast %84 : vector<1x256xf32> to vector<32x256xf32>
    %103 = arith.mulf %101, %102 : vector<32x256xf32>
    %104 = vector.broadcast %85 : vector<1x256xf32> to vector<32x256xf32>
    %105 = arith.addf %103, %104 : vector<32x256xf32>
    %106 = arith.truncf %105 : vector<32x256xf32> to vector<32x256xbf16>
    %c0_34 = arith.constant 0 : index
    %c0_35 = arith.constant 0 : index
    %107 = vector.load %arg9[%c0_34, %c0_35] : memref<256x1024xbf16, #tpu.memory_space<vmem>>, vector<256x1024xbf16>
    %cst_36 = arith.constant dense<0.000000e+00> : vector<32x1024xf32>
    %108 = tpu.matmul %106, %107, %cst_36 {dimension_numbers = #tpu.dot_dimension_numbers<[1], [0], [0], [1], [0, 0, 1, 1], [], []>} : vector<32x256xbf16>, vector<256x1024xbf16>, vector<32x1024xf32> -> vector<32x1024xf32>
    %c0_37 = arith.constant 0 : index
    %c0_38 = arith.constant 0 : index
    %109 = vector.load %arg10[%c0_37, %c0_38] : memref<1x1024xf32, #tpu.memory_space<vmem>>, vector<1x1024xf32>
    %110 = vector.broadcast %109 : vector<1x1024xf32> to vector<32x1024xf32>
    %111 = arith.addf %108, %110 : vector<32x1024xf32>
    %cst_39 = arith.constant 0.000000e+00 : f32
    %112 = vector.broadcast %cst_39 : f32 to vector<32x1024xf32>
    %113 = arith.maximumf %111, %112 : vector<32x1024xf32>
    %114 = arith.truncf %113 : vector<32x1024xf32> to vector<32x1024xbf16>
    %c0_40 = arith.constant 0 : index
    %c0_41 = arith.constant 0 : index
    %115 = vector.load %arg11[%c0_40, %c0_41] : memref<1024x256xbf16, #tpu.memory_space<vmem>>, vector<1024x256xbf16>
    %cst_42 = arith.constant dense<0.000000e+00> : vector<32x256xf32>
    %116 = tpu.matmul %114, %115, %cst_42 {dimension_numbers = #tpu.dot_dimension_numbers<[1], [0], [0], [1], [0, 0, 1, 1], [], []>} : vector<32x1024xbf16>, vector<1024x256xbf16>, vector<32x256xf32> -> vector<32x256xf32>
    %c0_43 = arith.constant 0 : index
    %c0_44 = arith.constant 0 : index
    %117 = vector.load %arg12[%c0_43, %c0_44] : memref<1x256xf32, #tpu.memory_space<vmem>>, vector<1x256xf32>
    %118 = vector.broadcast %117 : vector<1x256xf32> to vector<32x256xf32>
    %119 = arith.addf %116, %118 : vector<32x256xf32>
    %120 = arith.addf %83, %119 : vector<32x256xf32>
    %121 = vector.shape_cast %120 : vector<32x256xf32> to vector<4x8x256xf32>
    %c0_45 = arith.constant 0 : index
    %c0_46 = arith.constant 0 : index
    %c0_47 = arith.constant 0 : index
    %122 = vector.load %arg13[%c0_45, %c0_46, %c0_47] : memref<4x8x256xf32, #tpu.memory_space<vmem>>, vector<4x8x256xf32>
    tpu.vector_store %arg13[%c0_45, %c0_46, %c0_47], %121 {strides = array<i32>} : memref<4x8x256xf32, #tpu.memory_space<vmem>>, vector<4x8x256xf32>,
    return
  }
  func.func @transform_0(%arg0: i32) -> (i32, i32, i32) {
    %c0_i32 = arith.constant 0 : i32
    %c0_i32_0 = arith.constant 0 : i32
    %c0_i32_1 = arith.constant 0 : i32
    return %arg0, %c0_i32, %c0_i32_0 : i32, i32, i32
  }
  func.func @transform_1(%arg0: i32) -> (i32, i32) {
    %c0_i32 = arith.constant 0 : i32
    %c0_i32_0 = arith.constant 0 : i32
    %c0_i32_1 = arith.constant 0 : i32
    return %c0_i32, %c0_i32_0 : i32, i32
  }
  func.func @transform_2(%arg0: i32) -> (i32, i32) {
    %c0_i32 = arith.constant 0 : i32
    %c0_i32_0 = arith.constant 0 : i32
    %c0_i32_1 = arith.constant 0 : i32
    return %c0_i32, %c0_i32_0 : i32, i32
  }
  func.func @transform_3(%arg0: i32) -> (i32, i32) {
    %c0_i32 = arith.constant 0 : i32
    %c0_i32_0 = arith.constant 0 : i32
    %c0_i32_1 = arith.constant 0 : i32
    return %c0_i32, %c0_i32_0 : i32, i32
  }
  func.func @transform_4(%arg0: i32) -> (i32, i32) {
    %c0_i32 = arith.constant 0 : i32
    %c0_i32_0 = arith.constant 0 : i32
    %c0_i32_1 = arith.constant 0 : i32
    return %c0_i32, %c0_i32_0 : i32, i32
  }
  func.func @transform_5(%arg0: i32) -> (i32, i32) {
    %c0_i32 = arith.constant 0 : i32
    %c0_i32_0 = arith.constant 0 : i32
    %c0_i32_1 = arith.constant 0 : i32
    return %c0_i32, %c0_i32_0 : i32, i32
  }
  func.func @transform_6(%arg0: i32) -> (i32, i32) {
    %c0_i32 = arith.constant 0 : i32
    %c0_i32_0 = arith.constant 0 : i32
    %c0_i32_1 = arith.constant 0 : i32
    return %c0_i32, %c0_i32_0 : i32, i32
  }
  func.func @transform_7(%arg0: i32) -> (i32, i32) {
    %c0_i32 = arith.constant 0 : i32
    %c0_i32_0 = arith.constant 0 : i32
    %c0_i32_1 = arith.constant 0 : i32
    return %c0_i32, %c0_i32_0 : i32, i32
  }
  func.func @transform_8(%arg0: i32) -> (i32, i32) {
    %c0_i32 = arith.constant 0 : i32
    %c0_i32_0 = arith.constant 0 : i32
    %c0_i32_1 = arith.constant 0 : i32
    return %c0_i32, %c0_i32_0 : i32, i32
  }
  func.func @transform_9(%arg0: i32) -> (i32, i32) {
    %c0_i32 = arith.constant 0 : i32
    %c0_i32_0 = arith.constant 0 : i32
    %c0_i32_1 = arith.constant 0 : i32
    return %c0_i32, %c0_i32_0 : i32, i32
  }
  func.func @transform_10(%arg0: i32) -> (i32, i32) {
    %c0_i32 = arith.constant 0 : i32
    %c0_i32_0 = arith.constant 0 : i32
    %c0_i32_1 = arith.constant 0 : i32
    return %c0_i32, %c0_i32_0 : i32, i32
  }
  func.func @transform_11(%arg0: i32) -> (i32, i32) {
    %c0_i32 = arith.constant 0 : i32
    %c0_i32_0 = arith.constant 0 : i32
    %c0_i32_1 = arith.constant 0 : i32
    return %c0_i32, %c0_i32_0 : i32, i32
  }
  func.func @transform_12(%arg0: i32) -> (i32, i32, i32) {
    %c0_i32 = arith.constant 0 : i32
    %c0_i32_0 = arith.constant 0 : i32
    %c0_i32_1 = arith.constant 0 : i32
    return %arg0, %c0_i32, %c0_i32_0 : i32, i32, i32
  }
}

</mosaic_0001>

<bundles_post_ra>
// kernel: tpu_custom_call.1
= control target key start
LH: loop header
LB: loop body
LE: loop exit
PB: predicated region body
PF: predicated region fallthrough
CT: control target
= control target key end

     0   :  { %17 = vsyncpa [#allocation3], 0  ;;  %s8378_s0 = inlined_call_operand.hbm [shape: f32[4,8,256], index: 0, kind: input, shape index: {}]   ;;  %s8379_s1 = inlined_call_operand.hbm [shape: f32[1,256], index: 1, kind: input, shape index: {}]   ;;  %s8380_s2 = inlined_call_operand.hbm [shape: f32[1,256], index: 2, kind: input, shape index: {}]   ;;  %s8381_s3 = inlined_call_operand.hbm [shape: f32[1,256], index: 3, kind: input, shape index: {}]   ;;  %s8382_s4 = inlined_call_operand.hbm [shape: f32[1,256], index: 4, kind: input, shape index: {}]   ;;  %s8383_s5 = inlined_call_operand.hbm [shape: bf16[256,1024], index: 5, kind: input, shape index: {}]   ;;  %s8384_s6 = inlined_call_operand.hbm [shape: bf16[512,256], index: 6, kind: input, shape index: {}]   ;;  %s8385_s7 = inlined_call_operand.hbm [shape: f32[1,256], index: 7, kind: input, shape index: {}]   ;;  %s8386_s8 = inlined_call_operand.hbm [shape: bf16[256,1024], index: 8, kind: input, shape index: {}]   ;;  %s8387_s9 = inlined_call_operand.vmem [shape: f32[1,1024], index: 9, kind: input, shape index: {}]   ;;  %s8388_s10 = inlined_call_operand.hbm [shape: bf16[1024,256], index: 10, kind: input, shape index: {}]   ;;  %s8389_s11 = inlined_call_operand.vmem [shape: f32[1,256], index: 11, kind: input, shape index: {}]   ;;  %s8390_s12 = inlined_call_operand.hbm [shape: f32[4,8,256], index: 12, kind: output, shape index: {}]  }
   0x1   :  { %18 = vsyncpa [#allocation6], 0 }
   0x2   :  { %19 = vsyncpa [#allocation9], 0 }
   0x3   :  { %20 = vsyncpa [#allocation12], 0 }
   0x4   :  { %21 = vsyncpa [#allocation15], 0 }
   0x5   :  { %22 = vsyncpa [#allocation18], 0  ;;  %s42_s23 = sshll.u32 %s8379_s1, 4  ;;  %s43_s23 = int_to_ptr.hbm [resolvable:$true] %s42_s23 }
   0x6   :  { %23 = vsyncpa [#allocation4], 0  ;;  %s7597_s24 = smov [#allocation5]   ;;  %s64_s28 = sshll.u32 %s8381_s3, 4  ;;  %s65_s28 = int_to_ptr.hbm [resolvable:$true] %s64_s28 }
   0x7   :  { %s44_s25 = sshll.u32 %s7597_s24, 4  ;;  %s7598_s29 = smov [#allocation8]   ;;  %s45_s25 = int_to_ptr.vmem [resolvable:$true] %s44_s25 }
   0x8   :  { %47 = dma.hbm_to_vmem [thread:$0]  %s43_s23, 32, %s45_s25, [#allocation6]  }
   0x9   :  { %s66_s30 = sshll.u32 %s7598_s29, 4  ;;  %s85_s15 = sshll.u32 %s8383_s5, 4  ;;  %s67_s30 = int_to_ptr.vmem [resolvable:$true] %s66_s30  ;;  %s86_s15 = int_to_ptr.hbm [resolvable:$true] %s85_s15 }
   0xa   :  { %69 = dma.hbm_to_vmem [thread:$0]  %s65_s28, 32, %s67_s30, [#allocation9]  }
   0xb   :  { %s7599_s1 = smov [#allocation11]   ;;  %s112_s19 = sshll.u32 %s8385_s7, 4  ;;  %s113_s19 = int_to_ptr.hbm [resolvable:$true] %s112_s19 }
   0xc   :  { %s87_s16 = sshll.u32 %s7599_s1, 4  ;;  %s7600_s20 = smov 512   ;;  %s88_s16 = int_to_ptr.vmem [resolvable:$true] %s87_s16 }
   0xd   :  { %s7601_s3 = smov 32   ;;  %s7602_s21 = smov [#allocation14]  }
   0xe   :  { %93 = dma.hbm_to_vmem [thread:$0]  %s86_s15, 16384, %s88_s16, [#allocation12], %s7600_s20, %s7600_s20, %s7601_s3  }
   0xf   :  { %s114_s22 = sshll.u32 %s7602_s21, 4  ;;  %s28_s24 = sshll.u32 %s8378_s0, 4  ;;  %s115_s22 = int_to_ptr.vmem [resolvable:$true] %s114_s22  ;;  %s29_s24 = int_to_ptr.hbm [resolvable:$true] %s28_s24 }
  0x10   :  { %117 = dma.hbm_to_vmem [thread:$0]  %s113_s19, 32, %s115_s22, [#allocation15]  }
  0x11   :  { %s7603_s25 = smov [#allocation2]   ;;  %s53_s28 = sshll.u32 %s8380_s2, 4  ;;  %s54_s28 = int_to_ptr.hbm [resolvable:$true] %s53_s28 }
  0x12   :  { %s30_s26 = sshll.u32 %s7603_s25, 4  ;;  %s7604_s29 = smov 256   ;;  %s31_s26 = int_to_ptr.vmem [resolvable:$true] %s30_s26 }
  0x13   :  { %s7605_s30 = smov 16   ;;  %s7606_s13 = smov [#allocation7]  }
  0x14   :  { %36 = dma.hbm_to_vmem [thread:$0]  %s29_s24, 1024, %s31_s26, [#allocation3], %s7604_s29, %s7604_s29, %s7605_s30  }
  0x15   :  { %s55_s14 = sshll.u32 %s7606_s13, 4  ;;  %s75_s1 = sshll.u32 %s8382_s4, 4  ;;  %s56_s14 = int_to_ptr.vmem [resolvable:$true] %s55_s14  ;;  %s76_s1 = int_to_ptr.hbm [resolvable:$true] %s75_s1 }
  0x16   :  { %58 = dma.hbm_to_vmem [thread:$0]  %s54_s28, 32, %s56_s14, [#allocation6]  }
  0x17   :  { %s98_s2 = sshll.u32 %s8384_s6, 4  ;;  %s7607_s18 = smov [#allocation10]   ;;  %s99_s2 = int_to_ptr.hbm [resolvable:$true] %s98_s2 }
  0x18   :  { %s77_s19 = sshll.u32 %s7607_s18, 4  ;;  %s7608_s21 = smov [#allocation13]   ;;  %s78_s19 = int_to_ptr.vmem [resolvable:$true] %s77_s19 }
  0x19   :  { %80 = dma.hbm_to_vmem [thread:$0]  %s76_s1, 32, %s78_s19, [#allocation9]  }
  0x1a   :  { %s100_s22 = sshll.u32 %s7608_s21, 4  ;;  %s7609_s5 = smov 128   ;;  %s101_s22 = int_to_ptr.vmem [resolvable:$true] %s100_s22 }
  0x1b   :  { %s7610_s23 = smov 8   ;;  %s122_s25 = sshll.u32 %s8386_s8, 4  ;;  %s123_s25 = int_to_ptr.hbm [resolvable:$true] %s122_s25 }
  0x1c   :  { %106 = dma.hbm_to_vmem [thread:$0]  %s99_s2, 8192, %s101_s22, [#allocation12], %s7609_s5, %s7609_s5, %s7610_s23  }
  0x1d   :  { %s7611_s26 = smov [#allocation16]   ;;  %s137_s28 = sshll.u32 %s8388_s10, 4  ;;  %s138_s28 = int_to_ptr.hbm [resolvable:$true] %s137_s28 }
  0x1e   :  { %s124_s7 = sshll.u32 %s7611_s26, 4  ;;  %s7612_s13 = smov [#allocation17]   ;;  %s125_s7 = int_to_ptr.vmem [resolvable:$true] %s124_s7 }
  0x1f   :  { %130 = dma.hbm_to_vmem [thread:$0]  %s123_s25, 16384, %s125_s7, [#allocation15], %s7600_s20, %s7600_s20, %s7601_s3  }
  0x20   :  { %s139_s14 = sshll.u32 %s7612_s13, 4  ;;  %s140_s14 = int_to_ptr.vmem [resolvable:$true] %s139_s14 }
  0x21   :  { %145 = dma.hbm_to_vmem [thread:$0]  %s138_s28, 16384, %s140_s14, [#allocation18], %s7609_s5, %s7609_s5, %s7610_s23  }
  0x22   :  { %7583 = dma.done.wait [#allocation3], 1024  }
  0x23   :  { %7584 = vsyncadd [#allocation3], 4294966272 }
  0x24   :  { %7585 = dma.done.wait [#allocation6], 64  }
  0x25   :  { %7586 = vsyncadd [#allocation6], 4294967232 }
  0x26   :  { %7587 = dma.done.wait [#allocation9], 64  }
  0x27   :  { %7588 = vsyncadd [#allocation9], 4294967232 }
  0x28   :  { %7589 = dma.done.wait [#allocation12], 24576  }
  0x29   :  { %7590 = vsyncadd [#allocation12], 4294942720 }
  0x2a   :  { %7591 = dma.done.wait [#allocation15], 16416  }
  0x2b   :  { %7592 = vsyncadd [#allocation15], 4294950880 }
  0x2c   :  { %7593 = dma.done.wait [#allocation18], 16384  }
  0x2d   :  { %7594 = vsyncadd [#allocation18], 4294950912  ;;  %v193_v0 = vld [vmem:[#allocation2 + $0x20] sm:$0xff]  ;;  %v194_v1 = vld [vmem:[#allocation2 + $0x28] sm:$0xff]  ;;  %v7613_v12 = vmov 256.0   ;;  %vm1679_vm13 = vcmask 1043456  }
  0x2e   :  { %v189_v2 = vld [vmem:[#allocation2] sm:$0xff]  ;;  %v205_v3 = vadd.f32 %v194_v1, %v193_v0  ;;  %v190_v4 = vld [vmem:[#allocation2 + $0x8] sm:$0xff]  ;;  %v195_v6 = vld [vmem:[#allocation2 + $0x30] sm:$0xff]  ;;  %7261 = vrcp.f32 %v7613_v12  ;;  %vm1574_vm15 = vcmask 64512   ;;  %s4968_s1 = sshll.u32 %s8390_s12, 4  ;;  %s4969_s1 = int_to_ptr.hbm [resolvable:$true] %s4968_s1 }
  0x2f   :  { %v199_v5 = vadd.f32 %v190_v4, %v189_v2  ;;  %v196_v7 = vld [vmem:[#allocation2 + $0x38] sm:$0xff]  ;;  %v191_v8 = vld [vmem:[#allocation2 + $0x10] sm:$0xff]  ;;  %v5212_v47 = vld [vmem:[#allocation11 + $0x1c0] sm:$0xf] }
  0x30   :  { %206 = vadd.xlane.f32.xlu1 %v205_v3  ;;  %v192_v9 = vld [vmem:[#allocation2 + $0x18] sm:$0xff]  ;;  %v208_v10 = vadd.f32 %v196_v7, %v195_v6  ;;  %v6854_v48 = vld [vmem:[#allocation11 + $0x1dc] sm:$0xf0]  ;;  %v6850_v52 = vld [vmem:[#allocation11 + $0x1c4] sm:$0xf] }
  0x31   :  { %200 = vadd.xlane.f32.xlu0 %v199_v5  ;;  %v202_v11 = vadd.f32 %v192_v9, %v191_v8  ;;  %v5468_v49 = vld [vmem:[#allocation11 + $0x3c0] sm:$0xf]  ;;  %v5213_v50 = vor.u32 %v6854_v48, %v5212_v47  ;;  %v5214_v53 = vld [vmem:[#allocation11 + $0x1e0] sm:$0xf0] }
  0x32   :  { %v6918_v51 = vld [vmem:[#allocation11 + $0x3dc] sm:$0xf0]  ;;  %v5217_v55 = vor.u32 %v6850_v52, %v5214_v53  ;;  %v6914_v56 = vld [vmem:[#allocation11 + $0x3c4] sm:$0xf] }
  0x33   :  { %v5469_v54 = vor.u32 %v6918_v51, %v5468_v49  ;;  %v5470_v57 = vld [vmem:[#allocation11 + $0x3e0] sm:$0xf0]  ;;  %1104 = vmatpush.bf16.msra.mxu0 %v5213_v50  ;;  %v5180_v59 = vld [vmem:[#allocation11 + $0x180] sm:$0xf] }
  0x34   :  { %v7262_v13 = vpop.eup %7261  ;;  %v5473_v58 = vor.u32 %v6914_v56, %v5470_v57  ;;  %1142 = vmatpush.bf16.msra.mxu2 %v5217_v55  ;;  %v6846_v60 = vld [vmem:[#allocation11 + $0x19c] sm:$0xf0]  ;;  %v5438_v5 = vld [vmem:[#allocation11 + $0x3a0] sm:$0xf0] }
  0x35   :  { %v212_v14 = vmul.f32 256.0, %v7262_v13  ;;  %vm216_vm0 = vweird.f32 %v7262_v13  ;;  %1123 = vmatpush.bf16.msra.mxu1 %v5469_v54  ;;  %v5436_v61 = vld [vmem:[#allocation11 + $0x380] sm:$0xf]  ;;  %v5181_v62 = vor.u32 %v6846_v60, %v5180_v59  ;;  %v6834_v12 = vld [vmem:[#allocation11 + $0x144] sm:$0xf] }
  0x36   :  { %1161 = vmatpush.bf16.msra.mxu3 %v5473_v58  ;;  %v6910_v63 = vld [vmem:[#allocation11 + $0x39c] sm:$0xf0]  ;;  %v6882_v49 = vld [vmem:[#allocation11 + $0x2c4] sm:$0xf] }
  0x37   :  { %v213_v15 = vsub.f32 1.0, %v212_v14  ;;  %1105 = vmatpush.bf16.msra.mxu0 %v5181_v62  ;;  %v5342_v50 = vld [vmem:[#allocation11 + $0x2e0] sm:$0xf0]  ;;  %v5052_v52 = vld [vmem:[#allocation11 + $0x80] sm:$0xf] }
  0x38   :  { %209 = vadd.xlane.f32.xlu1 %v208_v10  ;;  %v5345_v51 = vor.u32 %v6882_v49, %v5342_v50  ;;  %v6814_v53 = vld [vmem:[#allocation11 + $0x9c] sm:$0xf0]  ;;  %v6810_v57 = vld [vmem:[#allocation11 + $0x84] sm:$0xf] }
  0x39   :  { %203 = vadd.xlane.f32.xlu0 %v202_v11  ;;  %v214_v16 = vmul.f32 %v7262_v13, %v213_v15  ;;  %v6902_v11 = vld [vmem:[#allocation11 + $0x35c] sm:$0xf0]  ;;  %v5053_v55 = vor.u32 %v6814_v53, %v5052_v52  ;;  %v5054_v58 = vld [vmem:[#allocation11 + $0xa0] sm:$0xf0]  ;;  %v5478_v52 = vld [vmem:[#allocation11 + $0x3e8] sm:$0xf0] }
  0x3a   :  { %v5308_v54 = vld [vmem:[#allocation11 + $0x280] sm:$0xf]  ;;  %v5057_v60 = vor.u32 %v6810_v57, %v5054_v58  ;;  %v5310_v62 = vld [vmem:[#allocation11 + $0x2a0] sm:$0xf0]  ;;  %v5188_v53 = vld [vmem:[#allocation11 + $0x188] sm:$0xf] }
  0x3b   :  { %v215_v17 = vadd.f32 %v7262_v13, %v214_v16  ;;  %v6898_v16 = vld [vmem:[#allocation11 + $0x344] sm:$0xf]  ;;  %v6878_v56 = vld [vmem:[#allocation11 + $0x29c] sm:$0xf0]  ;;  %v5444_v57 = vld [vmem:[#allocation11 + $0x388] sm:$0xf] }
  0x3c   :  { %v5309_v59 = vor.u32 %v6878_v56, %v5308_v54  ;;  %v6847_v56 = vld [vmem:[#allocation11 + $0x1a4] sm:$0xf0] }
  0x3d   :  { %v7720_v18 = vsel %vm216_vm0, %v7262_v13, %v215_v17  ;;  %v5150_v13 = vld [vmem:[#allocation11 + $0x160] sm:$0xf0]  ;;  %v6911_v58 = vld [vmem:[#allocation11 + $0x3a4] sm:$0xf0] }
  0x3e   :  { %v5153_v15 = vor.u32 %v6834_v12, %v5150_v13  ;;  %v5406_v17 = vld [vmem:[#allocation11 + $0x360] sm:$0xf0] }
  0xa3   :  { %v207_v19 = vpop.xlane.xlu1 %206 }
  0xa4   :  { %v220_v20 = vmul.f32 %v7720_v18, %v207_v19  ;;  %v201_v21 = vpop.xlane.xlu0 %200  ;;  %v5409_v19 = vor.u32 %v6898_v16, %v5406_v17  ;;  %v4988_v16 = vld [vmem:[#allocation11] sm:$0xf] }
  0xa5   :  { %v218_v22 = vmul.f32 %v7720_v18, %v201_v21  ;;  %v6830_v21 = vld [vmem:[#allocation11 + $0x11c] sm:$0xf0] }
  0xa6   :  { %v7724_v23 = vsub.f32 %v193_v0, %v220_v20  ;;  %v7726_v24 = vsub.f32 %v194_v1, %v220_v20  ;;  %v6842_v0 = vld [vmem:[#allocation11 + $0x184] sm:$0xf]  ;;  %v5116_v20 = vld [vmem:[#allocation11 + $0x100] sm:$0xf] }
  0xa7   :  { %v7728_v25 = vsub.f32 %v189_v2, %v218_v22  ;;  %v7730_v26 = vsub.f32 %v190_v4, %v218_v22  ;;  %v5182_v1 = vld [vmem:[#allocation11 + $0x1a0] sm:$0xf0]  ;;  %v5437_v2 = vor.u32 %v6910_v63, %v5436_v61  ;;  %v5372_v22 = vld [vmem:[#allocation11 + $0x300] sm:$0xf] }
  0xa8   :  { %v234_v27 = vmul.f32 %v7724_v23, %v7724_v23  ;;  %v235_v28 = vmul.f32 %v7726_v24, %v7726_v24  ;;  %v5185_v3 = vor.u32 %v6842_v0, %v5182_v1  ;;  %v6906_v4 = vld [vmem:[#allocation11 + $0x384] sm:$0xf]  ;;  %v5020_v0 = vld [vmem:[#allocation11 + $0x40] sm:$0xf] }
  0xa9   :  { %v230_v29 = vmul.f32 %v7728_v25, %v7728_v25  ;;  %v231_v30 = vmul.f32 %v7730_v26, %v7730_v26  ;;  %1124 = vmatpush.bf16.msra.mxu1 %v5437_v2  ;;  %v6874_v61 = vld [vmem:[#allocation11 + $0x284] sm:$0xf]  ;;  %v6806_v1 = vld [vmem:[#allocation11 + $0x5c] sm:$0xf0] }
  0xaa   :  { %v244_v31 = vadd.f32 %v235_v28, %v234_v27  ;;  %1143 = vmatpush.bf16.msra.mxu2 %v5185_v3  ;;  %v5117_v27 = vor.u32 %v6830_v21, %v5116_v20  ;;  %v6894_v28 = vld [vmem:[#allocation11 + $0x31c] sm:$0xf0]  ;;  %v5313_v63 = vor.u32 %v6874_v61, %v5310_v62  ;;  %v5021_v3 = vor.u32 %v6806_v1, %v5020_v0  ;;  %v5190_v0 = vld [vmem:[#allocation11 + $0x1a8] sm:$0xf0] }
  0xab   :  { %v210_v32 = vpop.xlane.xlu1 %209  ;;  %v238_v33 = vadd.f32 %v231_v30, %v230_v29  ;;  %v6826_v29 = vld [vmem:[#allocation11 + $0x104] sm:$0xf]  ;;  %v5276_v2 = vld [vmem:[#allocation11 + $0x240] sm:$0xf]  ;;  %v5189_v61 = vor.u32 %v6847_v56, %v5188_v53  ;;  %v5445_v62 = vor.u32 %v6911_v58, %v5444_v57 }
  0xac   :  { %v221_v34 = vmul.f32 %v7720_v18, %v210_v32  ;;  %v204_v35 = vpop.xlane.xlu0 %203  ;;  %245 = vadd.xlane.f32.xlu0 %v244_v31  ;;  %v5118_v30 = vld [vmem:[#allocation11 + $0x120] sm:$0xf0]  ;;  %v5373_v31 = vor.u32 %v6894_v28, %v5372_v22  ;;  %v6798_v17 = vld [vmem:[#allocation11 + $0x1c] sm:$0xf0] }
  0xad   :  { %v219_v36 = vmul.f32 %v7720_v18, %v204_v35  ;;  %239 = vadd.xlane.f32.xlu2 %v238_v33  ;;  %v5121_v32 = vor.u32 %v6826_v29, %v5118_v30  ;;  %v6890_v33 = vld [vmem:[#allocation11 + $0x304] sm:$0xf]  ;;  %v4989_v21 = vor.u32 %v6798_v17, %v4988_v16  ;;  %v6862_v22 = vld [vmem:[#allocation11 + $0x21c] sm:$0xf0]  ;;  %v6835_v16 = vld [vmem:[#allocation11 + $0x14c] sm:$0xf] }
  0xae   :  { %v7742_v37 = vsub.f32 %v195_v6, %v221_v34  ;;  %v7744_v38 = vsub.f32 %v196_v7, %v221_v34  ;;  %v5441_v6 = vor.u32 %v6906_v4, %v5438_v5  ;;  %v5148_v7 = vld [vmem:[#allocation11 + $0x140] sm:$0xf]  ;;  %1144 = vmatpush.bf16.msra.mxu2 %v5153_v15  ;;  %v5374_v34 = vld [vmem:[#allocation11 + $0x320] sm:$0xf0]  ;;  %v5158_v17 = vld [vmem:[#allocation11 + $0x168] sm:$0xf0] }
  0xaf   :  { %v7746_v39 = vsub.f32 %v191_v8, %v219_v36  ;;  %v7748_v40 = vsub.f32 %v192_v9, %v219_v36  ;;  %v6838_v8 = vld [vmem:[#allocation11 + $0x15c] sm:$0xf0]  ;;  %v5377_v35 = vor.u32 %v6890_v33, %v5374_v34  ;;  %v6802_v5 = vld [vmem:[#allocation11 + $0x44] sm:$0xf] }
  0xb0   :  { %v236_v41 = vmul.f32 %v7742_v37, %v7742_v37  ;;  %v237_v42 = vmul.f32 %v7744_v38, %v7744_v38  ;;  %v5404_v9 = vld [vmem:[#allocation11 + $0x340] sm:$0xf]  ;;  %1162 = vmatpush.bf16.msra.mxu3 %v5441_v6  ;;  %v5149_v10 = vor.u32 %v6838_v8, %v5148_v7  ;;  %v5022_v6 = vld [vmem:[#allocation11 + $0x60] sm:$0xf0] }
  0xb1   :  { %v232_v43 = vmul.f32 %v7746_v39, %v7746_v39  ;;  %v233_v44 = vmul.f32 %v7748_v40, %v7748_v40  ;;  %v5405_v14 = vor.u32 %v6902_v11, %v5404_v9  ;;  %v5084_v36 = vld [vmem:[#allocation11 + $0xc0] sm:$0xf]  ;;  %v5025_v9 = vor.u32 %v6802_v5, %v5022_v6  ;;  %v5278_v11 = vld [vmem:[#allocation11 + $0x260] sm:$0xf0]  ;;  %v5446_v5 = vld [vmem:[#allocation11 + $0x3a8] sm:$0xf0] }
  0xb2   :  { %v247_v45 = vadd.f32 %v237_v42, %v236_v41  ;;  %1106 = vmatpush.bf16.msra.mxu0 %v5149_v10  ;;  %1145 = vmatpush.bf16.msra.mxu2 %v5121_v32  ;;  %v6822_v41 = vld [vmem:[#allocation11 + $0xdc] sm:$0xf0]  ;;  %v6866_v10 = vld [vmem:[#allocation11 + $0x244] sm:$0xf] }
  0xb3   :  { %v241_v46 = vadd.f32 %v233_v44, %v232_v43  ;;  %1125 = vmatpush.bf16.msra.mxu1 %v5405_v14  ;;  %v5340_v42 = vld [vmem:[#allocation11 + $0x2c0] sm:$0xf]  ;;  %v5085_v43 = vor.u32 %v6822_v41, %v5084_v36  ;;  %v5281_v14 = vor.u32 %v6866_v10, %v5278_v11  ;;  %v4990_v30 = vld [vmem:[#allocation11 + $0x20] sm:$0xf0]  ;;  %v6855_v36 = vld [vmem:[#allocation11 + $0x1e4] sm:$0xf0] }
  0xb4   :  { %248 = vadd.xlane.f32.xlu1 %v247_v45  ;;  %1163 = vmatpush.bf16.msra.mxu3 %v5409_v19  ;;  %v6886_v44 = vld [vmem:[#allocation11 + $0x2dc] sm:$0xf0]  ;;  %v6818_v45 = vld [vmem:[#allocation11 + $0xc4] sm:$0xf]  ;;  %v5476_v41 = vld [vmem:[#allocation11 + $0x3c8] sm:$0xf] }
  0xb5   :  { %242 = vadd.xlane.f32.xlu2 %v241_v46  ;;  %v5086_v46 = vld [vmem:[#allocation11 + $0xe0] sm:$0xf0]  ;;  %v5341_v47 = vor.u32 %v6886_v44, %v5340_v42  ;;  %v6870_v4 = vld [vmem:[#allocation11 + $0x25c] sm:$0xf0]  ;;  %v6919_v44 = vld [vmem:[#allocation11 + $0x3e4] sm:$0xf0] }
  0xb6   :  { %1107 = vmatpush.bf16.msra.mxu0 %v5117_v27  ;;  %v5089_v48 = vor.u32 %v6818_v45, %v5086_v46  ;;  %v5277_v8 = vor.u32 %v6870_v4, %v5276_v2  ;;  %v5244_v19 = vld [vmem:[#allocation11 + $0x200] sm:$0xf]  ;;  %v6794_v27 = vld [vmem:[#allocation11 + $0x4] sm:$0xf]  ;;  %v6851_v45 = vld [vmem:[#allocation11 + $0x1cc] sm:$0xf]  ;;  %v5477_v49 = vor.u32 %v6919_v44, %v5476_v41 }
  0xb7   :  { %1126 = vmatpush.bf16.msra.mxu1 %v5373_v31  ;;  %v5245_v29 = vor.u32 %v6862_v22, %v5244_v19  ;;  %v6858_v31 = vld [vmem:[#allocation11 + $0x204] sm:$0xf]  ;;  %v4993_v32 = vor.u32 %v6794_v27, %v4990_v30  ;;  %v5222_v46 = vld [vmem:[#allocation11 + $0x1e8] sm:$0xf0]  ;;  %v5412_v11 = vld [vmem:[#allocation11 + $0x348] sm:$0xf] }
  0xb8   :  { %1164 = vmatpush.bf16.msra.mxu3 %v5377_v35  ;;  %1146 = vmatpush.bf16.msra.mxu2 %v5089_v48  ;;  %v5246_v33 = vld [vmem:[#allocation11 + $0x220] sm:$0xf0]  ;;  %v5220_v35 = vld [vmem:[#allocation11 + $0x1c8] sm:$0xf]  ;;  %v5225_v50 = vor.u32 %v6851_v45, %v5222_v46  ;;  %v6907_v4 = vld [vmem:[#allocation11 + $0x38c] sm:$0xf] }
  0xb9   :  { %v5249_v34 = vor.u32 %v6858_v31, %v5246_v33  ;;  %v5449_v10 = vor.u32 %v6907_v4, %v5446_v5  ;;  %v6899_v19 = vld [vmem:[#allocation11 + $0x34c] sm:$0xf]  ;;  %v5124_v27 = vld [vmem:[#allocation11 + $0x108] sm:$0xf]  ;;  %v197_v33 = vld [vmem:[#allocation5] sm:$0x3] }
  0xba   :  { %1108 = vmatpush.bf16.msra.mxu0 %v5085_v43  ;;  %v5221_v43 = vor.u32 %v6855_v36, %v5220_v35  ;;  %v5414_v22 = vld [vmem:[#allocation11 + $0x368] sm:$0xf0]  ;;  %v6831_v31 = vld [vmem:[#allocation11 + $0x124] sm:$0xf0]  ;;  %v7797_v56 = vperm.slane %v197_v33, 1 }
  0xbb   :  { %1127 = vmatpush.bf16.msra.mxu1 %v5341_v47  ;;  %v5417_v30 = vor.u32 %v6899_v19, %v5414_v22  ;;  %v5125_v35 = vor.u32 %v6831_v31, %v5124_v27  ;;  %v6895_v36 = vld [vmem:[#allocation11 + $0x324] sm:$0xf0]  ;;  %v6827_v41 = vld [vmem:[#allocation11 + $0x10c] sm:$0xf] }
  0xbc   :  { %1165 = vmatpush.bf16.msra.mxu3 %v5345_v51  ;;  %1147 = vmatpush.bf16.msra.mxu2 %v5057_v60  ;;  %v6915_v51 = vld [vmem:[#allocation11 + $0x3cc] sm:$0xf]  ;;  %v6815_v27 = vld [vmem:[#allocation11 + $0xa4] sm:$0xf0] }
  0xbd   :  { %v5126_v45 = vld [vmem:[#allocation11 + $0x128] sm:$0xf0] }
  0xbe   :  { %1109 = vmatpush.bf16.msra.mxu0 %v5053_v55  ;;  %v5481_v55 = vor.u32 %v6915_v51, %v5478_v52  ;;  %v6891_v46 = vld [vmem:[#allocation11 + $0x30c] sm:$0xf]  ;;  %v198_v51 = vld [vmem:[#allocation7] sm:$0x3] }
  0xbf   :  { %1128 = vmatpush.bf16.msra.mxu1 %v5309_v59  ;;  %v6811_v31 = vld [vmem:[#allocation11 + $0x8c] sm:$0xf] }
  0xc0   :  { %1166 = vmatpush.bf16.msra.mxu3 %v5313_v63  ;;  %1148 = vmatpush.bf16.msra.mxu2 %v5025_v9  ;;  %v6843_v63 = vld [vmem:[#allocation11 + $0x18c] sm:$0xf] }
  0xc2   :  { %1110 = vmatpush.bf16.msra.mxu0 %v5021_v3  ;;  %v5193_v3 = vor.u32 %v6843_v63, %v5190_v0  ;;  %v6823_v63 = vld [vmem:[#allocation11 + $0xe4] sm:$0xf0] }
  0xc3   :  { %1129 = vmatpush.bf16.msra.mxu1 %v5277_v8  ;;  %v6839_v8 = vld [vmem:[#allocation11 + $0x164] sm:$0xf0] }
  0xc4   :  { %1167 = vmatpush.bf16.msra.mxu3 %v5281_v14  ;;  %1149 = vmatpush.bf16.msra.mxu2 %v4993_v32  ;;  %v5380_v32 = vld [vmem:[#allocation11 + $0x308] sm:$0xf] }
  0xc5   :  { %v5381_v44 = vor.u32 %v6895_v36, %v5380_v32  ;;  %v5348_v0 = vld [vmem:[#allocation11 + $0x2c8] sm:$0xf]  ;;  %v5062_v32 = vld [vmem:[#allocation11 + $0xa8] sm:$0xf0] }
  0xc6   :  { %1111 = vmatpush.bf16.msra.mxu0 %v4989_v21  ;;  %v5161_v21 = vor.u32 %v6835_v16, %v5158_v17  ;;  %v5060_v16 = vld [vmem:[#allocation11 + $0x88] sm:$0xf]  ;;  %v5318_v36 = vld [vmem:[#allocation11 + $0x2a8] sm:$0xf0] }
  0xc7   :  { %1130 = vmatpush.bf16.msra.mxu1 %v5245_v29 }
  0xc8   :  { %1168 = vmatpush.bf16.msra.mxu3 %v5249_v34  ;;  %1218 = vmatpush.bf16.msrb.mxu2 %v5225_v50  ;;  %v5382_v50 = vld [vmem:[#allocation11 + $0x328] sm:$0xf0] }
  0xca   :  { %1180 = vmatpush.bf16.msrb.mxu0 %v5221_v43 }
  0xcb   :  { %1199 = vmatpush.bf16.msrb.mxu1 %v5477_v49  ;;  %v5129_v49 = vor.u32 %v6827_v41, %v5126_v45  ;;  %v5028_v41 = vld [vmem:[#allocation11 + $0x48] sm:$0xf] }
  0xcc   :  { %1237 = vmatpush.bf16.msrb.mxu3 %v5481_v55  ;;  %1219 = vmatpush.bf16.msrb.mxu2 %v5193_v3  ;;  %v7795_v55 = vperm.slane %v197_v33, 0  ;;  %v7806_v3 = vperm.slane %v198_v51, 0  ;;  %v5284_v45 = vld [vmem:[#allocation11 + $0x248] sm:$0xf] }
  0xce   :  { %1181 = vmatpush.bf16.msrb.mxu0 %v5189_v61 }
  0xcf   :  { %1200 = vmatpush.bf16.msrb.mxu1 %v5445_v62  ;;  %v5092_v62 = vld [vmem:[#allocation11 + $0xc8] sm:$0xf] }
  0xd0   :  { %1238 = vmatpush.bf16.msrb.mxu3 %v5449_v10  ;;  %1220 = vmatpush.bf16.msrb.mxu2 %v5161_v21  ;;  %v5093_v5 = vor.u32 %v6823_v63, %v5092_v62  ;;  %v5094_v10 = vld [vmem:[#allocation11 + $0xe8] sm:$0xf0]  ;;  %v4996_v63 = vld [vmem:[#allocation11 + $0x8] sm:$0xf] }
  0xd1   :  { %v5286_v62 = vld [vmem:[#allocation11 + $0x268] sm:$0xf0] }
  0xd4   :  { %1239 = vmatpush.bf16.msrb.mxu3 %v5417_v30  ;;  %1221 = vmatpush.bf16.msrb.mxu2 %v5129_v49  ;;  %v6879_v30 = vld [vmem:[#allocation11 + $0x2a4] sm:$0xf0] }
 0x11f   :  { %v246_v7 = vpop.xlane.xlu0 %245 }
 0x120   :  { %v240_v12 = vpop.xlane.xlu2 %239  ;;  %v252_v13 = vmul.f32 %v246_v7, %v7720_v18  ;;  %v5156_v7 = vld [vmem:[#allocation11 + $0x148] sm:$0xf] }
 0x121   :  { %v250_v15 = vmul.f32 %v240_v12, %v7720_v18  ;;  %v6903_v12 = vld [vmem:[#allocation11 + $0x364] sm:$0xf0]  ;;  %v5157_v14 = vor.u32 %v6839_v8, %v5156_v7  ;;  %v6819_v7 = vld [vmem:[#allocation11 + $0xcc] sm:$0xf]  ;;  %v7811_v8 = vperm.slane %v198_v51, 1 }
 0x122   :  { %v7760_v20 = vadd.f32 1e-05, %v252_v13 }
 0x123   :  { %v7762_v28 = vadd.f32 1e-05, %v250_v15  ;;  %v5413_v15 = vor.u32 %v6903_v12, %v5412_v11  ;;  %1182 = vmatpush.bf16.msrb.mxu0 %v5157_v14  ;;  %v6883_v11 = vld [vmem:[#allocation11 + $0x2cc] sm:$0xf]  ;;  %v5097_v14 = vor.u32 %v6819_v7, %v5094_v10 }
 0x124   :  { %7263 = vrsqrt.f32 %v7760_v20  ;;  %vm284_vm7 = vweird.f32 %v7760_v20  ;;  %v6795_v7 = vld [vmem:[#allocation11 + $0xc] sm:$0xf] }
 0x125   :  { %7265 = vrsqrt.f32 %v7762_v28  ;;  %1201 = vmatpush.bf16.msrb.mxu1 %v5413_v15  ;;  %vm264_vm2 = vweird.f32 %v7762_v28  ;;  %v5350_v15 = vld [vmem:[#allocation11 + $0x2e8] sm:$0xf0]  ;;  %1222 = vmatpush.bf16.msrb.mxu2 %v5097_v14 }
 0x126   :  { %v5254_v14 = vld [vmem:[#allocation11 + $0x228] sm:$0xf0] }
 0x127   :  { %v249_v42 = vpop.xlane.xlu1 %248  ;;  %1183 = vmatpush.bf16.msrb.mxu0 %v5125_v35  ;;  %v6875_v35 = vld [vmem:[#allocation11 + $0x28c] sm:$0xf] }
 0x128   :  { %v253_v47 = vmul.f32 %v249_v42, %v7720_v18  ;;  %v243_v48 = vpop.xlane.xlu2 %242 }
 0x129   :  { %v251_v54 = vmul.f32 %v243_v48, %v7720_v18  ;;  %1202 = vmatpush.bf16.msrb.mxu1 %v5381_v44  ;;  %v6807_v44 = vld [vmem:[#allocation11 + $0x64] sm:$0xf0] }
 0x12a   :  { %v7768_v59 = vpop.eup %7263  ;;  %v7770_v60 = vadd.f32 1e-05, %v253_v47  ;;  %v5029_v51 = vor.u32 %v6807_v44, %v5028_v41  ;;  %v6848_v44 = vld [vmem:[#allocation11 + $0x1ac] sm:$0xf0] }
 0x12b   :  { %v7772_v1 = vpop.eup %7265  ;;  %v7774_v2 = vadd.f32 1e-05, %v251_v54  ;;  %v279_v9 = vmul.f32 %v7768_v59, %v7760_v20  ;;  %v5385_v54 = vor.u32 %v6891_v46, %v5382_v50  ;;  %1184 = vmatpush.bf16.msrb.mxu0 %v5093_v5  ;;  %v6871_v46 = vld [vmem:[#allocation11 + $0x264] sm:$0xf0]  ;;  %vm285_vm10 = vweird.f32 %v7768_v59 }
 0x12c   :  { %v259_v6 = vmul.f32 %v7772_v1, %v7762_v28  ;;  %7267 = vrsqrt.f32 %v7770_v60  ;;  %vm265_vm1 = vweird.f32 %v7772_v1  ;;  %vm294_vm8 = vweird.f32 %v7770_v60  ;;  %v6863_v5 = vld [vmem:[#allocation11 + $0x224] sm:$0xf0]  ;;  %vm286_vm12 = vmor %vm284_vm7, %vm285_vm10 }
 0x12d   :  { %7269 = vrsqrt.f32 %v7774_v2  ;;  %v280_v34 = vmul.f32 %v7768_v59, %v279_v9  ;;  %vm266_vm3 = vmor %vm264_vm2, %vm265_vm1  ;;  %1240 = vmatpush.bf16.msrb.mxu3 %v5385_v54  ;;  %vm274_vm5 = vweird.f32 %v7774_v2  ;;  %v6867_v54 = vld [vmem:[#allocation11 + $0x24c] sm:$0xf] }
 0x12e   :  { %v260_v13 = vmul.f32 %v7772_v1, %v259_v6  ;;  %v6887_v6 = vld [vmem:[#allocation11 + $0x2e4] sm:$0xf0] }
 0x12f   :  { %v7801_v57 = vmul.f32 0.5, %v280_v34  ;;  %v5349_v9 = vor.u32 %v6887_v6, %v5348_v0  ;;  %v5065_v34 = vor.u32 %v6811_v31, %v5062_v32  ;;  %v6799_v0 = vld [vmem:[#allocation11 + $0x24] sm:$0xf0]  ;;  %v6920_v31 = vld [vmem:[#allocation11 + $0x3ec] sm:$0xf0] }
 0x130   :  { %v261_v29 = vmul.f32 0.5, %v260_v13  ;;  %v4997_v6 = vor.u32 %v6799_v0, %v4996_v63  ;;  %v6852_v32 = vld [vmem:[#allocation11 + $0x1d4] sm:$0xf] }
 0x131   :  { %v282_v13 = vsub.f32 1.5, %v7801_v57  ;;  %1203 = vmatpush.bf16.msrb.mxu1 %v5349_v9  ;;  %1223 = vmatpush.bf16.msrb.mxu2 %v5065_v34  ;;  %v6916_v34 = vld [vmem:[#allocation11 + $0x3d4] sm:$0xf] }
 0x132   :  { %v7784_v42 = vpop.eup %7267  ;;  %v262_v43 = vsub.f32 1.5, %v261_v29  ;;  %v5316_v29 = vld [vmem:[#allocation11 + $0x288] sm:$0xf]  ;;  %v6836_v63 = vld [vmem:[#allocation11 + $0x154] sm:$0xf] }
 0x133   :  { %v7787_v47 = vpop.eup %7269  ;;  %v289_v48 = vmul.f32 %v7784_v42, %v7770_v60  ;;  %v5317_v33 = vor.u32 %v6879_v30, %v5316_v29  ;;  %vm295_vm9 = vweird.f32 %v7784_v42  ;;  %v6856_v29 = vld [vmem:[#allocation11 + $0x1ec] sm:$0xf0] }
 0x134   :  { %v263_v52 = vmul.f32 %v7772_v1, %v262_v43  ;;  %v269_v53 = vmul.f32 %v7787_v47, %v7774_v2  ;;  %vm275_vm4 = vweird.f32 %v7787_v47  ;;  %v5061_v2 = vor.u32 %v6815_v27, %v5060_v16  ;;  %vm296_vm11 = vmor %vm294_vm8, %vm295_vm9  ;;  %v5228_v27 = vld [vmem:[#allocation11 + $0x1d0] sm:$0xf] }
 0x135   :  { %v290_v58 = vmul.f32 %v7784_v42, %v289_v48  ;;  %vm7820_vm6 = vmor %vm274_vm5, %vm275_vm4  ;;  %v5321_v43 = vor.u32 %v6875_v35, %v5318_v36  ;;  %1204 = vmatpush.bf16.msrb.mxu1 %v5317_v33  ;;  %v5229_v20 = vor.u32 %v6856_v29, %v5228_v27  ;;  %v5486_v35 = vld [vmem:[#allocation11 + $0x3f0] sm:$0xf0]  ;;  %v5196_v36 = vld [vmem:[#allocation11 + $0x190] sm:$0xf] }
 0x136   :  { %v267_v61 = vsel %vm266_vm3, %v7772_v1, %v263_v52  ;;  %v270_v28 = vmul.f32 %v7787_v47, %v269_v53  ;;  %1185 = vmatpush.bf16.msrb.mxu0 %v5061_v2  ;;  %v6803_v52 = vld [vmem:[#allocation11 + $0x4c] sm:$0xf]  ;;  %v5484_v2 = vld [vmem:[#allocation11 + $0x3d0] sm:$0xf] }
 0x137   :  { %v7808_v4 = vmul.f32 0.5, %v290_v58  ;;  %v298_v12 = vmul.f32 %v267_v61, %v7728_v25  ;;  %v299_v17 = vmul.f32 %v267_v61, %v7730_v26  ;;  %v5353_v25 = vor.u32 %v6883_v11, %v5350_v15  ;;  %v5030_v53 = vld [vmem:[#allocation11 + $0x68] sm:$0xf0] }
 0x138   :  { %v271_v1 = vmul.f32 0.5, %v270_v28  ;;  %v5285_v61 = vor.u32 %v6871_v46, %v5284_v45  ;;  %v5033_v28 = vor.u32 %v6803_v52, %v5030_v53  ;;  %v4998_v11 = vld [vmem:[#allocation11 + $0x28] sm:$0xf0]  ;;  %v5485_v33 = vor.u32 %v6920_v31, %v5484_v2  ;;  %v5452_v45 = vld [vmem:[#allocation11 + $0x390] sm:$0xf] }
 0x139   :  { %v292_v19 = vsub.f32 1.5, %v7808_v4  ;;  %1241 = vmatpush.bf16.msrb.mxu3 %v5353_v25  ;;  %v311_v48 = vmul.f32 %v7795_v55, %v298_v12  ;;  %v312_v49 = vmul.f32 %v7797_v56, %v299_v17  ;;  %v5252_v4 = vld [vmem:[#allocation11 + $0x208] sm:$0xf]  ;;  %v6859_v12 = vld [vmem:[#allocation11 + $0x20c] sm:$0xf]  ;;  %v5001_v22 = vor.u32 %v6795_v7, %v4998_v11 }
 0x13a   :  { %v272_v21 = vsub.f32 1.5, %v271_v1  ;;  %1186 = vmatpush.bf16.msrb.mxu0 %v5029_v51  ;;  %v283_v1 = vmul.f32 %v7768_v59, %v282_v13  ;;  %1205 = vmatpush.bf16.msrb.mxu1 %v5285_v61  ;;  %v5253_v10 = vor.u32 %v6863_v5, %v5252_v4  ;;  %v5257_v25 = vor.u32 %v6859_v12, %v5254_v14  ;;  %v6912_v46 = vld [vmem:[#allocation11 + $0x3ac] sm:$0xf0]  ;;  %v6844_v51 = vld [vmem:[#allocation11 + $0x194] sm:$0xf] }
 0x13b   :  { %v293_v9 = vmul.f32 %v7784_v42, %v292_v19  ;;  %v324_v15 = vadd.f32 %v7806_v3, %v311_v48  ;;  %v325_v16 = vadd.f32 %v7811_v8, %v312_v49  ;;  %1224 = vmatpush.bf16.msrb.mxu2 %v5033_v28  ;;  %v5197_v49 = vor.u32 %v6848_v44, %v5196_v36  ;;  %v5198_v52 = vld [vmem:[#allocation11 + $0x1b0] sm:$0xf0]  ;;  %v5420_v28 = vld [vmem:[#allocation11 + $0x350] sm:$0xf] }
 0x13c   :  { %v273_v26 = vmul.f32 %v7787_v47, %v272_v21  ;;  %v287_v30 = vsel %vm286_vm12, %v7768_v59, %v283_v1  ;;  %v6908_v53 = vld [vmem:[#allocation11 + $0x394] sm:$0xf]  ;;  %v5388_v11 = vld [vmem:[#allocation11 + $0x310] sm:$0xf] }
 0x13d   :  { %1242 = vmatpush.bf16.msrb.mxu3 %v5321_v43  ;;  %v297_v60 = vsel %vm296_vm11, %v7784_v42, %v293_v9  ;;  %v5489_v43 = vor.u32 %v6916_v34, %v5486_v35  ;;  %v302_v48 = vmul.f32 %v287_v30, %v7724_v23  ;;  %v6900_v4 = vld [vmem:[#allocation11 + $0x354] sm:$0xf]  ;;  %v6896_v12 = vld [vmem:[#allocation11 + $0x32c] sm:$0xf0] }
 0x13e   :  { %v277_v50 = vsel %vm7820_vm6, %v7787_v47, %v273_v26  ;;  %v5289_v47 = vor.u32 %v6867_v54, %v5286_v62  ;;  %1187 = vmatpush.bf16.msrb.mxu0 %v4997_v6  ;;  %1206 = vmatpush.bf16.msrb.mxu1 %v5253_v10  ;;  %v5230_v26 = vld [vmem:[#allocation11 + $0x1f0] sm:$0xf0]  ;;  %v304_v41 = vmul.f32 %v297_v60, %v7742_v37  ;;  %v6904_v62 = vld [vmem:[#allocation11 + $0x36c] sm:$0xf0] }
 0x13f   :  { %v300_v57 = vmul.f32 %v277_v50, %v7746_v39  ;;  %v301_v58 = vmul.f32 %v277_v50, %v7748_v40  ;;  %v5233_v42 = vor.u32 %v6852_v32, %v5230_v26  ;;  %v305_v59 = vmul.f32 %v297_v60, %v7744_v38  ;;  %1225 = vmatpush.bf16.msrb.mxu2 %v5001_v22  ;;  %v5454_v38 = vld [vmem:[#allocation11 + $0x3b0] sm:$0xf0]  ;;  %v5132_v6 = vld [vmem:[#allocation11 + $0x110] sm:$0xf] }
 0x140   :  { %v5453_v50 = vor.u32 %v6912_v46, %v5452_v45  ;;  %v303_v54 = vmul.f32 %v287_v30, %v7726_v24  ;;  %v5201_v37 = vor.u32 %v6844_v51, %v5198_v52  ;;  %v5457_v61 = vor.u32 %v6908_v53, %v5454_v38  ;;  %v5422_v5 = vld [vmem:[#allocation11 + $0x370] sm:$0xf0]  ;;  %v6832_v10 = vld [vmem:[#allocation11 + $0x12c] sm:$0xf0] }
 0x141   :  { %v313_v39 = vmul.f32 %v7795_v55, %v300_v57  ;;  %v314_v40 = vmul.f32 %v7797_v56, %v301_v58  ;;  %1243 = vmatpush.bf16.msrb.mxu3 %v5289_v47  ;;  %v5164_v57 = vld [vmem:[#allocation11 + $0x150] sm:$0xf]  ;;  %v317_v23 = vmul.f32 %v7795_v55, %v304_v41  ;;  %v318_v0 = vmul.f32 %v7797_v56, %v305_v59  ;;  %v5166_v47 = vld [vmem:[#allocation11 + $0x170] sm:$0xf0] }
 0x142   :  { %v6840_v58 = vld [vmem:[#allocation11 + $0x16c] sm:$0xf0]  ;;  %v316_v7 = vmul.f32 %v7797_v56, %v303_v54  ;;  %v5169_v1 = vor.u32 %v6836_v63, %v5166_v47  ;;  %v5425_v9 = vor.u32 %v6900_v4, %v5422_v5  ;;  %v6892_v22 = vld [vmem:[#allocation11 + $0x314] sm:$0xf] }
 0x143   :  { %v326_v17 = vadd.f32 %v7806_v3, %v313_v39  ;;  %v327_v13 = vadd.f32 %v7811_v8, %v314_v40  ;;  %v315_v39 = vmul.f32 %v7795_v55, %v302_v48  ;;  %v5165_v24 = vor.u32 %v6840_v58, %v5164_v57  ;;  %v6824_v31 = vld [vmem:[#allocation11 + $0xec] sm:$0xf0]  ;;  %v6884_v34 = vld [vmem:[#allocation11 + $0x2d4] sm:$0xf] }
 0x144   :  { %v5421_v40 = vor.u32 %v6904_v62, %v5420_v28  ;;  %v330_v14 = vadd.f32 %v7806_v3, %v317_v23  ;;  %v5133_v55 = vor.u32 %v6832_v10, %v5132_v6  ;;  %v329_v60 = vadd.f32 %v7811_v8, %v316_v7  ;;  %v5356_v32 = vld [vmem:[#allocation11 + $0x2d0] sm:$0xf]  ;;  %v5358_v35 = vld [vmem:[#allocation11 + $0x2f0] sm:$0xf0] }
 0x145   :  { %v7852_v19 = vpack.c.bf16 %v326_v17, %v324_v15  ;;  %v7854_v21 = vpack.c.bf16 %v327_v13, %v325_v16  ;;  %1244 = vmatpush.bf16.msrb.mxu3 %v5257_v25  ;;  %v331_v15 = vadd.f32 %v7811_v8, %v318_v0  ;;  %v6828_v16 = vld [vmem:[#allocation11 + $0x114] sm:$0xf]  ;;  %v5389_v17 = vor.u32 %v6896_v12, %v5388_v11  ;;  %v6888_v26 = vld [vmem:[#allocation11 + $0x2ec] sm:$0xf0] }
 0x146   :  { %v5134_v13 = vld [vmem:[#allocation11 + $0x130] sm:$0xf0]  ;;  %v328_v56 = vadd.f32 %v7806_v3, %v315_v39  ;;  %v5068_v36 = vld [vmem:[#allocation11 + $0x90] sm:$0xf]  ;;  %v5361_v59 = vor.u32 %v6884_v34, %v5358_v35  ;;  %v5206_v34 = vld [vmem:[#allocation11 + $0x1b8] sm:$0xf0] }
 0x147   :  { %1112 = vmatmul.bf16.vlgmr.msra.gmra.mxu0 %v7852_v19  ;;  %1131 = vmatmul.bf16.vlgmr.msra.gmra.mxu1 %v7854_v21  ;;  %v5390_v25 = vld [vmem:[#allocation11 + $0x330] sm:$0xf0]  ;;  %v7876_v29 = vpack.c.bf16 %v331_v15, %v329_v60  ;;  %v5137_v2 = vor.u32 %v6828_v16, %v5134_v13  ;;  %v5324_v44 = vld [vmem:[#allocation11 + $0x290] sm:$0xf]  ;;  %v5236_v15 = vld [vmem:[#allocation11 + $0x1d8] sm:$0xf] }
 0x148   :  { %1150 = vmatmul.bf16.vlgmr.msra.gmra.mxu2 %v7852_v19  ;;  %1169 = vmatmul.bf16.vlgmr.msra.gmra.mxu3 %v7854_v21  ;;  %v7874_v27 = vpack.c.bf16 %v330_v14, %v328_v56  ;;  %v5393_v30 = vor.u32 %v6892_v22, %v5390_v25  ;;  %v6820_v8 = vld [vmem:[#allocation11 + $0xd4] sm:$0xf]  ;;  %v6880_v45 = vld [vmem:[#allocation11 + $0x2ac] sm:$0xf0]  ;;  %v6857_v16 = vld [vmem:[#allocation11 + $0x1f4] sm:$0xf0] }
 0x149   :  { %1256 = vmatpush.bf16.msra.mxu0 %v5229_v20  ;;  %1275 = vmatpush.bf16.msra.mxu1 %v5485_v33  ;;  %v5100_v20 = vld [vmem:[#allocation11 + $0xd0] sm:$0xf]  ;;  %v5102_v33 = vld [vmem:[#allocation11 + $0xf0] sm:$0xf0]  ;;  %v5325_v48 = vor.u32 %v6880_v45, %v5324_v44  ;;  %v6921_v13 = vld [vmem:[#allocation11 + $0x3f4] sm:$0xf0] }
 0x14a   :  { %1294 = vmatpush.bf16.msra.mxu2 %v5233_v42  ;;  %1313 = vmatpush.bf16.msra.mxu3 %v5489_v43  ;;  %v5101_v3 = vor.u32 %v6824_v31, %v5100_v20  ;;  %v5357_v42 = vor.u32 %v6888_v26, %v5356_v32  ;;  %v5105_v41 = vor.u32 %v6820_v8, %v5102_v33  ;;  %v6816_v43 = vld [vmem:[#allocation11 + $0xac] sm:$0xf0]  ;;  %v6876_v51 = vld [vmem:[#allocation11 + $0x294] sm:$0xf]  ;;  %v6853_v22 = vld [vmem:[#allocation11 + $0x1dc] sm:$0xf] }
 0x14b   :  { %v5069_v46 = vor.u32 %v6816_v43, %v5068_v36  ;;  %v5326_v52 = vld [vmem:[#allocation11 + $0x2b0] sm:$0xf0]  ;;  %v5036_v53 = vld [vmem:[#allocation11 + $0x50] sm:$0xf]  ;;  %v5238_v25 = vld [vmem:[#allocation11 + $0x1f8] sm:$0xf0] }
 0x14c   :  { %v6808_v54 = vld [vmem:[#allocation11 + $0x6c] sm:$0xf0]  ;;  %v5329_v58 = vor.u32 %v6876_v51, %v5326_v52  ;;  %v5038_v28 = vld [vmem:[#allocation11 + $0x70] sm:$0xf0]  ;;  %v5241_v60 = vor.u32 %v6853_v22, %v5238_v25  ;;  %v5204_v20 = vld [vmem:[#allocation11 + $0x198] sm:$0xf] }
 0x14d   :  { %1257 = vmatpush.bf16.msra.mxu0 %v5197_v49  ;;  %1276 = vmatpush.bf16.msra.mxu1 %v5453_v50  ;;  %v6812_v49 = vld [vmem:[#allocation11 + $0x94] sm:$0xf]  ;;  %v6872_v38 = vld [vmem:[#allocation11 + $0x26c] sm:$0xf0]  ;;  %v5037_v62 = vor.u32 %v6808_v54, %v5036_v53  ;;  %v6849_v32 = vld [vmem:[#allocation11 + $0x1b4] sm:$0xf0] }
 0x14e   :  { %1295 = vmatpush.bf16.msra.mxu2 %v5201_v37  ;;  %1314 = vmatpush.bf16.msra.mxu3 %v5457_v61  ;;  %v5070_v50 = vld [vmem:[#allocation11 + $0xb0] sm:$0xf0]  ;;  %v5292_v37 = vld [vmem:[#allocation11 + $0x250] sm:$0xf]  ;;  %v6913_v26 = vld [vmem:[#allocation11 + $0x3b4] sm:$0xf0]  ;;  %v5205_v8 = vor.u32 %v6849_v32, %v5204_v20 }
 0x14f   :  { %v5073_v57 = vor.u32 %v6812_v49, %v5070_v50  ;;  %v6804_v61 = vld [vmem:[#allocation11 + $0x54] sm:$0xf]  ;;  %v5293_v63 = vor.u32 %v6872_v38, %v5292_v37  ;;  %v5004_v47 = vld [vmem:[#allocation11 + $0x10] sm:$0xf]  ;;  %v6909_v35 = vld [vmem:[#allocation11 + $0x39c] sm:$0xf] }
 0x150   :  { %v6868_v23 = vld [vmem:[#allocation11 + $0x254] sm:$0xf]  ;;  %v6800_v4 = vld [vmem:[#allocation11 + $0x2c] sm:$0xf0]  ;;  %v6841_v43 = vld [vmem:[#allocation11 + $0x174] sm:$0xf0] }
 0x151   :  { %1258 = vmatpush.bf16.msra.mxu0 %v5165_v24  ;;  %1277 = vmatpush.bf16.msra.mxu1 %v5421_v40  ;;  %v5294_v0 = vld [vmem:[#allocation11 + $0x270] sm:$0xf0]  ;;  %v5260_v5 = vld [vmem:[#allocation11 + $0x210] sm:$0xf]  ;;  %v5041_v24 = vor.u32 %v6804_v61, %v5038_v28  ;;  %v5005_v7 = vor.u32 %v6800_v4, %v5004_v47  ;;  %v5428_v45 = vld [vmem:[#allocation11 + $0x358] sm:$0xf] }
 0x152   :  { %1296 = vmatpush.bf16.msra.mxu2 %v5169_v1  ;;  %1315 = vmatpush.bf16.msra.mxu3 %v5425_v9  ;;  %v6864_v39 = vld [vmem:[#allocation11 + $0x22c] sm:$0xf0]  ;;  %v5297_v40 = vor.u32 %v6868_v23, %v5294_v0  ;;  %v6796_v6 = vld [vmem:[#allocation11 + $0x14] sm:$0xf]  ;;  %v5174_v49 = vld [vmem:[#allocation11 + $0x178] sm:$0xf0] }
 0x153   :  { %v5261_v1 = vor.u32 %v6864_v39, %v5260_v5  ;;  %v5006_v9 = vld [vmem:[#allocation11 + $0x30] sm:$0xf0]  ;;  %v6901_v50 = vld [vmem:[#allocation11 + $0x35c] sm:$0xf]  ;;  %v5140_v54 = vld [vmem:[#allocation11 + $0x118] sm:$0xf] }
 0x154   :  { %v6860_v10 = vld [vmem:[#allocation11 + $0x214] sm:$0xf]  ;;  %v5009_v12 = vor.u32 %v6796_v6, %v5006_v9  ;;  %v5430_v51 = vld [vmem:[#allocation11 + $0x378] sm:$0xf0]  ;;  %v6897_v61 = vld [vmem:[#allocation11 + $0x334] sm:$0xf0] }
 0x155   :  { %1259 = vmatpush.bf16.msra.mxu0 %v5133_v55  ;;  %1278 = vmatpush.bf16.msra.mxu1 %v5389_v17  ;;  %v5262_v11 = vld [vmem:[#allocation11 + $0x230] sm:$0xf0]  ;;  %v5492_v55 = vld [vmem:[#allocation11 + $0x3d8] sm:$0xf]  ;;  %v5237_v17 = vor.u32 %v6857_v16, %v5236_v15  ;;  %v5433_v38 = vor.u32 %v6901_v50, %v5430_v51  ;;  %v6829_v28 = vld [vmem:[#allocation11 + $0x11c] sm:$0xf] }
 0x156   :  { %1297 = vmatpush.bf16.msra.mxu2 %v5137_v2  ;;  %1316 = vmatpush.bf16.msra.mxu3 %v5393_v30  ;;  %v5265_v14 = vor.u32 %v6860_v10, %v5262_v11  ;;  %v5493_v56 = vor.u32 %v6921_v13, %v5492_v55  ;;  %v6917_v2 = vld [vmem:[#allocation11 + $0x3dc] sm:$0xf]  ;;  %v5108_v39 = vld [vmem:[#allocation11 + $0xd8] sm:$0xf] }
 0x157   :  { %1117 = vmatmul.bf16.gmra.mxu0 %v7874_v27  ;;  %1136 = vmatmul.bf16.gmra.mxu1 %v7876_v29  ;;  %v5494_v30 = vld [vmem:[#allocation11 + $0x3f8] sm:$0xf0]  ;;  %v6817_v55 = vld [vmem:[#allocation11 + $0xb4] sm:$0xf0] }
 0x158   :  { %1155 = vmatmul.bf16.gmra.mxu2 %v7874_v27  ;;  %1174 = vmatmul.bf16.gmra.mxu3 %v7876_v29  ;;  %v5497_v31 = vor.u32 %v6917_v2, %v5494_v30  ;;  %v5142_v23 = vld [vmem:[#allocation11 + $0x138] sm:$0xf0]  ;;  %v6881_v13 = vld [vmem:[#allocation11 + $0x2b4] sm:$0xf0] }
 0x159   :  { %1260 = vmatpush.bf16.msra.mxu0 %v5101_v3  ;;  %1279 = vmatpush.bf16.msra.mxu1 %v5357_v42  ;;  %v5460_v3 = vld [vmem:[#allocation11 + $0x398] sm:$0xf]  ;;  %v6845_v42 = vld [vmem:[#allocation11 + $0x19c] sm:$0xf]  ;;  %v5145_v4 = vor.u32 %v6829_v28, %v5142_v23 }
 0x15a   :  { %1298 = vmatpush.bf16.msra.mxu2 %v5105_v41  ;;  %1317 = vmatpush.bf16.msra.mxu3 %v5361_v59  ;;  %v5461_v33 = vor.u32 %v6913_v26, %v5460_v3  ;;  %v5209_v36 = vor.u32 %v6845_v42, %v5206_v34  ;;  %v5462_v41 = vld [vmem:[#allocation11 + $0x3b8] sm:$0xf0]  ;;  %v5172_v59 = vld [vmem:[#allocation11 + $0x158] sm:$0xf] }
 0x15b   :  { %v5465_v44 = vor.u32 %v6909_v35, %v5462_v41  ;;  %v5173_v52 = vor.u32 %v6841_v43, %v5172_v59  ;;  %v6893_v0 = vld [vmem:[#allocation11 + $0x31c] sm:$0xf]  ;;  %v5044_v20 = vld [vmem:[#allocation11 + $0x58] sm:$0xf] }
 0x15c   :  { %v5398_v47 = vld [vmem:[#allocation11 + $0x338] sm:$0xf0]  ;;  %v5300_v32 = vld [vmem:[#allocation11 + $0x258] sm:$0xf] }
 0x15d   :  { %1261 = vmatpush.bf16.msra.mxu0 %v5069_v46  ;;  %1280 = vmatpush.bf16.msra.mxu1 %v5325_v48  ;;  %v6905_v46 = vld [vmem:[#allocation11 + $0x374] sm:$0xf0]  ;;  %v6837_v48 = vld [vmem:[#allocation11 + $0x15c] sm:$0xf]  ;;  %v5401_v5 = vor.u32 %v6893_v0, %v5398_v47 }
 0x15e   :  { %1299 = vmatpush.bf16.msra.mxu2 %v5073_v57  ;;  %1318 = vmatpush.bf16.msra.mxu3 %v5329_v58  ;;  %v5429_v53 = vor.u32 %v6905_v46, %v5428_v45  ;;  %v5177_v37 = vor.u32 %v6837_v48, %v5174_v49  ;;  %v6833_v57 = vld [vmem:[#allocation11 + $0x134] sm:$0xf0]  ;;  %v5110_v9 = vld [vmem:[#allocation11 + $0xf8] sm:$0xf0] }
 0x15f   :  { %v5396_v58 = vld [vmem:[#allocation11 + $0x318] sm:$0xf]  ;;  %v6885_v11 = vld [vmem:[#allocation11 + $0x2dc] sm:$0xf] }
 0x160   :  { %v6877_v2 = vld [vmem:[#allocation11 + $0x29c] sm:$0xf]  ;;  %v6873_v3 = vld [vmem:[#allocation11 + $0x274] sm:$0xf0] }
 0x161   :  { %1262 = vmatpush.bf16.msra.mxu0 %v5037_v62  ;;  %1281 = vmatpush.bf16.msra.mxu1 %v5293_v63  ;;  %v5141_v62 = vor.u32 %v6833_v57, %v5140_v54  ;;  %v5397_v63 = vor.u32 %v6897_v61, %v5396_v58  ;;  %v5334_v30 = vld [vmem:[#allocation11 + $0x2b8] sm:$0xf0]  ;;  %v5301_v35 = vor.u32 %v6873_v3, %v5300_v32  ;;  %v5012_v59 = vld [vmem:[#allocation11 + $0x18] sm:$0xf] }
 0x162   :  { %1300 = vmatpush.bf16.msra.mxu2 %v5041_v24  ;;  %1319 = vmatpush.bf16.msra.mxu3 %v5297_v40  ;;  %v6825_v24 = vld [vmem:[#allocation11 + $0xf4] sm:$0xf0]  ;;  %v5046_v42 = vld [vmem:[#allocation11 + $0x78] sm:$0xf0] }
 0x163   :  { %v5364_v40 = vld [vmem:[#allocation11 + $0x2d8] sm:$0xf]  ;;  %v5109_v6 = vor.u32 %v6825_v24, %v5108_v39  ;;  %v5302_v41 = vld [vmem:[#allocation11 + $0x278] sm:$0xf0] }
 0x164   :  { %v6801_v43 = vld [vmem:[#allocation11 + $0x34] sm:$0xf0]  ;;  %v6797_v49 = vld [vmem:[#allocation11 + $0x1c] sm:$0xf] }
 0x165   :  { %1263 = vmatpush.bf16.msra.mxu0 %v5005_v7  ;;  %1282 = vmatpush.bf16.msra.mxu1 %v5261_v1  ;;  %v6889_v7 = vld [vmem:[#allocation11 + $0x2f4] sm:$0xf0]  ;;  %v6821_v1 = vld [vmem:[#allocation11 + $0xdc] sm:$0xf]  ;;  %v5013_v50 = vor.u32 %v6801_v43, %v5012_v59 }
 0x166   :  { %1301 = vmatpush.bf16.msra.mxu2 %v5009_v12  ;;  %1320 = vmatpush.bf16.msra.mxu3 %v5265_v14  ;;  %v5365_v10 = vor.u32 %v6889_v7, %v5364_v40  ;;  %v5366_v12 = vld [vmem:[#allocation11 + $0x2f8] sm:$0xf0]  ;;  %v5076_v14 = vld [vmem:[#allocation11 + $0x98] sm:$0xf]  ;;  %v5113_v15 = vor.u32 %v6821_v1, %v5110_v9 }
 0x167   :  { %1188 = vmatmul.bf16.vlgmr.msrb.gmra.mxu0 %v7852_v19  ;;  %1207 = vmatmul.bf16.vlgmr.msrb.gmra.mxu1 %v7854_v21  ;;  %v5369_v16 = vor.u32 %v6885_v11, %v5366_v12  ;;  %v5077_v22 = vor.u32 %v6817_v55, %v5076_v14  ;;  %v6865_v45 = vld [vmem:[#allocation11 + $0x234] sm:$0xf0]  ;;  %v5270_v54 = vld [vmem:[#allocation11 + $0x238] sm:$0xf0] }
 0x168   :  { %1226 = vmatmul.bf16.vlgmr.msrb.gmra.mxu2 %v7852_v19  ;;  %1245 = vmatmul.bf16.vlgmr.msrb.gmra.mxu3 %v7854_v21 }
 0x169   :  { %1332 = vmatpush.bf16.msrb.mxu0 %v5237_v17  ;;  %1351 = vmatpush.bf16.msrb.mxu1 %v5493_v56  ;;  %v5332_v17 = vld [vmem:[#allocation11 + $0x298] sm:$0xf]  ;;  %v6813_v56 = vld [vmem:[#allocation11 + $0x9c] sm:$0xf] }
 0x16a   :  { %1370 = vmatpush.bf16.msrb.mxu2 %v5241_v60  ;;  %1389 = vmatpush.bf16.msrb.mxu3 %v5497_v31  ;;  %v5333_v25 = vor.u32 %v6881_v13, %v5332_v17  ;;  %v5078_v60 = vld [vmem:[#allocation11 + $0xb8] sm:$0xf0]  ;;  %v6809_v31 = vld [vmem:[#allocation11 + $0x74] sm:$0xf0] }
 0x16b   :  { %v5081_v26 = vor.u32 %v6813_v56, %v5078_v60  ;;  %v5045_v34 = vor.u32 %v6809_v31, %v5044_v20 }
 0x16d   :  { %1333 = vmatpush.bf16.msrb.mxu0 %v5205_v8  ;;  %1352 = vmatpush.bf16.msrb.mxu1 %v5461_v33  ;;  %v5337_v8 = vor.u32 %v6877_v2, %v5334_v30  ;;  %v6805_v33 = vld [vmem:[#allocation11 + $0x5c] sm:$0xf] }
 0x16e   :  { %1371 = vmatpush.bf16.msrb.mxu2 %v5209_v36  ;;  %1390 = vmatpush.bf16.msrb.mxu3 %v5465_v44  ;;  %v6869_v36 = vld [vmem:[#allocation11 + $0x25c] sm:$0xf]  ;;  %v5268_v44 = vld [vmem:[#allocation11 + $0x218] sm:$0xf]  ;;  %v5049_v46 = vor.u32 %v6805_v33, %v5046_v42 }
 0x16f   :  { %v5305_v48 = vor.u32 %v6869_v36, %v5302_v41  ;;  %v5269_v51 = vor.u32 %v6865_v45, %v5268_v44 }
 0x171   :  { %1334 = vmatpush.bf16.msrb.mxu0 %v5173_v52  ;;  %1353 = vmatpush.bf16.msrb.mxu1 %v5429_v53  ;;  %v5014_v52 = vld [vmem:[#allocation11 + $0x38] sm:$0xf0] }
 0x172   :  { %1372 = vmatpush.bf16.msrb.mxu2 %v5177_v37  ;;  %1391 = vmatpush.bf16.msrb.mxu3 %v5433_v38  ;;  %v6861_v53 = vld [vmem:[#allocation11 + $0x21c] sm:$0xf]  ;;  %v5017_v37 = vor.u32 %v6797_v49, %v5014_v52 }
 0x173   :  { %v5273_v38 = vor.u32 %v6861_v53, %v5270_v54 }
 0x175   :  { %1335 = vmatpush.bf16.msrb.mxu0 %v5141_v62  ;;  %1354 = vmatpush.bf16.msrb.mxu1 %v5397_v63 }
 0x176   :  { %1373 = vmatpush.bf16.msrb.mxu2 %v5145_v4  ;;  %1392 = vmatpush.bf16.msrb.mxu3 %v5401_v5 }
 0x177   :  { %1193 = vmatmul.bf16.gmra.mxu0 %v7874_v27  ;;  %1212 = vmatmul.bf16.gmra.mxu1 %v7876_v29 }
 0x178   :  { %1231 = vmatmul.bf16.gmra.mxu2 %v7874_v27  ;;  %1250 = vmatmul.bf16.gmra.mxu3 %v7876_v29 }
 0x179   :  { %1336 = vmatpush.bf16.msrb.mxu0 %v5109_v6  ;;  %1355 = vmatpush.bf16.msrb.mxu1 %v5365_v10 }
 0x17a   :  { %1374 = vmatpush.bf16.msrb.mxu2 %v5113_v15  ;;  %1393 = vmatpush.bf16.msrb.mxu3 %v5369_v16 }
 0x17d   :  { %1337 = vmatpush.bf16.msrb.mxu0 %v5077_v22  ;;  %1356 = vmatpush.bf16.msrb.mxu1 %v5333_v25 }
 0x17e   :  { %1375 = vmatpush.bf16.msrb.mxu2 %v5081_v26  ;;  %1394 = vmatpush.bf16.msrb.mxu3 %v5337_v8 }
 0x181   :  { %1338 = vmatpush.bf16.msrb.mxu0 %v5045_v34  ;;  %1357 = vmatpush.bf16.msrb.mxu1 %v5301_v35 }
 0x182   :  { %1376 = vmatpush.bf16.msrb.mxu2 %v5049_v46  ;;  %1395 = vmatpush.bf16.msrb.mxu3 %v5305_v48 }
 0x185   :  { %1339 = vmatpush.bf16.msrb.mxu0 %v5013_v50  ;;  %1358 = vmatpush.bf16.msrb.mxu1 %v5269_v51 }
 0x186   :  { %1377 = vmatpush.bf16.msrb.mxu2 %v5017_v37  ;;  %1396 = vmatpush.bf16.msrb.mxu3 %v5273_v38 }
 0x187   :  { %1264 = vmatmul.bf16.vlgmr.msra.gmra.mxu0 %v7852_v19  ;;  %1283 = vmatmul.bf16.vlgmr.msra.gmra.mxu1 %v7854_v21 }
 0x188   :  { %1302 = vmatmul.bf16.vlgmr.msra.gmra.mxu2 %v7852_v19  ;;  %1321 = vmatmul.bf16.vlgmr.msra.gmra.mxu3 %v7854_v21 }
 0x197   :  { %1269 = vmatmul.bf16.gmra.mxu0 %v7874_v27  ;;  %1288 = vmatmul.bf16.gmra.mxu1 %v7876_v29 }
 0x198   :  { %1307 = vmatmul.bf16.gmra.mxu2 %v7874_v27  ;;  %1326 = vmatmul.bf16.gmra.mxu3 %v7876_v29 }
 0x1a7   :  { %1340 = vmatmul.bf16.vlgmr.msrb.gmra.mxu0 %v7852_v19  ;;  %1359 = vmatmul.bf16.vlgmr.msrb.gmra.mxu1 %v7854_v21 }
 0x1a8   :  { %1378 = vmatmul.bf16.vlgmr.msrb.gmra.mxu2 %v7852_v19  ;;  %1397 = vmatmul.bf16.vlgmr.msrb.gmra.mxu3 %v7854_v21 }
 0x1b7   :  { %1345 = vmatmul.bf16.gmra.mxu0 %v7874_v27  ;;  %1364 = vmatmul.bf16.gmra.mxu1 %v7876_v29 }
 0x1b8   :  { %1383 = vmatmul.bf16.gmra.mxu2 %v7874_v27  ;;  %1402 = vmatmul.bf16.gmra.mxu3 %v7876_v29 }
 0x1c4   :  { %v1113_v57 = vpop.f32.mrf.mxu0  ;;  %v1132_v58 = vpop.f32.mrf.mxu1 }
 0x1c5   :  { %v1133_v16 = vadd.f32 %v1132_v58, %v1113_v57 }
 0x1cb   :  { %v1151_v61 = vpop.f32.mrf.mxu2  ;;  %v1170_v28 = vpop.f32.mrf.mxu3 }
 0x1cc   :  { %v1115_v62 = vpop.f32.mrf.mxu0  ;;  %v1134_v63 = vpop.f32.mrf.mxu1  ;;  %v1171_v15 = vadd.f32 %v1170_v28, %v1151_v61 }
 0x1cd   :  { %v1135_v31 = vadd.f32 %v1134_v63, %v1115_v62 }
 0x1ce   :  { %v1408_v60 = vpack.c.bf16 %v1171_v15, %v1133_v16 }
 0x1d0   :  { %v1428_v50 = vrot.slane %v1408_v60, 4 }
 0x1d3   :  { %v1153_v23 = vpop.f32.mrf.mxu2  ;;  %v1172_v0 = vpop.f32.mrf.mxu3 }
 0x1d4   :  { %v1118_v47 = vpop.f32.mrf.mxu0  ;;  %v1137_v19 = vpop.f32.mrf.mxu1  ;;  %v1173_v20 = vadd.f32 %v1172_v0, %v1153_v23 }
 0x1d5   :  { %v1138_v59 = vadd.f32 %v1137_v19, %v1118_v47 }
 0x1d6   :  { %v1409_v34 = vpack.c.bf16 %v1173_v20, %v1135_v31 }
 0x1d8   :  { %v1429_v63 = vrot.slane %v1409_v34, 4 }
 0x1db   :  { %v1156_v4 = vpop.f32.mrf.mxu2  ;;  %v1175_v21 = vpop.f32.mrf.mxu3 }
 0x1dc   :  { %v1120_v5 = vpop.f32.mrf.mxu0  ;;  %v1139_v39 = vpop.f32.mrf.mxu1  ;;  %v1176_v41 = vadd.f32 %v1175_v21, %v1156_v4 }
 0x1dd   :  { %v1140_v37 = vadd.f32 %v1139_v39, %v1120_v5 }
 0x1de   :  { %v1410_v51 = vpack.c.bf16 %v1176_v41, %v1138_v59 }
 0x1e3   :  { %v1158_v24 = vpop.f32.mrf.mxu2  ;;  %v1177_v40 = vpop.f32.mrf.mxu3 }
 0x1e4   :  { %v1189_v6 = vpop.f32.mrf.mxu0  ;;  %v1208_v27 = vpop.f32.mrf.mxu1  ;;  %v1178_v54 = vadd.f32 %v1177_v40, %v1158_v24 }
 0x1e5   :  { %v1209_v1 = vadd.f32 %v1208_v27, %v1189_v6 }
 0x1e6   :  { %v1411_v23 = vpack.c.bf16 %v1178_v54, %v1140_v37 }
 0x1eb   :  { %v1227_v7 = vpop.f32.mrf.mxu2  ;;  %v1246_v29 = vpop.f32.mrf.mxu3 }
 0x1ec   :  { %v1247_v9 = vadd.f32 %v1246_v29, %v1227_v7  ;;  %v1191_v10 = vpop.f32.mrf.mxu0  ;;  %v1210_v11 = vpop.f32.mrf.mxu1 }
 0x1ed   :  { %v1211_v13 = vadd.f32 %v1210_v11, %v1191_v10 }
 0x1ee   :  { %v1412_v12 = vpack.c.bf16 %v1247_v9, %v1209_v1  ;;  %v1430_v1 = vrot.slane %v1410_v51, 4 }
 0x1f0   :  { %v1440_v14 = vrot.slane %v1412_v12, 4  ;;  %1461 = vmatpush.bf16.xpose.msra.mxu0 %v1412_v12 }
 0x1f3   :  { %v1229_v55 = vpop.f32.mrf.mxu2  ;;  %v1248_v17 = vpop.f32.mrf.mxu3 }
 0x1f4   :  { %v1249_v22 = vadd.f32 %v1248_v17, %v1229_v55  ;;  %v1194_v25 = vpop.f32.mrf.mxu0  ;;  %v1213_v56 = vpop.f32.mrf.mxu1 }
 0x1f5   :  { %v1214_v26 = vadd.f32 %v1213_v56, %v1194_v25 }
 0x1f6   :  { %v1413_v2 = vpack.c.bf16 %v1249_v22, %v1211_v13 }
 0x1f7   :  { %1462 = vmatmul.bf16.vlgmr.msra.gmra.mxu0 %v1408_v60  ;;  %v1431_v60 = vrot.slane %v1411_v23, 4 }
 0x1f8   :  { %1513 = vmatpush.bf16.xpose.msrb.mxu0 %v1440_v14  ;;  %v1441_v30 = vrot.slane %v1413_v2, 4  ;;  %1474 = vmatpush.bf16.xpose.msra.mxu1 %v1413_v2 }
 0x1fb   :  { %v1232_v32 = vpop.f32.mrf.mxu2  ;;  %v1251_v3 = vpop.f32.mrf.mxu3 }
 0x1fc   :  { %v1252_v8 = vadd.f32 %v1251_v3, %v1232_v32  ;;  %v1196_v33 = vpop.f32.mrf.mxu0  ;;  %v1215_v42 = vpop.f32.mrf.mxu1 }
 0x1fd   :  { %v1216_v45 = vadd.f32 %v1215_v42, %v1196_v33 }
 0x1fe   :  { %v1414_v35 = vpack.c.bf16 %v1252_v8, %v1214_v26 }
 0x1ff   :  { %1475 = vmatmul.bf16.vlgmr.msra.gmra.mxu1 %v1409_v34 }
 0x200   :  { %1526 = vmatpush.bf16.xpose.msrb.mxu1 %v1441_v30  ;;  %v1442_v36 = vrot.slane %v1414_v35, 4  ;;  %1487 = vmatpush.bf16.xpose.msra.mxu2 %v1414_v35 }
 0x203   :  { %v1234_v43 = vpop.f32.mrf.mxu2  ;;  %v1253_v44 = vpop.f32.mrf.mxu3 }
 0x204   :  { %v1254_v46 = vadd.f32 %v1253_v44, %v1234_v43  ;;  %v1265_v48 = vpop.f32.mrf.mxu0  ;;  %v1284_v49 = vpop.f32.mrf.mxu1 }
 0x205   :  { %v1285_v58 = vadd.f32 %v1284_v49, %v1265_v48 }
 0x206   :  { %v1415_v52 = vpack.c.bf16 %v1254_v46, %v1216_v45 }
 0x207   :  { %1488 = vmatmul.bf16.vlgmr.msra.gmra.mxu2 %v1410_v51  ;;  %1514 = vmatmul.bf16.vlgmr.msrb.gmra.mxu0 %v1428_v50 }
 0x208   :  { %1539 = vmatpush.bf16.xpose.msrb.mxu2 %v1442_v36  ;;  %v1443_v53 = vrot.slane %v1415_v52, 4  ;;  %1500 = vmatpush.bf16.xpose.msra.mxu3 %v1415_v52 }
 0x20b   :  { %v1303_v38 = vpop.f32.mrf.mxu2  ;;  %v1322_v57 = vpop.f32.mrf.mxu3 }
 0x20c   :  { %v1323_v61 = vadd.f32 %v1322_v57, %v1303_v38  ;;  %v1267_v28 = vpop.f32.mrf.mxu0  ;;  %v1286_v62 = vpop.f32.mrf.mxu1 }
 0x20d   :  { %v1287_v40 = vadd.f32 %v1286_v62, %v1267_v28 }
 0x20e   :  { %v1416_v0 = vpack.c.bf16 %v1323_v61, %v1285_v58 }
 0x20f   :  { %1501 = vmatmul.bf16.vlgmr.msra.gmra.mxu3 %v1411_v23  ;;  %1527 = vmatmul.bf16.vlgmr.msrb.gmra.mxu1 %v1429_v63 }
 0x210   :  { %1552 = vmatpush.bf16.xpose.msrb.mxu3 %v1443_v53  ;;  %v1672_v47 = vunpack.c.l.b16 %v1416_v0  ;;  %v1673_v19 = vunpack.c.h.b16 %v1416_v0 }
 0x212   :  { %v1674_v4 = vpack.c.b16 %v1672_v47, %v1672_v47  ;;  %v1675_v21 = vpack.c.b16 %v1673_v19, %v1673_v19 }
 0x213   :  { %v1305_v6 = vpop.f32.mrf.mxu2  ;;  %v1324_v24 = vpop.f32.mrf.mxu3 }
 0x214   :  { %v1325_v5 = vadd.f32 %v1324_v24, %v1305_v6  ;;  %v1270_v39 = vpop.f32.mrf.mxu0  ;;  %v1289_v27 = vpop.f32.mrf.mxu1  ;;  %v1681_v7 = vsel %vm1679_vm13, %v1674_v4, 0  ;;  %v1684_v29 = vsel %vm1679_vm13, %v1675_v21, 0 }
 0x215   :  { %1693 = vmatpush.bf16.msra.mxu0 %v1681_v7  ;;  %1706 = vmatpush.bf16.msra.mxu1 %v1684_v29  ;;  %v1290_v55 = vadd.f32 %v1289_v27, %v1270_v39 }
 0x216   :  { %v1418_v9 = vpack.c.bf16 %v1325_v5, %v1287_v40 }
 0x217   :  { %1540 = vmatmul.bf16.vlgmr.msrb.gmra.mxu2 %v1430_v1  ;;  %v1448_v1 = vlaneseq }
 0x218   :  { %v1713_v10 = vunpack.c.l.b16 %v1418_v9  ;;  %v1714_v11 = vunpack.c.h.b16 %v1418_v9 }
 0x21a   :  { %v1715_v12 = vpack.c.b16 %v1713_v10, %v1713_v10  ;;  %v1716_v14 = vpack.c.b16 %v1714_v11, %v1714_v11  ;;  %v1449_v10 = vshrl.u32 %v1448_v1, 7  ;;  %v1451_v11 = vand.u32 127, %v1448_v1 }
 0x21b   :  { %v1308_v15 = vpop.f32.mrf.mxu2  ;;  %v1327_v16 = vpop.f32.mrf.mxu3 }
 0x21c   :  { %v1328_v17 = vadd.f32 %v1327_v16, %v1308_v15  ;;  %v1272_v13 = vpop.f32.mrf.mxu0  ;;  %v1291_v22 = vpop.f32.mrf.mxu1  ;;  %v1721_v25 = vsel %vm1679_vm13, %v1715_v12, 0  ;;  %v1724_v56 = vsel %vm1679_vm13, %v1716_v14, 0  ;;  %vm1452_vm14 = vcmp.le.s32.totalorder %v1451_v11, %v1449_v10 }
 0x21d   :  { %1733 = vmatpush.bf16.msra.mxu2 %v1721_v25  ;;  %1746 = vmatpush.bf16.msra.mxu3 %v1724_v56  ;;  %v1292_v8 = vadd.f32 %v1291_v22, %v1272_v13  ;;  %v7614_v15 = vmov -1e+30  }
 0x21e   :  { %v1420_v2 = vpack.c.bf16 %v1328_v17, %v1290_v55  ;;  %v1453_v16 = vsel %vm1452_vm14, 0.0, %v7614_v15 }
 0x21f   :  { %1553 = vmatmul.bf16.vlgmr.msrb.gmra.mxu3 %v1431_v60 }
 0x220   :  { %v1753_v30 = vunpack.c.l.b16 %v1420_v2  ;;  %v1754_v20 = vunpack.c.h.b16 %v1420_v2 }
 0x222   :  { %v1755_v31 = vpack.c.b16 %v1753_v30, %v1753_v30  ;;  %v1756_v32 = vpack.c.b16 %v1754_v20, %v1754_v20 }
 0x223   :  { %v1310_v3 = vpop.f32.mrf.mxu2  ;;  %v1329_v26 = vpop.f32.mrf.mxu3 }
 0x224   :  { %v1330_v33 = vadd.f32 %v1329_v26, %v1310_v3  ;;  %v1341_v42 = vpop.f32.mrf.mxu0  ;;  %v1360_v34 = vpop.f32.mrf.mxu1  ;;  %v1761_v35 = vsel %vm1679_vm13, %v1755_v31, 0  ;;  %v1764_v36 = vsel %vm1679_vm13, %v1756_v32, 0 }
 0x225   :  { %v1361_v41 = vadd.f32 %v1360_v34, %v1341_v42  ;;  %1773 = vmatpush.bf16.msrb.mxu0 %v1761_v35  ;;  %1786 = vmatpush.bf16.msrb.mxu1 %v1764_v36 }
 0x226   :  { %v1422_v59 = vpack.c.bf16 %v1330_v33, %v1292_v8 }
 0x228   :  { %v1793_v43 = vunpack.c.l.b16 %v1422_v59  ;;  %v1794_v44 = vunpack.c.h.b16 %v1422_v59 }
 0x22a   :  { %v1795_v45 = vpack.c.b16 %v1793_v43, %v1793_v43  ;;  %v1796_v46 = vpack.c.b16 %v1794_v44, %v1794_v44 }
 0x22b   :  { %v1379_v48 = vpop.f32.mrf.mxu2  ;;  %v1398_v49 = vpop.f32.mrf.mxu3 }
 0x22c   :  { %v1399_v50 = vadd.f32 %v1398_v49, %v1379_v48  ;;  %v7912_v51 = vpop.f32.mrf.mxu0  ;;  %v7914_v52 = vpop.f32.mrf.mxu1  ;;  %v1801_v53 = vsel %vm1679_vm13, %v1795_v45, 0  ;;  %v1804_v54 = vsel %vm1679_vm13, %v1796_v46, 0 }
 0x22d   :  { %1813 = vmatpush.bf16.msrb.mxu2 %v1801_v53  ;;  %1826 = vmatpush.bf16.msrb.mxu3 %v1804_v54 }
 0x22e   :  { %v1417_v37 = vpack.c.bf16 %v1399_v50, %v1361_v41 }
 0x230   :  { %v1833_v38 = vunpack.c.l.b16 %v1417_v37  ;;  %v1834_v57 = vunpack.c.h.b16 %v1417_v37 }
 0x232   :  { %v1835_v58 = vpack.c.b16 %v1833_v38, %v1833_v38  ;;  %v1836_v61 = vpack.c.b16 %v1834_v57, %v1834_v57 }
 0x233   :  { %v7918_v28 = vpop.f32.mrf.mxu2  ;;  %v7920_v62 = vpop.f32.mrf.mxu3 }
 0x234   :  { %v1346_v63 = vpop.f32.mrf.mxu0  ;;  %v1365_v23 = vpop.f32.mrf.mxu1  ;;  %v7923_v0 = vsel %vm1679_vm13, %v1835_v58, 0  ;;  %v7926_v47 = vsel %vm1679_vm13, %v1836_v61, 0 }
 0x235   :  { %v1366_v19 = vadd.f32 %v1365_v23, %v1346_v63 }
 0x23b   :  { %v1384_v4 = vpop.f32.mrf.mxu2  ;;  %v1403_v21 = vpop.f32.mrf.mxu3 }
 0x23c   :  { %v1404_v6 = vadd.f32 %v1403_v21, %v1384_v4  ;;  %v7934_v9 = vpop.f32.mrf.mxu0  ;;  %v7936_v12 = vpop.f32.mrf.mxu1 }
 0x23e   :  { %v1421_v24 = vpack.c.bf16 %v1404_v6, %v1366_v19 }
 0x240   :  { %v1913_v40 = vunpack.c.l.b16 %v1421_v24  ;;  %v1914_v5 = vunpack.c.h.b16 %v1421_v24 }
 0x242   :  { %v1915_v39 = vpack.c.b16 %v1913_v40, %v1913_v40  ;;  %v1916_v27 = vpack.c.b16 %v1914_v5, %v1914_v5 }
 0x243   :  { %v7940_v30 = vpop.f32.mrf.mxu2  ;;  %v7942_v32 = vpop.f32.mrf.mxu3 }
 0x244   :  { %v7929_v7 = vsel %vm1679_vm13, %v1915_v39, 0  ;;  %v7932_v29 = vsel %vm1679_vm13, %v1916_v27, 0 }
 0x274   :  { %v1463_v14 = vpop.f32.mrf.mxu0 }
 0x275   :  { %v1558_v55 = vmul.f32 0.088388346, %v1463_v14 }
 0x277   :  { %v1566_v17 = vadd.f32 %v1558_v55, %v1453_v16 }
 0x279   :  { %v1575_v13 = vsel %vm1574_vm15, %v1566_v17, -inf }
 0x27a   :  { %1576 = vmax.xlane.f32.xlu0 %v1575_v13 }
 0x27c   :  { %v1465_v22 = vpop.f32.mrf.mxu0  ;;  %v1476_v25 = vpop.f32.mrf.mxu1 }
 0x27d   :  { %v1559_v56 = vmul.f32 0.088388346, %v1476_v25 }
 0x27f   :  { %v1567_v60 = vadd.f32 %v1559_v56, %v1453_v16 }
 0x281   :  { %v1578_v2 = vsel %vm1574_vm15, %v1567_v60, -inf }
 0x282   :  { %1579 = vmax.xlane.f32.xlu2 %v1578_v2 }
 0x284   :  { %v1478_v20 = vpop.f32.mrf.mxu1  ;;  %v1515_v31 = vpop.f32.mrf.mxu0 }
 0x285   :  { %v1562_v48 = vmul.f32 0.088388346, %v1515_v31 }
 0x287   :  { %v1570_v54 = vadd.f32 %v1562_v48, %v1453_v16 }
 0x289   :  { %v1587_v38 = vsel %vm1574_vm15, %v1570_v54, -inf }
 0x28a   :  { %v1489_v3 = vpop.f32.mrf.mxu2 }
 0x28b   :  { %v1560_v26 = vmul.f32 0.088388346, %v1489_v3 }
 0x28c   :  { %v1517_v8 = vpop.f32.mrf.mxu0  ;;  %v1528_v33 = vpop.f32.mrf.mxu1 }
 0x28d   :  { %v1563_v42 = vmul.f32 0.088388346, %v1528_v33  ;;  %v1568_v34 = vadd.f32 %v1560_v26, %v1453_v16 }
 0x28f   :  { %v1581_v35 = vsel %vm1574_vm15, %v1568_v34, -inf  ;;  %v1571_v36 = vadd.f32 %v1563_v42, %v1453_v16 }
 0x290   :  { %1582 = vmax.xlane.f32.xlu2 %v1581_v35 }
 0x291   :  { %v1590_v41 = vsel %vm1574_vm15, %v1571_v36, -inf }
 0x292   :  { %v1491_v59 = vpop.f32.mrf.mxu2  ;;  %1591 = vmax.xlane.f32.xlu0 %v1590_v41  ;;  %v1502_v43 = vpop.f32.mrf.mxu3 }
 0x293   :  { %v1561_v44 = vmul.f32 0.088388346, %v1502_v43 }
 0x294   :  { %v1530_v45 = vpop.f32.mrf.mxu1 }
 0x295   :  { %v1569_v46 = vadd.f32 %v1561_v44, %v1453_v16 }
 0x297   :  { %v1584_v49 = vsel %vm1574_vm15, %v1569_v46, -inf }
 0x298   :  { %1585 = vmax.xlane.f32.xlu1 %v1584_v49 }
 0x29a   :  { %v1504_v50 = vpop.f32.mrf.mxu3  ;;  %v1541_v53 = vpop.f32.mrf.mxu2 }
 0x29b   :  { %v1564_v37 = vmul.f32 0.088388346, %v1541_v53 }
 0x29d   :  { %v1572_v63 = vadd.f32 %v1564_v37, %v1453_v16  ;;  %v1401_v37 = vadd.f32 %v7920_v62, %v7918_v28 }
 0x29f   :  { %v1593_v19 = vsel %vm1574_vm15, %v1572_v63, -inf }
 0x2a0   :  { %1588 = vmax.xlane.f32.xlu1 %v1587_v38  ;;  %v1363_v38 = vadd.f32 %v7914_v52, %v7912_v51 }
 0x2a2   :  { %v1543_v57 = vpop.f32.mrf.mxu2  ;;  %v1554_v58 = vpop.f32.mrf.mxu3 }
 0x2a3   :  { %v1565_v61 = vmul.f32 0.088388346, %v1554_v58  ;;  %v1419_v58 = vpack.c.bf16 %v1401_v37, %v1363_v38 }
 0x2a5   :  { %v1573_v23 = vadd.f32 %v1565_v61, %v1453_v16 }
 0x2a7   :  { %v1596_v4 = vsel %vm1574_vm15, %v1573_v23, -inf }
 0x2a8   :  { %1594 = vmax.xlane.f32.xlu1 %v1593_v19  ;;  %1597 = vmax.xlane.f32.xlu2 %v1596_v4  ;;  %v1873_v19 = vunpack.c.l.b16 %v1419_v58  ;;  %v1874_v4 = vunpack.c.h.b16 %v1419_v58 }
 0x2aa   :  { %v1556_v21 = vpop.f32.mrf.mxu3  ;;  %v1876_v51 = vpack.c.b16 %v1874_v4, %v1874_v4  ;;  %v5612_v4 = vld [vmem:[#allocation13 + $0xc0] sm:$0xf] }
 0x2ab   :  { %v1875_v21 = vpack.c.b16 %v1873_v19, %v1873_v19  ;;  %v6931_v19 = vld [vmem:[#allocation13 + $0x44] sm:$0xf0] }
 0x2ed   :  { %v1577_v6 = vpop.xlane.xlu0 %1576 }
 0x2ee   :  { %v1599_v24 = vsub.f32 %v1566_v17, %v1577_v6  ;;  %v1881_v6 = vsel %vm1679_vm13, %v1875_v21, 0 }
 0x2f0   :  { %v1607_v40 = vmul.f32 1.442695, %v1599_v24  ;;  %v1884_v24 = vsel %vm1679_vm13, %v1876_v51, 0  ;;  %v6929_v51 = vld [vmem:[#allocation13 + $0x34] sm:$0xf0] }
 0x2f2   :  { %7271 = vpow2.f32 %v1607_v40 }
 0x2f5   :  { %v1580_v5 = vpop.xlane.xlu2 %1579 }
 0x2f6   :  { %v1600_v39 = vsub.f32 %v1567_v60, %v1580_v5 }
 0x2f8   :  { %v7272_v27 = vpop.eup %7271  ;;  %v1609_v1 = vmul.f32 1.442695, %v1600_v39 }
 0x2f9   :  { %v1623_v10 = vsel %vm1574_vm15, %v7272_v27, 0.0 }
 0x2fa   :  { %7273 = vpow2.f32 %v1609_v1  ;;  %1624 = vadd.xlane.f32.xlu2 %v1623_v10 }
 0x300   :  { %v7274_v11 = vpop.eup %7273 }
 0x301   :  { %v1626_v14 = vsel %vm1574_vm15, %v7274_v11, 0.0 }
 0x302   :  { %1627 = vadd.xlane.f32.xlu0 %v1626_v14 }
 0x303   :  { %v1583_v15 = vpop.xlane.xlu2 %1582 }
 0x304   :  { %v1601_v16 = vsub.f32 %v1568_v34, %v1583_v15 }
 0x305   :  { %v1592_v55 = vpop.xlane.xlu0 %1591 }
 0x306   :  { %v1611_v13 = vmul.f32 1.442695, %v1601_v16  ;;  %v1604_v22 = vsub.f32 %v1571_v36, %v1592_v55 }
 0x308   :  { %7275 = vpow2.f32 %v1611_v13  ;;  %v1617_v17 = vmul.f32 1.442695, %v1604_v22 }
 0x30a   :  { %7277 = vpow2.f32 %v1617_v17  ;;  %v5636_v17 = vld [vmem:[#allocation13 + $0xf0] sm:$0xf] }
 0x30b   :  { %v1586_v25 = vpop.xlane.xlu1 %1585 }
 0x30c   :  { %v1602_v56 = vsub.f32 %v1569_v46, %v1586_v25  ;;  %v6953_v25 = vld [vmem:[#allocation13 + $0xf4] sm:$0xf0] }
 0x30e   :  { %v7952_v60 = vpop.eup %7275  ;;  %v1613_v2 = vmul.f32 1.442695, %v1602_v56 }
 0x30f   :  { %v1629_v20 = vsel %vm1574_vm15, %v7952_v60, 0.0 }
 0x310   :  { %v7956_v31 = vpop.eup %7277  ;;  %7279 = vpow2.f32 %v1613_v2  ;;  %1630 = vadd.xlane.f32.xlu1 %v1629_v20  ;;  %v5637_v20 = vor.u32 %v6953_v25, %v5636_v17  ;;  %v6985_v25 = vld [vmem:[#allocation13 + $0x1f4] sm:$0xf0] }
 0x311   :  { %v1638_v3 = vsel %vm1574_vm15, %v7956_v31, 0.0 }
 0x312   :  { %1639 = vadd.xlane.f32.xlu2 %v1638_v3  ;;  %v5564_v3 = vld [vmem:[#allocation13 + $0x60] sm:$0xf] }
 0x313   :  { %v1589_v26 = vpop.xlane.xlu1 %1588 }
 0x314   :  { %v1603_v8 = vsub.f32 %v1570_v54, %v1589_v26 }
 0x316   :  { %v7960_v33 = vpop.eup %7279  ;;  %v1615_v42 = vmul.f32 1.442695, %v1603_v8 }
 0x317   :  { %v1632_v34 = vsel %vm1574_vm15, %v7960_v33, 0.0 }
 0x318   :  { %7281 = vpow2.f32 %v1615_v42  ;;  %1633 = vadd.xlane.f32.xlu0 %v1632_v34  ;;  %v5628_v42 = vld [vmem:[#allocation13 + $0xe0] sm:$0xf]  ;;  %v6951_v34 = vld [vmem:[#allocation13 + $0xe4] sm:$0xf0] }
 0x31b   :  { %v1595_v35 = vpop.xlane.xlu1 %1594  ;;  %v1598_v36 = vpop.xlane.xlu2 %1597 }
 0x31c   :  { %v1605_v41 = vsub.f32 %v1572_v63, %v1595_v35  ;;  %v1606_v59 = vsub.f32 %v1573_v23, %v1598_v36 }
 0x31e   :  { %v7964_v43 = vpop.eup %7281  ;;  %v1619_v44 = vmul.f32 1.442695, %v1605_v41  ;;  %v1621_v45 = vmul.f32 1.442695, %v1606_v59  ;;  %v5629_v41 = vor.u32 %v6951_v34, %v5628_v42  ;;  %v5556_v59 = vld [vmem:[#allocation13 + $0x50] sm:$0xf] }
 0x31f   :  { %v1635_v46 = vsel %vm1574_vm15, %v7964_v43, 0.0  ;;  %v6967_v42 = vld [vmem:[#allocation13 + $0x164] sm:$0xf0]  ;;  %v5756_v34 = vld [vmem:[#allocation13 + $0x1e0] sm:$0xf] }
 0x320   :  { %7283 = vpow2.f32 %v1619_v44  ;;  %1636 = vadd.xlane.f32.xlu0 %v1635_v46  ;;  %v6933_v44 = vld [vmem:[#allocation13 + $0x54] sm:$0xf0] }
 0x321   :  { %7285 = vpow2.f32 %v1621_v45  ;;  %v5620_v45 = vld [vmem:[#allocation13 + $0xd0] sm:$0xf]  ;;  %v6949_v46 = vld [vmem:[#allocation13 + $0xd4] sm:$0xf0] }
 0x326   :  { %v7968_v48 = vpop.eup %7283 }
 0x327   :  { %v7970_v49 = vpop.eup %7285  ;;  %v1641_v50 = vsel %vm1574_vm15, %v7968_v48, 0.0 }
 0x328   :  { %1642 = vadd.xlane.f32.xlu2 %v1641_v50  ;;  %v1644_v53 = vsel %vm1574_vm15, %v7970_v49, 0.0  ;;  %v5557_v50 = vor.u32 %v6933_v44, %v5556_v59  ;;  %v5566_v59 = vld [vmem:[#allocation13 + $0x68] sm:$0xf0] }
 0x329   :  { %1645 = vadd.xlane.f32.xlu1 %v1644_v53  ;;  %v5621_v53 = vor.u32 %v6949_v46, %v5620_v45 }
 0x36d   :  { %v1625_v54 = vpop.xlane.xlu2 %1624 }
 0x36e   :  { %7287 = vrcp.f32 %v1625_v54 }
 0x374   :  { %v7288_v57 = vpop.eup %7287 }
 0x375   :  { %v1655_v61 = vmul.f32 %v7288_v57, %v7272_v27  ;;  %v1628_v63 = vpop.xlane.xlu0 %1627 }
 0x376   :  { %7289 = vrcp.f32 %v1628_v63 }
 0x377   :  { %v1663_v23 = vpack.c.bf16 %v1655_v61, %v1655_v61 }
 0x379   :  { %5498 = vmatmul.msk.bf16.vlgmr.msra.gmra.mxu0 %vm1574_vm15, %v1663_v23  ;;  %5499 = vmatmul.msk.bf16.vlgmr.msra.gmra.mxu1 %vm1574_vm15, %v1663_v23  ;;  %v5548_v23 = vld [vmem:[#allocation13 + $0x40] sm:$0xf] }
 0x37a   :  { %1853 = vmatpush.bf16.msra.mxu0 %v7923_v0  ;;  %1866 = vmatpush.bf16.msra.mxu1 %v7926_v47  ;;  %v1406_v0 = vadd.f32 %v7942_v32, %v7940_v30  ;;  %v1368_v47 = vadd.f32 %v7936_v12, %v7934_v9 }
 0x37c   :  { %v7290_v28 = vpop.eup %7289  ;;  %v1423_v39 = vpack.c.bf16 %v1406_v0, %v1368_v47  ;;  %v6927_v0 = vld [vmem:[#allocation13 + $0x24] sm:$0xf0]  ;;  %v5596_v47 = vld [vmem:[#allocation13 + $0xa0] sm:$0xf] }
 0x37d   :  { %v1656_v62 = vmul.f32 %v7290_v28, %v7274_v11  ;;  %v5549_v28 = vor.u32 %v6931_v19, %v5548_v23 }
 0x37e   :  { %v1953_v11 = vunpack.c.l.b16 %v1423_v39  ;;  %v1954_v14 = vunpack.c.h.b16 %v1423_v39  ;;  %v6943_v39 = vld [vmem:[#allocation13 + $0xa4] sm:$0xf0] }
 0x37f   :  { %v1664_v52 = vpack.c.bf16 %v1656_v62, %v1656_v62  ;;  %v6947_v62 = vld [vmem:[#allocation13 + $0xc4] sm:$0xf0] }
 0x380   :  { %v1955_v32 = vpack.c.b16 %v1953_v11, %v1953_v11  ;;  %v1956_v15 = vpack.c.b16 %v1954_v14, %v1954_v14  ;;  %v5613_v21 = vor.u32 %v6947_v62, %v5612_v4  ;;  %v5588_v11 = vld [vmem:[#allocation13 + $0x90] sm:$0xf]  ;;  %v6948_v4 = vld [vmem:[#allocation13 + $0xd4] sm:$0xf] }
 0x381   :  { %5500 = vmatmul.msk.bf16.vlgmr.msra.gmra.mxu2 %vm1574_vm15, %v1664_v52  ;;  %5501 = vmatmul.msk.bf16.vlgmr.msra.gmra.mxu3 %vm1574_vm15, %v1664_v52  ;;  %v5604_v52 = vld [vmem:[#allocation13 + $0xb0] sm:$0xf] }
 0x382   :  { %1893 = vmatpush.bf16.msra.mxu2 %v1881_v6  ;;  %1906 = vmatpush.bf16.msra.mxu3 %v1884_v24  ;;  %v1961_v13 = vsel %vm1679_vm13, %v1955_v32, 0  ;;  %v1964_v22 = vsel %vm1679_vm13, %v1956_v15, 0  ;;  %v6945_v24 = vld [vmem:[#allocation13 + $0xb4] sm:$0xf0]  ;;  %v6923_v32 = vld [vmem:[#allocation13 + $0x4] sm:$0xf0] }
 0x383   :  { %v1631_v40 = vpop.xlane.xlu1 %1630  ;;  %v5580_v15 = vld [vmem:[#allocation13 + $0x80] sm:$0xf] }
 0x384   :  { %7291 = vrcp.f32 %v1631_v40  ;;  %v5605_v40 = vor.u32 %v6945_v24, %v5604_v52  ;;  %v6930_v24 = vld [vmem:[#allocation13 + $0x44] sm:$0xf] }
 0x385   :  { %v1640_v16 = vpop.xlane.xlu2 %1639 }
 0x38a   :  { %v7292_v5 = vpop.eup %7291 }
 0x38b   :  { %v1657_v27 = vmul.f32 %v7292_v5, %v7952_v60  ;;  %v1634_v1 = vpop.xlane.xlu0 %1633 }
 0x38c   :  { %7293 = vrcp.f32 %v1634_v1  ;;  %v5524_v1 = vld [vmem:[#allocation13 + $0x10] sm:$0xf] }
 0x38d   :  { %v1665_v10 = vpack.c.bf16 %v1657_v27, %v1657_v27  ;;  %v5597_v27 = vor.u32 %v6943_v39, %v5596_v47  ;;  %v6946_v39 = vld [vmem:[#allocation13 + $0xc4] sm:$0xf] }
 0x38f   :  { %5502 = vmatmul.msk.bf16.vlgmr.msrb.gmra.mxu0 %vm1574_vm15, %v1665_v10  ;;  %5503 = vmatmul.msk.bf16.vlgmr.msrb.gmra.mxu1 %vm1574_vm15, %v1665_v10  ;;  %v6925_v10 = vld [vmem:[#allocation13 + $0x14] sm:$0xf0] }
 0x390   :  { %1933 = vmatpush.bf16.msrb.mxu0 %v7929_v7  ;;  %1946 = vmatpush.bf16.msrb.mxu1 %v7932_v29  ;;  %v5572_v7 = vld [vmem:[#allocation13 + $0x70] sm:$0xf]  ;;  %v6937_v29 = vld [vmem:[#allocation13 + $0x74] sm:$0xf0]  ;;  %v5525_v14 = vor.u32 %v6925_v10, %v5524_v1 }
 0x391   :  { %v5573_v2 = vor.u32 %v6937_v29, %v5572_v7  ;;  %v6969_v7 = vld [vmem:[#allocation13 + $0x174] sm:$0xf0]  ;;  %v5764_v29 = vld [vmem:[#allocation13 + $0x1f0] sm:$0xf] }
 0x392   :  { %v7294_v30 = vpop.eup %7293  ;;  %v5668_v10 = vld [vmem:[#allocation13 + $0x130] sm:$0xf] }
 0x393   :  { %v1658_v9 = vmul.f32 %v7294_v30, %v7960_v33  ;;  %v1637_v12 = vpop.xlane.xlu0 %1636  ;;  %v6935_v33 = vld [vmem:[#allocation13 + $0x64] sm:$0xf0]  ;;  %v6941_v30 = vld [vmem:[#allocation13 + $0x94] sm:$0xf0] }
 0x394   :  { %7295 = vrcp.f32 %v1637_v12  ;;  %v5565_v36 = vor.u32 %v6935_v33, %v5564_v3  ;;  %v5516_v12 = vld [vmem:[#allocation13] sm:$0xf]  ;;  %v6952_v3 = vld [vmem:[#allocation13 + $0xf4] sm:$0xf] }
 0x395   :  { %v1666_v55 = vpack.c.bf16 %v1658_v9, %v1658_v9  ;;  %7297 = vrcp.f32 %v1640_v16  ;;  %v5589_v9 = vor.u32 %v6941_v30, %v5588_v11  ;;  %v5517_v16 = vor.u32 %v6923_v32, %v5516_v12  ;;  %v5692_v33 = vld [vmem:[#allocation13 + $0x160] sm:$0xf]  ;;  %v6961_v11 = vld [vmem:[#allocation13 + $0x134] sm:$0xf0]  ;;  %v6928_v12 = vld [vmem:[#allocation13 + $0x34] sm:$0xf] }
 0x396   :  { %v5669_v30 = vor.u32 %v6961_v11, %v5668_v10  ;;  %v5542_v32 = vld [vmem:[#allocation13 + $0x38] sm:$0xf0]  ;;  %v6984_v11 = vld [vmem:[#allocation13 + $0x1f4] sm:$0xf] }
 0x397   :  { %5504 = vmatmul.msk.bf16.vlgmr.msrb.gmra.mxu2 %vm1574_vm15, %v1666_v55  ;;  %5505 = vmatmul.msk.bf16.vlgmr.msrb.gmra.mxu3 %vm1574_vm15, %v1666_v55  ;;  %v6939_v55 = vld [vmem:[#allocation13 + $0x84] sm:$0xf0]  ;;  %v5702_v10 = vld [vmem:[#allocation13 + $0x178] sm:$0xf0] }
 0x398   :  { %1973 = vmatpush.bf16.msrb.mxu2 %v1961_v13  ;;  %1986 = vmatpush.bf16.msrb.mxu3 %v1964_v22  ;;  %v5581_v13 = vor.u32 %v6939_v55, %v5580_v15  ;;  %v5700_v22 = vld [vmem:[#allocation13 + $0x170] sm:$0xf]  ;;  %v5545_v55 = vor.u32 %v6928_v12, %v5542_v32  ;;  %v6966_v12 = vld [vmem:[#allocation13 + $0x164] sm:$0xf]  ;;  %v5694_v32 = vld [vmem:[#allocation13 + $0x168] sm:$0xf0] }
 0x399   :  { %v5701_v17 = vor.u32 %v6969_v7, %v5700_v22  ;;  %v5606_v22 = vld [vmem:[#allocation13 + $0xb8] sm:$0xf0] }
 0x39a   :  { %v7296_v56 = vpop.eup %7295 }
 0x39b   :  { %v1659_v60 = vmul.f32 %v7296_v56, %v7964_v43  ;;  %v1643_v8 = vpop.xlane.xlu2 %1642  ;;  %v7298_v35 = vpop.eup %7297  ;;  %v6936_v56 = vld [vmem:[#allocation13 + $0x74] sm:$0xf] }
 0x39c   :  { %7299 = vrcp.f32 %v1643_v8  ;;  %v1660_v43 = vmul.f32 %v7298_v35, %v7956_v31  ;;  %v1646_v37 = vpop.xlane.xlu1 %1645  ;;  %v5693_v35 = vor.u32 %v6967_v42, %v5692_v33 }
 0x39d   :  { %v1667_v26 = vpack.c.bf16 %v1659_v60, %v1659_v60  ;;  %7301 = vrcp.f32 %v1646_v37  ;;  %v5574_v60 = vld [vmem:[#allocation13 + $0x78] sm:$0xf0]  ;;  %v5684_v37 = vld [vmem:[#allocation13 + $0x150] sm:$0xf] }
 0x39e   :  { %v1668_v54 = vpack.c.bf16 %v1660_v43, %v1660_v43 }
 0x39f   :  { %5506 = vmatmul.msk.bf16.vlgmr.msra.gmra.mxu0 %vm1574_vm15, %v1667_v26  ;;  %5507 = vmatmul.msk.bf16.vlgmr.msra.gmra.mxu1 %vm1574_vm15, %v1667_v26  ;;  %v5638_v26 = vld [vmem:[#allocation13 + $0xf8] sm:$0xf0] }
 0x3a0   :  { %2424 = vmatpush.bf16.msra.mxu0 %v5573_v2  ;;  %2443 = vmatpush.bf16.msra.mxu1 %v5637_v20  ;;  %v5765_v2 = vor.u32 %v6985_v25, %v5764_v29  ;;  %v5577_v20 = vor.u32 %v6936_v56, %v5574_v60  ;;  %v5641_v8 = vor.u32 %v6952_v3, %v5638_v26  ;;  %v5660_v25 = vld [vmem:[#allocation13 + $0x120] sm:$0xf]  ;;  %v6959_v56 = vld [vmem:[#allocation13 + $0x124] sm:$0xf0]  ;;  %v6926_v26 = vld [vmem:[#allocation13 + $0x24] sm:$0xf] }
 0x3a1   :  { %v5724_v60 = vld [vmem:[#allocation13 + $0x1a0] sm:$0xf]  ;;  %v6975_v3 = vld [vmem:[#allocation13 + $0x1a4] sm:$0xf0] }
 0x3a2   :  { %v7300_v38 = vpop.eup %7299  ;;  %v5725_v42 = vor.u32 %v6975_v3, %v5724_v60 }
 0x3a3   :  { %v1661_v57 = vmul.f32 %v7300_v38, %v7968_v48  ;;  %v7302_v58 = vpop.eup %7301  ;;  %v5540_v48 = vld [vmem:[#allocation13 + $0x30] sm:$0xf]  ;;  %v6965_v38 = vld [vmem:[#allocation13 + $0x154] sm:$0xf0] }
 0x3a4   :  { %2425 = vmatpush.bf16.msra.mxu0 %v5565_v36  ;;  %2444 = vmatpush.bf16.msra.mxu1 %v5629_v41  ;;  %v1662_v61 = vmul.f32 %v7302_v58, %v7970_v49  ;;  %v5541_v6 = vor.u32 %v6929_v51, %v5540_v48  ;;  %v5532_v49 = vld [vmem:[#allocation13 + $0x20] sm:$0xf]  ;;  %v6983_v36 = vld [vmem:[#allocation13 + $0x1e4] sm:$0xf0]  ;;  %v6934_v41 = vld [vmem:[#allocation13 + $0x64] sm:$0xf] }
 0x3a5   :  { %v1669_v31 = vpack.c.bf16 %v1661_v57, %v1661_v57  ;;  %v5533_v5 = vor.u32 %v6927_v0, %v5532_v49  ;;  %v5757_v45 = vor.u32 %v6983_v36, %v5756_v34  ;;  %v5569_v46 = vor.u32 %v6934_v41, %v5566_v59  ;;  %v5748_v57 = vld [vmem:[#allocation13 + $0x1d0] sm:$0xf]  ;;  %v6981_v58 = vld [vmem:[#allocation13 + $0x1d4] sm:$0xf0]  ;;  %v6963_v48 = vld [vmem:[#allocation13 + $0x144] sm:$0xf0] }
 0x3a6   :  { %v1670_v63 = vpack.c.bf16 %v1662_v61, %v1662_v61  ;;  %v6932_v61 = vld [vmem:[#allocation13 + $0x54] sm:$0xf]  ;;  %v5749_v23 = vor.u32 %v6981_v58, %v5748_v57  ;;  %v5740_v51 = vld [vmem:[#allocation13 + $0x1c0] sm:$0xf]  ;;  %v5598_v36 = vld [vmem:[#allocation13 + $0xa8] sm:$0xf0] }
 0x3a7   :  { %5508 = vmatmul.msk.bf16.vlgmr.msra.gmra.mxu2 %vm1574_vm15, %v1668_v54  ;;  %5509 = vmatmul.msk.bf16.vlgmr.msra.gmra.mxu3 %vm1574_vm15, %v1668_v54  ;;  %v6924_v57 = vld [vmem:[#allocation13 + $0x14] sm:$0xf] }
 0x3a8   :  { %2426 = vmatpush.bf16.msra.mxu0 %v5557_v50  ;;  %2445 = vmatpush.bf16.msra.mxu1 %v5621_v53  ;;  %v6950_v50 = vld [vmem:[#allocation13 + $0xe4] sm:$0xf]  ;;  %v5630_v53 = vld [vmem:[#allocation13 + $0xe8] sm:$0xf0] }
 0x3a9   :  { %2462 = vmatpush.bf16.msra.mxu2 %v5701_v17  ;;  %2481 = vmatpush.bf16.msra.mxu3 %v5765_v2  ;;  %v5633_v54 = vor.u32 %v6950_v50, %v5630_v53  ;;  %v5716_v50 = vld [vmem:[#allocation13 + $0x190] sm:$0xf] }
 0x3ac   :  { %2427 = vmatpush.bf16.msra.mxu0 %v5549_v28  ;;  %2446 = vmatpush.bf16.msra.mxu1 %v5613_v21  ;;  %v5622_v28 = vld [vmem:[#allocation13 + $0xd8] sm:$0xf0]  ;;  %v5676_v21 = vld [vmem:[#allocation13 + $0x140] sm:$0xf] }
 0x3ad   :  { %2463 = vmatpush.bf16.msra.mxu2 %v5693_v35  ;;  %2482 = vmatpush.bf16.msra.mxu3 %v5757_v45  ;;  %v5625_v62 = vor.u32 %v6948_v4, %v5622_v28  ;;  %v5677_v52 = vor.u32 %v6963_v48, %v5676_v21  ;;  %v6942_v35 = vld [vmem:[#allocation13 + $0xa4] sm:$0xf]  ;;  %v5652_v45 = vld [vmem:[#allocation13 + $0x110] sm:$0xf]  ;;  %v6955_v21 = vld [vmem:[#allocation13 + $0x104] sm:$0xf0] }
 0x3ae   :  { %v5708_v48 = vld [vmem:[#allocation13 + $0x180] sm:$0xf] }
 0x3af   :  { %5510 = vmatmul.msk.bf16.vlgmr.msrb.gmra.mxu0 %vm1574_vm15, %v1669_v31  ;;  %5511 = vmatmul.msk.bf16.vlgmr.msrb.gmra.mxu1 %vm1574_vm15, %v1669_v31  ;;  %v5685_v31 = vor.u32 %v6965_v38, %v5684_v37  ;;  %v6973_v38 = vld [vmem:[#allocation13 + $0x194] sm:$0xf0] }
 0x3b0   :  { %2428 = vmatpush.bf16.msra.mxu0 %v5541_v6  ;;  %2447 = vmatpush.bf16.msra.mxu1 %v5605_v40  ;;  %v6979_v6 = vld [vmem:[#allocation13 + $0x1c4] sm:$0xf0]  ;;  %v5550_v40 = vld [vmem:[#allocation13 + $0x48] sm:$0xf0]  ;;  %v5717_v58 = vor.u32 %v6973_v38, %v5716_v50 }
 0x3b1   :  { %2464 = vmatpush.bf16.msra.mxu2 %v5685_v31  ;;  %2483 = vmatpush.bf16.msra.mxu3 %v5749_v23  ;;  %v5741_v47 = vor.u32 %v6979_v6, %v5740_v51  ;;  %v5526_v31 = vld [vmem:[#allocation13 + $0x18] sm:$0xf0] }
 0x3b2   :  { %v5590_v23 = vld [vmem:[#allocation13 + $0x98] sm:$0xf0] }
 0x3b4   :  { %2429 = vmatpush.bf16.msra.mxu0 %v5533_v5  ;;  %2448 = vmatpush.bf16.msra.mxu1 %v5597_v27  ;;  %v5553_v5 = vor.u32 %v6930_v24, %v5550_v40  ;;  %v5614_v27 = vld [vmem:[#allocation13 + $0xc8] sm:$0xf0]  ;;  %v6971_v24 = vld [vmem:[#allocation13 + $0x184] sm:$0xf0]  ;;  %v6922_v40 = vld [vmem:[#allocation13 + $0x4] sm:$0xf] }
 0x3b5   :  { %2465 = vmatpush.bf16.msra.mxu2 %v5677_v52  ;;  %v5617_v1 = vor.u32 %v6946_v39, %v5614_v27  ;;  %2484 = vmatpush.bf16.msra.mxu3 %v5741_v47  ;;  %v5582_v39 = vld [vmem:[#allocation13 + $0x88] sm:$0xf0] }
 0x3b7   :  { %5512 = vmatmul.msk.bf16.vlgmr.msrb.gmra.mxu2 %vm1574_vm15, %v1670_v63  ;;  %5513 = vmatmul.msk.bf16.vlgmr.msrb.gmra.mxu3 %vm1574_vm15, %v1670_v63  ;;  %v5558_v63 = vld [vmem:[#allocation13 + $0x58] sm:$0xf0] }
 0x3b8   :  { %2430 = vmatpush.bf16.msra.mxu0 %v5525_v14  ;;  %2449 = vmatpush.bf16.msra.mxu1 %v5589_v9  ;;  %v5561_v19 = vor.u32 %v6932_v61, %v5558_v63  ;;  %v5732_v14 = vld [vmem:[#allocation13 + $0x1b0] sm:$0xf]  ;;  %v6977_v9 = vld [vmem:[#allocation13 + $0x1b4] sm:$0xf0]  ;;  %v5529_v61 = vor.u32 %v6924_v57, %v5526_v31  ;;  %v6940_v63 = vld [vmem:[#allocation13 + $0x94] sm:$0xf] }
 0x3b9   :  { %2466 = vmatpush.bf16.msra.mxu2 %v5669_v30  ;;  %v5766_v30 = vld [vmem:[#allocation13 + $0x1f8] sm:$0xf0]  ;;  %v6960_v57 = vld [vmem:[#allocation13 + $0x134] sm:$0xf] }
 0x3ba   :  { %v5670_v31 = vld [vmem:[#allocation13 + $0x138] sm:$0xf0] }
 0x3bc   :  { %2431 = vmatpush.bf16.msra.mxu0 %v5517_v16  ;;  %2450 = vmatpush.bf16.msra.mxu1 %v5581_v13  ;;  %v5733_v16 = vor.u32 %v6977_v9, %v5732_v14  ;;  %v6944_v13 = vld [vmem:[#allocation13 + $0xb4] sm:$0xf]  ;;  %v5769_v9 = vor.u32 %v6984_v11, %v5766_v30  ;;  %v6970_v11 = vld [vmem:[#allocation13 + $0x184] sm:$0xf] }
 0x3bd   :  { %v5609_v7 = vor.u32 %v6944_v13, %v5606_v22  ;;  %v5697_v13 = vor.u32 %v6966_v12, %v5694_v32  ;;  %v5758_v22 = vld [vmem:[#allocation13 + $0x1e8] sm:$0xf0] }
 0x3be   :  { %2485 = vmatpush.bf16.msra.mxu3 %v5733_v16 }
 0x3c0   :  { %2500 = vmatpush.bf16.msrb.mxu0 %v5577_v20  ;;  %2519 = vmatpush.bf16.msrb.mxu1 %v5641_v8  ;;  %v5661_v20 = vor.u32 %v6959_v56, %v5660_v25  ;;  %v5534_v8 = vld [vmem:[#allocation13 + $0x28] sm:$0xf0]  ;;  %v5686_v25 = vld [vmem:[#allocation13 + $0x158] sm:$0xf0]  ;;  %v6980_v56 = vld [vmem:[#allocation13 + $0x1d4] sm:$0xf] }
 0x3c1   :  { %v5537_v34 = vor.u32 %v6926_v26, %v5534_v8 }
 0x3c2   :  { %2467 = vmatpush.bf16.msra.mxu2 %v5661_v20  ;;  %2486 = vmatpush.bf16.msra.mxu3 %v5725_v42  ;;  %v6962_v42 = vld [vmem:[#allocation13 + $0x144] sm:$0xf] }
 0x3c4   :  { %2501 = vmatpush.bf16.msrb.mxu0 %v5569_v46  ;;  %2520 = vmatpush.bf16.msrb.mxu1 %v5633_v54  ;;  %v6957_v46 = vld [vmem:[#allocation13 + $0x114] sm:$0xf0] }
 0x3c5   :  { %v5653_v37 = vor.u32 %v6957_v46, %v5652_v45  ;;  %v5742_v46 = vld [vmem:[#allocation13 + $0x1c8] sm:$0xf0] }
 0x3c6   :  { %2487 = vmatpush.bf16.msra.mxu3 %v5717_v58  ;;  %v6976_v58 = vld [vmem:[#allocation13 + $0x1b4] sm:$0xf] }
 0x3c7   :  { %2468 = vmatpush.bf16.msra.mxu2 %v5653_v37 }
 0x3c8   :  { %2502 = vmatpush.bf16.msrb.mxu0 %v5561_v19  ;;  %2521 = vmatpush.bf16.msrb.mxu1 %v5625_v62  ;;  %v5593_v19 = vor.u32 %v6940_v63, %v5590_v23  ;;  %v5644_v62 = vld [vmem:[#allocation13 + $0x100] sm:$0xf]  ;;  %v5734_v63 = vld [vmem:[#allocation13 + $0x1b8] sm:$0xf0] }
 0x3c9   :  { %v5645_v6 = vor.u32 %v6955_v21, %v5644_v62  ;;  %v5662_v62 = vld [vmem:[#allocation13 + $0x128] sm:$0xf0]  ;;  %v6974_v21 = vld [vmem:[#allocation13 + $0x1a4] sm:$0xf] }
 0x3cb   :  { %2469 = vmatpush.bf16.msra.mxu2 %v5645_v6  ;;  %v6956_v6 = vld [vmem:[#allocation13 + $0x114] sm:$0xf] }
 0x3cc   :  { %2503 = vmatpush.bf16.msrb.mxu0 %v5553_v5  ;;  %2522 = vmatpush.bf16.msrb.mxu1 %v5617_v1  ;;  %v6938_v5 = vld [vmem:[#allocation13 + $0x84] sm:$0xf]  ;;  %v6968_v1 = vld [vmem:[#allocation13 + $0x174] sm:$0xf] }
 0x3cd   :  { %v5585_v27 = vor.u32 %v6938_v5, %v5582_v39  ;;  %v5705_v14 = vor.u32 %v6968_v1, %v5702_v10  ;;  %v5646_v1 = vld [vmem:[#allocation13 + $0x108] sm:$0xf0] }
 0x3cf   :  { %2538 = vmatpush.bf16.msrb.mxu2 %v5705_v14  ;;  %v5710_v14 = vld [vmem:[#allocation13 + $0x188] sm:$0xf0] }
 0x3d0   :  { %2504 = vmatpush.bf16.msrb.mxu0 %v5545_v55  ;;  %2523 = vmatpush.bf16.msrb.mxu1 %v5609_v7 }
 0x3d3   :  { %2539 = vmatpush.bf16.msrb.mxu2 %v5697_v13 }
 0x3d4   :  { %2505 = vmatpush.bf16.msrb.mxu0 %v5537_v34  ;;  %v5678_v34 = vld [vmem:[#allocation13 + $0x148] sm:$0xf0] }
 0x3d5   :  { %v5681_v45 = vor.u32 %v6962_v42, %v5678_v34 }
 0x3d8   :  { %2506 = vmatpush.bf16.msrb.mxu0 %v5529_v61  ;;  %v5673_v61 = vor.u32 %v6960_v57, %v5670_v31 }
 0x3f6   :  { %v1695_v43 = vpop.f32.mrf.mxu0  ;;  %v1708_v44 = vpop.f32.mrf.mxu1 }
 0x3f7   :  { %v1992_v15 = vpack.c.bf16 %v1708_v44, %v1695_v43  ;;  %v5601_v44 = vor.u32 %v6942_v35, %v5598_v36  ;;  %v6978_v35 = vld [vmem:[#allocation13 + $0x1c4] sm:$0xf] }
 0x3f8   :  { %v5745_v50 = vor.u32 %v6978_v35, %v5742_v46 }
 0x3f9   :  { %v2004_v33 = vunpack.c.l.b16 %v1992_v15  ;;  %v2005_v41 = vunpack.c.h.b16 %v1992_v15  ;;  %2524 = vmatpush.bf16.msrb.mxu1 %v5601_v44  ;;  %v6982_v15 = vld [vmem:[#allocation13 + $0x1e4] sm:$0xf] }
 0x3fa   :  { %v5761_v7 = vor.u32 %v6982_v15, %v5758_v22  ;;  %v5713_v15 = vor.u32 %v6970_v11, %v5710_v14 }
 0x3fd   :  { %2525 = vmatpush.bf16.msrb.mxu1 %v5593_v19 }
 0x3fe   :  { %v1697_v49 = vpop.f32.mrf.mxu0  ;;  %v1710_v0 = vpop.f32.mrf.mxu1 }
 0x3ff   :  { %v5518_v49 = vld [vmem:[#allocation13 + $0x8] sm:$0xf0]  ;;  %v5709_v0 = vor.u32 %v6971_v24, %v5708_v48  ;;  %v5654_v24 = vld [vmem:[#allocation13 + $0x118] sm:$0xf0] }
 0x400   :  { %v5521_v47 = vor.u32 %v6922_v40, %v5518_v49  ;;  %v5657_v5 = vor.u32 %v6956_v6, %v5654_v24  ;;  %v2584_v24 = vld [vmem:[#allocation14] sm:$0x3] }
 0x401   :  { %2488 = vmatpush.bf16.msra.mxu3 %v5709_v0  ;;  %2526 = vmatpush.bf16.msrb.mxu1 %v5585_v27  ;;  %v6972_v0 = vld [vmem:[#allocation13 + $0x194] sm:$0xf]  ;;  %v6954_v27 = vld [vmem:[#allocation13 + $0x104] sm:$0xf] }
 0x402   :  { %2507 = vmatpush.bf16.msrb.mxu0 %v5521_v47  ;;  %v5718_v47 = vld [vmem:[#allocation13 + $0x198] sm:$0xf0]  ;;  %v5649_v32 = vor.u32 %v6954_v27, %v5646_v1  ;;  %v2586_v27 = vperm.slane %v2584_v24, 0 }
 0x403   :  { %v5721_v39 = vor.u32 %v6972_v0, %v5718_v47  ;;  %v7311_v1 = vld [vmem:[#allocation2] sm:$0xff] }
 0x404   :  { %v1735_v29 = vpop.f32.mrf.mxu2  ;;  %v1748_v17 = vpop.f32.mrf.mxu3 }
 0x405   :  { %v1993_v2 = vpack.c.bf16 %v1748_v17, %v1735_v29  ;;  %2557 = vmatpush.bf16.msrb.mxu3 %v5769_v9  ;;  %v6964_v17 = vld [vmem:[#allocation13 + $0x154] sm:$0xf] }
 0x406   :  { %v5689_v60 = vor.u32 %v6964_v17, %v5686_v25 }
 0x407   :  { %v2006_v59 = vunpack.c.l.b16 %v1993_v2  ;;  %v2007_v43 = vunpack.c.h.b16 %v1993_v2  ;;  %v5750_v2 = vld [vmem:[#allocation13 + $0x1d8] sm:$0xf0] }
 0x408   :  { %v5753_v26 = vor.u32 %v6980_v56, %v5750_v2  ;;  %2540 = vmatpush.bf16.msrb.mxu2 %v5689_v60 }
 0x409   :  { %v8014_v53 = vpack.c.b16 %v2006_v59, %v2004_v33  ;;  %v8016_v54 = vpack.c.b16 %v2007_v43, %v2005_v41  ;;  %2558 = vmatpush.bf16.msrb.mxu3 %v5761_v7 }
 0x40b   :  { %2432 = vmatmul.bf16.vlgmr.msra.gmra.mxu0 %v8014_v53  ;;  %2451 = vmatmul.bf16.vlgmr.msra.gmra.mxu1 %v8016_v54 }
 0x40c   :  { %v1737_v4 = vpop.f32.mrf.mxu2  ;;  %v1750_v28 = vpop.f32.mrf.mxu3  ;;  %2541 = vmatpush.bf16.msrb.mxu2 %v5681_v45 }
 0x40d   :  { %v1775_v51 = vpop.f32.mrf.mxu0  ;;  %v1788_v52 = vpop.f32.mrf.mxu1  ;;  %2559 = vmatpush.bf16.msrb.mxu3 %v5753_v26  ;;  %v5737_v4 = vor.u32 %v6976_v58, %v5734_v63  ;;  %v6958_v28 = vld [vmem:[#allocation13 + $0x124] sm:$0xf] }
 0x40e   :  { %v1994_v29 = vpack.c.bf16 %v1788_v52, %v1775_v51  ;;  %v5665_v48 = vor.u32 %v6958_v28, %v5662_v62  ;;  %v5726_v51 = vld [vmem:[#allocation13 + $0x1a8] sm:$0xf0] }
 0x40f   :  { %v5729_v52 = vor.u32 %v6974_v21, %v5726_v51 }
 0x410   :  { %v2008_v33 = vunpack.c.l.b16 %v1994_v29  ;;  %v2009_v36 = vunpack.c.h.b16 %v1994_v29  ;;  %2542 = vmatpush.bf16.msrb.mxu2 %v5673_v61 }
 0x411   :  { %2560 = vmatpush.bf16.msrb.mxu3 %v5745_v50 }
 0x414   :  { %2543 = vmatpush.bf16.msrb.mxu2 %v5665_v48 }
 0x415   :  { %v1777_v16 = vpop.f32.mrf.mxu0  ;;  %v1790_v55 = vpop.f32.mrf.mxu1  ;;  %2561 = vmatpush.bf16.msrb.mxu3 %v5737_v4 }
 0x418   :  { %2544 = vmatpush.bf16.msrb.mxu2 %v5657_v5 }
 0x419   :  { %2562 = vmatpush.bf16.msrb.mxu3 %v5729_v52 }
 0x41a   :  { %v1815_v20 = vpop.f32.mrf.mxu2  ;;  %v1828_v3 = vpop.f32.mrf.mxu3 }
 0x41b   :  { %v1995_v8 = vpack.c.bf16 %v1828_v3, %v1815_v20 }
 0x41c   :  { %2545 = vmatpush.bf16.msrb.mxu2 %v5649_v32 }
 0x41d   :  { %v2010_v41 = vunpack.c.l.b16 %v1995_v8  ;;  %v2011_v59 = vunpack.c.h.b16 %v1995_v8  ;;  %v1855_v43 = vpop.f32.mrf.mxu0  ;;  %v1868_v44 = vpop.f32.mrf.mxu1  ;;  %2563 = vmatpush.bf16.msrb.mxu3 %v5721_v39 }
 0x41e   :  { %v1996_v10 = vpack.c.bf16 %v1868_v44, %v1855_v43 }
 0x41f   :  { %v8020_v37 = vpack.c.b16 %v2010_v41, %v2008_v33  ;;  %v8022_v38 = vpack.c.b16 %v2011_v59, %v2009_v36 }
 0x420   :  { %v2024_v16 = vunpack.c.l.b16 %v1996_v10  ;;  %v2025_v55 = vunpack.c.h.b16 %v1996_v10 }
 0x421   :  { %2437 = vmatmul.bf16.gmra.mxu0 %v8020_v37  ;;  %2456 = vmatmul.bf16.gmra.mxu1 %v8022_v38 }
 0x422   :  { %v1817_v23 = vpop.f32.mrf.mxu2  ;;  %v1830_v19 = vpop.f32.mrf.mxu3  ;;  %2564 = vmatpush.bf16.msrb.mxu3 %v5713_v15 }
 0x425   :  { %v1857_v40 = vpop.f32.mrf.mxu0  ;;  %v1870_v49 = vpop.f32.mrf.mxu1 }
 0x42a   :  { %v1895_v30 = vpop.f32.mrf.mxu2  ;;  %v1908_v9 = vpop.f32.mrf.mxu3 }
 0x42b   :  { %v1997_v12 = vpack.c.bf16 %v1908_v9, %v1895_v30  ;;  %v2587_v30 = vperm.slane %v2584_v24, 1  ;;  %v7312_v9 = vld [vmem:[#allocation2 + $0x8] sm:$0xff] }
 0x42d   :  { %v2026_v13 = vunpack.c.l.b16 %v1997_v12  ;;  %v2027_v22 = vunpack.c.h.b16 %v1997_v12  ;;  %v1935_v7 = vpop.f32.mrf.mxu0  ;;  %v1948_v29 = vpop.f32.mrf.mxu1 }
 0x42e   :  { %v1998_v3 = vpack.c.bf16 %v1948_v29, %v1935_v7 }
 0x42f   :  { %v2032_v17 = vpack.c.b16 %v2026_v13, %v2024_v16  ;;  %v2033_v25 = vpack.c.b16 %v2027_v22, %v2025_v55 }
 0x430   :  { %v2028_v42 = vunpack.c.l.b16 %v1998_v3  ;;  %v2029_v34 = vunpack.c.h.b16 %v1998_v3 }
 0x431   :  { %2470 = vmatmul.bf16.vlgmr.msra.gmra.mxu2 %v2032_v17  ;;  %2489 = vmatmul.bf16.vlgmr.msra.gmra.mxu3 %v2033_v25 }
 0x432   :  { %2508 = vmatmul.bf16.vlgmr.msrb.gmra.mxu0 %v8014_v53  ;;  %2527 = vmatmul.bf16.vlgmr.msrb.gmra.mxu1 %v8016_v54  ;;  %v1897_v56 = vpop.f32.mrf.mxu2  ;;  %v1910_v60 = vpop.f32.mrf.mxu3 }
 0x433   :  { %v7313_v60 = vld [vmem:[#allocation2 + $0x10] sm:$0xff] }
 0x435   :  { %v1937_v2 = vpop.f32.mrf.mxu0  ;;  %v1950_v20 = vpop.f32.mrf.mxu1 }
 0x43a   :  { %v1975_v26 = vpop.f32.mrf.mxu2  ;;  %v1988_v8 = vpop.f32.mrf.mxu3 }
 0x43b   :  { %v1999_v33 = vpack.c.bf16 %v1988_v8, %v1975_v26  ;;  %v7314_v26 = vld [vmem:[#allocation2 + $0x18] sm:$0xff] }
 0x43d   :  { %v2030_v35 = vunpack.c.l.b16 %v1999_v33  ;;  %v2031_v36 = vunpack.c.h.b16 %v1999_v33 }
 0x43f   :  { %v2034_v41 = vpack.c.b16 %v2030_v35, %v2028_v42  ;;  %v2035_v59 = vpack.c.b16 %v2031_v36, %v2029_v34 }
 0x441   :  { %2475 = vmatmul.bf16.gmra.mxu2 %v2034_v41  ;;  %2494 = vmatmul.bf16.gmra.mxu3 %v2035_v59 }
 0x442   :  { %2513 = vmatmul.bf16.gmra.mxu0 %v8020_v37  ;;  %2532 = vmatmul.bf16.gmra.mxu1 %v8022_v38  ;;  %v1977_v53 = vpop.f32.mrf.mxu2  ;;  %v1990_v54 = vpop.f32.mrf.mxu3 }
 0x451   :  { %2546 = vmatmul.bf16.vlgmr.msrb.gmra.mxu2 %v2032_v17  ;;  %2565 = vmatmul.bf16.vlgmr.msrb.gmra.mxu3 %v2033_v25 }
 0x461   :  { %2551 = vmatmul.bf16.gmra.mxu2 %v2034_v41  ;;  %2570 = vmatmul.bf16.gmra.mxu3 %v2035_v59 }
 0x488   :  { %v2433_v43 = vpop.f32.mrf.mxu0  ;;  %v2452_v44 = vpop.f32.mrf.mxu1 }
 0x489   :  { %v2453_v48 = vadd.f32 %v2452_v44, %v2433_v43  ;;  %v7315_v43 = vld [vmem:[#allocation2 + $0x20] sm:$0xff] }
 0x490   :  { %v2435_v45 = vpop.f32.mrf.mxu0  ;;  %v2454_v46 = vpop.f32.mrf.mxu1 }
 0x491   :  { %v2455_v5 = vadd.f32 %v2454_v46, %v2435_v45 }
 0x49e   :  { %v2438_v31 = vpop.f32.mrf.mxu0  ;;  %v2457_v58 = vpop.f32.mrf.mxu1 }
 0x49f   :  { %v2458_v7 = vadd.f32 %v2457_v58, %v2438_v31  ;;  %v7316_v31 = vld [vmem:[#allocation2 + $0x28] sm:$0xff] }
 0x4a6   :  { %v2440_v23 = vpop.f32.mrf.mxu0  ;;  %v2459_v37 = vpop.f32.mrf.mxu1 }
 0x4a7   :  { %v2460_v59 = vadd.f32 %v2459_v37, %v2440_v23 }
 0x4af   :  { %v2509_v4 = vpop.f32.mrf.mxu0  ;;  %v2528_v28 = vpop.f32.mrf.mxu1 }
 0x4b0   :  { %v2529_v52 = vadd.f32 %v2528_v28, %v2509_v4 }
 0x4b4   :  { %v2471_v50 = vpop.f32.mrf.mxu2  ;;  %v2490_v57 = vpop.f32.mrf.mxu3 }
 0x4b5   :  { %v2472_v51 = vadd.f32 %v2471_v50, %v2453_v48  ;;  %v7317_v48 = vld [vmem:[#allocation2 + $0x30] sm:$0xff] }
 0x4b7   :  { %v2491_v6 = vadd.f32 %v2490_v57, %v2472_v51  ;;  %v2511_v40 = vpop.f32.mrf.mxu0  ;;  %v2530_v49 = vpop.f32.mrf.mxu1 }
 0x4b8   :  { %v2531_v15 = vadd.f32 %v2530_v49, %v2511_v40 }
 0x4b9   :  { %v2576_v10 = vadd.f32 %v7311_v1, %v2491_v6 }
 0x4bb   :  { %v8030_v32 = vadd.f32 %v2586_v27, %v2576_v10 }
 0x4bc   :  { %v2473_v61 = vpop.f32.mrf.mxu2  ;;  %v2492_v63 = vpop.f32.mrf.mxu3 }
 0x4bd   :  { %v2474_v11 = vadd.f32 %v2473_v61, %v2455_v5 }
 0x4bf   :  { %v2493_v16 = vadd.f32 %v2492_v63, %v2474_v11  ;;  %v2514_v25 = vpop.f32.mrf.mxu0  ;;  %v2533_v56 = vpop.f32.mrf.mxu1 }
 0x4c0   :  { %v2534_v42 = vadd.f32 %v2533_v56, %v2514_v25 }
 0x4c1   :  { %v2578_v2 = vadd.f32 %v7313_v60, %v2493_v16 }
 0x4c3   :  { %v8036_v33 = vadd.f32 %v2586_v27, %v2578_v2 }
 0x4c4   :  { %v2476_v19 = vpop.f32.mrf.mxu2  ;;  %v2495_v38 = vpop.f32.mrf.mxu3 }
 0x4c5   :  { %v2477_v20 = vadd.f32 %v2476_v19, %v2458_v7 }
 0x4c7   :  { %v2496_v34 = vadd.f32 %v2495_v38, %v2477_v20  ;;  %v2516_v50 = vpop.f32.mrf.mxu0  ;;  %v2535_v57 = vpop.f32.mrf.mxu1 }
 0x4c8   :  { %v2536_v63 = vadd.f32 %v2535_v57, %v2516_v50  ;;  %v5964_v57 = vld [vmem:[#allocation16 + $0x180] sm:$0xf] }
 0x4c9   :  { %v2580_v44 = vadd.f32 %v7315_v43, %v2496_v34  ;;  %v7046_v34 = vld [vmem:[#allocation16 + $0x1dc] sm:$0xf0] }
 0x4cb   :  { %v8042_v61 = vadd.f32 %v2586_v27, %v2580_v44 }
 0x4cc   :  { %v2478_v62 = vpop.f32.mrf.mxu2  ;;  %v2497_v21 = vpop.f32.mrf.mxu3 }
 0x4cd   :  { %v2479_v45 = vadd.f32 %v2478_v62, %v2460_v59  ;;  %v7110_v59 = vld [vmem:[#allocation16 + $0x3dc] sm:$0xf0] }
 0x4cf   :  { %v2498_v19 = vadd.f32 %v2497_v21, %v2479_v45  ;;  %v7106_v45 = vld [vmem:[#allocation16 + $0x3c4] sm:$0xf] }
 0x4d1   :  { %v2582_v62 = vadd.f32 %v7317_v48, %v2498_v19  ;;  %v7102_v19 = vld [vmem:[#allocation16 + $0x39c] sm:$0xf0]  ;;  %v7098_v48 = vld [vmem:[#allocation16 + $0x384] sm:$0xf] }
 0x4d3   :  { %v8048_v24 = vadd.f32 %v2586_v27, %v2582_v62  ;;  %v6222_v62 = vld [vmem:[#allocation16 + $0x3a0] sm:$0xf0] }
 0x4d4   :  { %v2547_v0 = vpop.f32.mrf.mxu2  ;;  %v2566_v47 = vpop.f32.mrf.mxu3 }
 0x4d5   :  { %v2548_v39 = vadd.f32 %v2547_v0, %v2529_v52  ;;  %v7318_v52 = vld [vmem:[#allocation2 + $0x38] sm:$0xff] }
 0x4d7   :  { %v2567_v14 = vadd.f32 %v2566_v47, %v2548_v39 }
 0x4d9   :  { %v2577_v12 = vadd.f32 %v7312_v9, %v2567_v14 }
 0x4db   :  { %v8032_v55 = vadd.f32 %v2587_v30, %v2577_v12 }
 0x4dc   :  { %v2549_v13 = vpop.f32.mrf.mxu2  ;;  %v2568_v22 = vpop.f32.mrf.mxu3 }
 0x4dd   :  { %v2550_v29 = vadd.f32 %v2549_v13, %v2531_v15  ;;  %v2600_v17 = vadd.f32 %v8032_v55, %v8030_v32 }
 0x4df   :  { %v2569_v3 = vadd.f32 %v2568_v22, %v2550_v29  ;;  %2601 = vadd.xlane.f32.xlu0 %v2600_v17 }
 0x4e1   :  { %v2579_v8 = vadd.f32 %v7314_v26, %v2569_v3 }
 0x4e3   :  { %v8038_v35 = vadd.f32 %v2587_v30, %v2579_v8 }
 0x4e4   :  { %v2552_v36 = vpop.f32.mrf.mxu2  ;;  %v2571_v41 = vpop.f32.mrf.mxu3 }
 0x4e5   :  { %v2553_v53 = vadd.f32 %v2552_v36, %v2534_v42  ;;  %v2603_v54 = vadd.f32 %v8038_v35, %v8036_v33  ;;  %v5996_v42 = vld [vmem:[#allocation16 + $0x1c0] sm:$0xf] }
 0x4e6   :  { %v6252_v36 = vld [vmem:[#allocation16 + $0x3c0] sm:$0xf] }
 0x4e7   :  { %v2572_v46 = vadd.f32 %v2571_v41, %v2553_v53  ;;  %2604 = vadd.xlane.f32.xlu1 %v2603_v54  ;;  %v5997_v41 = vor.u32 %v7046_v34, %v5996_v42  ;;  %v7042_v53 = vld [vmem:[#allocation16 + $0x1c4] sm:$0xf]  ;;  %v6253_v43 = vor.u32 %v7110_v59, %v6252_v36  ;;  %v5868_v34 = vld [vmem:[#allocation16 + $0xc0] sm:$0xf] }
 0x4e8   :  { %v5998_v54 = vld [vmem:[#allocation16 + $0x1e0] sm:$0xf0]  ;;  %v7014_v36 = vld [vmem:[#allocation16 + $0xdc] sm:$0xf0] }
 0x4e9   :  { %v2581_v58 = vadd.f32 %v7316_v31, %v2572_v46  ;;  %v6001_v44 = vor.u32 %v7042_v53, %v5998_v54  ;;  %v6254_v46 = vld [vmem:[#allocation16 + $0x3e0] sm:$0xf0]  ;;  %3516 = vmatpush.bf16.msra.mxu0 %v5997_v41  ;;  %3535 = vmatpush.bf16.msra.mxu1 %v6253_v43  ;;  %v7038_v31 = vld [vmem:[#allocation16 + $0x19c] sm:$0xf0]  ;;  %v5869_v59 = vor.u32 %v7014_v36, %v5868_v34 }
 0x4ea   :  { %v6257_v50 = vor.u32 %v7106_v45, %v6254_v46  ;;  %v6124_v41 = vld [vmem:[#allocation16 + $0x2c0] sm:$0xf]  ;;  %v7010_v54 = vld [vmem:[#allocation16 + $0xc4] sm:$0xf] }
 0x4eb   :  { %v8044_v38 = vadd.f32 %v2587_v30, %v2581_v58  ;;  %3554 = vmatpush.bf16.msra.mxu2 %v6001_v44  ;;  %v6220_v58 = vld [vmem:[#allocation16 + $0x380] sm:$0xf]  ;;  %v5870_v43 = vld [vmem:[#allocation16 + $0xe0] sm:$0xf0] }
 0x4ec   :  { %v2554_v23 = vpop.f32.mrf.mxu2  ;;  %v2573_v28 = vpop.f32.mrf.mxu3  ;;  %3573 = vmatpush.bf16.msra.mxu3 %v6257_v50  ;;  %v7078_v53 = vld [vmem:[#allocation16 + $0x2dc] sm:$0xf0]  ;;  %v5873_v45 = vor.u32 %v7010_v54, %v5870_v43  ;;  %v7074_v46 = vld [vmem:[#allocation16 + $0x2c4] sm:$0xf]  ;;  %v7047_v54 = vld [vmem:[#allocation16 + $0x1e4] sm:$0xf0] }
 0x4ed   :  { %v2555_v37 = vadd.f32 %v2554_v23, %v2536_v63  ;;  %v2606_v4 = vadd.f32 %v8044_v38, %v8042_v61  ;;  %v5965_v63 = vor.u32 %v7038_v31, %v5964_v57  ;;  %v7034_v23 = vld [vmem:[#allocation16 + $0x184] sm:$0xf]  ;;  %v6125_v44 = vor.u32 %v7078_v53, %v6124_v41  ;;  %v5836_v31 = vld [vmem:[#allocation16 + $0x80] sm:$0xf]  ;;  %v6004_v53 = vld [vmem:[#allocation16 + $0x1c8] sm:$0xf] }
 0x4ee   :  { %v6126_v50 = vld [vmem:[#allocation16 + $0x2e0] sm:$0xf0]  ;;  %v6260_v43 = vld [vmem:[#allocation16 + $0x3c8] sm:$0xf] }
 0x4ef   :  { %v2574_v51 = vadd.f32 %v2573_v28, %v2555_v37  ;;  %2607 = vadd.xlane.f32.xlu2 %v2606_v4  ;;  %v5966_v37 = vld [vmem:[#allocation16 + $0x1a0] sm:$0xf0]  ;;  %v6221_v4 = vor.u32 %v7102_v19, %v6220_v58  ;;  %3517 = vmatpush.bf16.msra.mxu0 %v5965_v63  ;;  %v6129_v57 = vor.u32 %v7074_v46, %v6126_v50  ;;  %v7006_v58 = vld [vmem:[#allocation16 + $0x9c] sm:$0xf0]  ;;  %v7043_v46 = vld [vmem:[#allocation16 + $0x1cc] sm:$0xf] }
 0x4f0   :  { %v5969_v28 = vor.u32 %v7034_v23, %v5966_v37  ;;  %v6092_v63 = vld [vmem:[#allocation16 + $0x280] sm:$0xf]  ;;  %v5837_v19 = vor.u32 %v7006_v58, %v5836_v31  ;;  %v7002_v37 = vld [vmem:[#allocation16 + $0x84] sm:$0xf]  ;;  %v6006_v50 = vld [vmem:[#allocation16 + $0x1e8] sm:$0xf0] }
 0x4f1   :  { %v2583_v6 = vadd.f32 %v7318_v52, %v2574_v51  ;;  %v6225_v51 = vor.u32 %v7098_v48, %v6222_v62  ;;  %3536 = vmatpush.bf16.msra.mxu1 %v6221_v4  ;;  %v5932_v52 = vld [vmem:[#allocation16 + $0x140] sm:$0xf]  ;;  %v5838_v4 = vld [vmem:[#allocation16 + $0xa0] sm:$0xf0]  ;;  %v6009_v58 = vor.u32 %v7043_v46, %v6006_v50  ;;  %v6164_v50 = vld [vmem:[#allocation16 + $0x308] sm:$0xf] }
 0x4f2   :  { %3555 = vmatpush.bf16.msra.mxu2 %v5969_v28  ;;  %v7070_v23 = vld [vmem:[#allocation16 + $0x29c] sm:$0xf0]  ;;  %v5841_v48 = vor.u32 %v7002_v37, %v5838_v4  ;;  %v7066_v62 = vld [vmem:[#allocation16 + $0x284] sm:$0xf]  ;;  %v5972_v4 = vld [vmem:[#allocation16 + $0x188] sm:$0xf] }
 0x4f3   :  { %v8050_v40 = vadd.f32 %v2587_v30, %v2583_v6  ;;  %v7030_v6 = vld [vmem:[#allocation16 + $0x15c] sm:$0xf0]  ;;  %3574 = vmatpush.bf16.msra.mxu3 %v6225_v51  ;;  %v6093_v28 = vor.u32 %v7070_v23, %v6092_v63  ;;  %v6094_v51 = vld [vmem:[#allocation16 + $0x2a0] sm:$0xf0]  ;;  %v7107_v63 = vld [vmem:[#allocation16 + $0x3cc] sm:$0xf] }
 0x4f4   :  { %v7050_v34 = vld [vmem:[#allocation16 + $0x204] sm:$0xf] }
 0x4f5   :  { %v2609_v21 = vadd.f32 %v8050_v40, %v8048_v24  ;;  %v6030_v36 = vld [vmem:[#allocation16 + $0x220] sm:$0xf0] }
 0x4f7   :  { %2610 = vadd.xlane.f32.xlu0 %v2609_v21  ;;  %v6188_v21 = vld [vmem:[#allocation16 + $0x340] sm:$0xf] }
 0x552   :  { %v2602_v49 = vpop.xlane.xlu0 %2601 }
 0x553   :  { %v2612_v0 = vmul.f32 %v2602_v49, %v7720_v18  ;;  %v5933_v49 = vor.u32 %v7030_v6, %v5932_v52  ;;  %v6097_v52 = vor.u32 %v7066_v62, %v6094_v51  ;;  %v5804_v6 = vld [vmem:[#allocation16 + $0x40] sm:$0xf] }
 0x555   :  { %v8056_v47 = vsub.f32 %v8030_v32, %v2612_v0  ;;  %v8059_v5 = vsub.f32 %v8032_v55, %v2612_v0  ;;  %v7094_v0 = vld [vmem:[#allocation16 + $0x35c] sm:$0xf0]  ;;  %3518 = vmatpush.bf16.msra.mxu0 %v5933_v49 }
 0x556   :  { %v6060_v49 = vld [vmem:[#allocation16 + $0x240] sm:$0xf] }
 0x557   :  { %v2624_v39 = vmul.f32 %v8056_v47, %v8056_v47  ;;  %v2625_v27 = vmul.f32 %v8059_v5, %v8059_v5 }
 0x559   :  { %v2632_v1 = vadd.f32 %v2625_v27, %v2624_v39  ;;  %v7026_v39 = vld [vmem:[#allocation16 + $0x144] sm:$0xf] }
 0x55a   :  { %v2605_v10 = vpop.xlane.xlu1 %2604  ;;  %v5934_v27 = vld [vmem:[#allocation16 + $0x160] sm:$0xf0] }
 0x55b   :  { %v2613_v11 = vmul.f32 %v2605_v10, %v7720_v18  ;;  %2633 = vadd.xlane.f32.xlu1 %v2632_v1  ;;  %v6189_v1 = vor.u32 %v7094_v0, %v6188_v21  ;;  %v5937_v10 = vor.u32 %v7026_v39, %v5934_v27  ;;  %v6998_v21 = vld [vmem:[#allocation16 + $0x5c] sm:$0xf0]  ;;  %v6994_v27 = vld [vmem:[#allocation16 + $0x44] sm:$0xf] }
 0x55c   :  { %v5805_v0 = vor.u32 %v6998_v21, %v5804_v6  ;;  %v7062_v39 = vld [vmem:[#allocation16 + $0x25c] sm:$0xf0]  ;;  %v7103_v6 = vld [vmem:[#allocation16 + $0x3a4] sm:$0xf0]  ;;  %v7035_v21 = vld [vmem:[#allocation16 + $0x18c] sm:$0xf] }
 0x55d   :  { %v8067_v14 = vsub.f32 %v8036_v33, %v2613_v11  ;;  %v8070_v30 = vsub.f32 %v8038_v35, %v2613_v11  ;;  %v7090_v11 = vld [vmem:[#allocation16 + $0x344] sm:$0xf]  ;;  %3537 = vmatpush.bf16.msra.mxu1 %v6189_v1  ;;  %3556 = vmatpush.bf16.msra.mxu2 %v5937_v10 }
 0x55e   :  { %v5806_v1 = vld [vmem:[#allocation16 + $0x60] sm:$0xf0] }
 0x55f   :  { %v2626_v9 = vmul.f32 %v8067_v14, %v8067_v14  ;;  %v2627_v12 = vmul.f32 %v8070_v30, %v8070_v30 }
 0x561   :  { %v2635_v15 = vadd.f32 %v2627_v12, %v2626_v9  ;;  %v6190_v9 = vld [vmem:[#allocation16 + $0x360] sm:$0xf0] }
 0x562   :  { %v2608_v16 = vpop.xlane.xlu2 %2607  ;;  %v6193_v12 = vor.u32 %v7090_v11, %v6190_v9  ;;  %v6061_v11 = vor.u32 %v7062_v39, %v6060_v49  ;;  %v5809_v9 = vor.u32 %v6994_v27, %v5806_v1  ;;  %v5974_v39 = vld [vmem:[#allocation16 + $0x1a8] sm:$0xf0] }
 0x563   :  { %v2614_v13 = vmul.f32 %v2608_v16, %v7720_v18  ;;  %2636 = vadd.xlane.f32.xlu2 %v2635_v15  ;;  %v5900_v15 = vld [vmem:[#allocation16 + $0x100] sm:$0xf]  ;;  %v7099_v27 = vld [vmem:[#allocation16 + $0x38c] sm:$0xf] }
 0x564   :  { %v7022_v16 = vld [vmem:[#allocation16 + $0x11c] sm:$0xf0]  ;;  %3575 = vmatpush.bf16.msra.mxu3 %v6193_v12  ;;  %v7058_v12 = vld [vmem:[#allocation16 + $0x244] sm:$0xf]  ;;  %v6230_v1 = vld [vmem:[#allocation16 + $0x3a8] sm:$0xf0] }
 0x565   :  { %v8078_v22 = vsub.f32 %v8042_v61, %v2614_v13  ;;  %v8081_v7 = vsub.f32 %v8044_v38, %v2614_v13  ;;  %v6156_v13 = vld [vmem:[#allocation16 + $0x300] sm:$0xf] }
 0x567   :  { %v2628_v29 = vmul.f32 %v8078_v22, %v8078_v22  ;;  %v2629_v17 = vmul.f32 %v8081_v7, %v8081_v7 }
 0x569   :  { %v2638_v25 = vadd.f32 %v2629_v17, %v2628_v29  ;;  %v5901_v29 = vor.u32 %v7022_v16, %v5900_v15  ;;  %v7086_v17 = vld [vmem:[#allocation16 + $0x31c] sm:$0xf0]  ;;  %v6062_v15 = vld [vmem:[#allocation16 + $0x260] sm:$0xf0] }
 0x56a   :  { %v2611_v56 = vpop.xlane.xlu0 %2610 }
 0x56b   :  { %v2615_v60 = vmul.f32 %v2611_v56, %v7720_v18  ;;  %2639 = vadd.xlane.f32.xlu0 %v2638_v25  ;;  %v7018_v25 = vld [vmem:[#allocation16 + $0x104] sm:$0xf]  ;;  %3519 = vmatpush.bf16.msra.mxu0 %v5901_v29  ;;  %v5772_v29 = vld [vmem:[#allocation16] sm:$0xf] }
 0x56c   :  { %v5902_v56 = vld [vmem:[#allocation16 + $0x120] sm:$0xf0] }
 0x56d   :  { %v8089_v2 = vsub.f32 %v8048_v24, %v2615_v60  ;;  %v8092_v20 = vsub.f32 %v8050_v40, %v2615_v60  ;;  %v6157_v60 = vor.u32 %v7086_v17, %v6156_v13  ;;  %v6065_v13 = vor.u32 %v7058_v12, %v6062_v15  ;;  %v6990_v17 = vld [vmem:[#allocation16 + $0x1c] sm:$0xf0]  ;;  %v5940_v12 = vld [vmem:[#allocation16 + $0x148] sm:$0xf] }
 0x56e   :  { %v7031_v15 = vld [vmem:[#allocation16 + $0x164] sm:$0xf0] }
 0x56f   :  { %v2630_v3 = vmul.f32 %v8089_v2, %v8089_v2  ;;  %v2631_v26 = vmul.f32 %v8092_v20, %v8092_v20  ;;  %3538 = vmatpush.bf16.msra.mxu1 %v6157_v60  ;;  %3520 = vmatpush.bf16.msra.mxu0 %v5869_v59  ;;  %v5773_v60 = vor.u32 %v6990_v17, %v5772_v29  ;;  %v7095_v29 = vld [vmem:[#allocation16 + $0x364] sm:$0xf0]  ;;  %v7027_v17 = vld [vmem:[#allocation16 + $0x14c] sm:$0xf] }
 0x570   :  { %v6033_v59 = vor.u32 %v7050_v34, %v6030_v36  ;;  %v6198_v34 = vld [vmem:[#allocation16 + $0x368] sm:$0xf0]  ;;  %v2598_v36 = vld [vmem:[#allocation8] sm:$0x3] }
 0x571   :  { %v2641_v8 = vadd.f32 %v2631_v26, %v2630_v3  ;;  %v5905_v3 = vor.u32 %v7018_v25, %v5902_v56  ;;  %v7082_v26 = vld [vmem:[#allocation16 + $0x304] sm:$0xf]  ;;  %v6028_v25 = vld [vmem:[#allocation16 + $0x200] sm:$0xf] }
 0x573   :  { %2642 = vadd.xlane.f32.xlu1 %v2641_v8  ;;  %v6158_v8 = vld [vmem:[#allocation16 + $0x320] sm:$0xf0]  ;;  %3557 = vmatpush.bf16.msra.mxu2 %v5905_v3  ;;  %v7054_v3 = vld [vmem:[#allocation16 + $0x21c] sm:$0xf0] }
 0x574   :  { %v6161_v42 = vor.u32 %v7082_v26, %v6158_v8  ;;  %3539 = vmatpush.bf16.msra.mxu1 %v6125_v44  ;;  %3521 = vmatpush.bf16.msra.mxu0 %v5837_v19  ;;  %v6986_v26 = vld [vmem:[#allocation16 + $0x4] sm:$0xf]  ;;  %v6029_v8 = vor.u32 %v7054_v3, %v6028_v25  ;;  %v6005_v44 = vor.u32 %v7047_v54, %v6004_v53  ;;  %v6262_v19 = vld [vmem:[#allocation16 + $0x3e8] sm:$0xf0]  ;;  %v5908_v54 = vld [vmem:[#allocation16 + $0x108] sm:$0xf] }
 0x575   :  { %v6265_v37 = vor.u32 %v7107_v63, %v6262_v19  ;;  %v5942_v25 = vld [vmem:[#allocation16 + $0x168] sm:$0xf0] }
 0x576   :  { %3576 = vmatpush.bf16.msra.mxu3 %v6161_v42  ;;  %v5774_v42 = vld [vmem:[#allocation16 + $0x20] sm:$0xf0]  ;;  %v7019_v19 = vld [vmem:[#allocation16 + $0x10c] sm:$0xf] }
 0x577   :  { %3558 = vmatpush.bf16.msra.mxu2 %v5873_v45  ;;  %v5777_v41 = vor.u32 %v6986_v26, %v5774_v42  ;;  %v7111_v45 = vld [vmem:[#allocation16 + $0x3e4] sm:$0xf0]  ;;  %v7091_v42 = vld [vmem:[#allocation16 + $0x34c] sm:$0xf] }
 0x578   :  { %3540 = vmatpush.bf16.msra.mxu1 %v6093_v28  ;;  %3522 = vmatpush.bf16.msra.mxu0 %v5805_v0  ;;  %v6261_v31 = vor.u32 %v7111_v45, %v6260_v43  ;;  %v7039_v28 = vld [vmem:[#allocation16 + $0x1a4] sm:$0xf0] }
 0x579   :  { %v7023_v43 = vld [vmem:[#allocation16 + $0x124] sm:$0xf0] }
 0x57a   :  { %3577 = vmatpush.bf16.msra.mxu3 %v6129_v57  ;;  %v5909_v46 = vor.u32 %v7023_v43, %v5908_v54 }
 0x57b   :  { %3559 = vmatpush.bf16.msra.mxu2 %v5841_v48  ;;  %v6228_v48 = vld [vmem:[#allocation16 + $0x388] sm:$0xf] }
 0x57c   :  { %3541 = vmatpush.bf16.msra.mxu1 %v6061_v11  ;;  %3523 = vmatpush.bf16.msra.mxu0 %v5773_v60  ;;  %v6229_v0 = vor.u32 %v7103_v6, %v6228_v48  ;;  %v6233_v11 = vor.u32 %v7099_v27, %v6230_v1  ;;  %v8123_v48 = vperm.slane %v2598_v36, 1 }
 0x57e   :  { %3578 = vmatpush.bf16.msra.mxu3 %v6097_v52  ;;  %v5973_v52 = vor.u32 %v7039_v28, %v5972_v4  ;;  %v2599_v4 = vld [vmem:[#allocation10] sm:$0x3]  ;;  %v8121_v28 = vperm.slane %v2598_v36, 0 }
 0x57f   :  { %3560 = vmatpush.bf16.msra.mxu2 %v5809_v9 }
 0x580   :  { %3542 = vmatpush.bf16.msra.mxu1 %v6029_v8  ;;  %3592 = vmatpush.bf16.msrb.mxu0 %v6005_v44  ;;  %v5945_v8 = vor.u32 %v7027_v17, %v5942_v25  ;;  %v7075_v17 = vld [vmem:[#allocation16 + $0x2cc] sm:$0xf] }
 0x581   :  { %v6134_v25 = vld [vmem:[#allocation16 + $0x2e8] sm:$0xf0] }
 0x582   :  { %3579 = vmatpush.bf16.msra.mxu3 %v6065_v13  ;;  %v5941_v13 = vor.u32 %v7031_v15, %v5940_v12  ;;  %v8130_v12 = vperm.slane %v2599_v4, 0 }
 0x583   :  { %3561 = vmatpush.bf16.msra.mxu2 %v5777_v41 }
 0x584   :  { %3611 = vmatpush.bf16.msrb.mxu1 %v6261_v31  ;;  %3593 = vmatpush.bf16.msrb.mxu0 %v5973_v52 }
 0x586   :  { %3580 = vmatpush.bf16.msra.mxu3 %v6033_v59  ;;  %v6201_v59 = vor.u32 %v7091_v42, %v6198_v34 }
 0x587   :  { %3630 = vmatpush.bf16.msrb.mxu2 %v6009_v58 }
 0x588   :  { %3612 = vmatpush.bf16.msrb.mxu1 %v6229_v0  ;;  %3594 = vmatpush.bf16.msrb.mxu0 %v5941_v13  ;;  %v7015_v0 = vld [vmem:[#allocation16 + $0xe4] sm:$0xf0] }
 0x58a   :  { %3649 = vmatpush.bf16.msrb.mxu3 %v6265_v37  ;;  %v7083_v37 = vld [vmem:[#allocation16 + $0x30c] sm:$0xf] }
 0x58c   :  { %3595 = vmatpush.bf16.msrb.mxu0 %v5909_v46  ;;  %v5846_v46 = vld [vmem:[#allocation16 + $0xa8] sm:$0xf0] }
 0x58e   :  { %3650 = vmatpush.bf16.msrb.mxu3 %v6233_v11  ;;  %v7011_v11 = vld [vmem:[#allocation16 + $0xcc] sm:$0xf] }
 0x592   :  { %3651 = vmatpush.bf16.msrb.mxu3 %v6201_v59  ;;  %v7003_v59 = vld [vmem:[#allocation16 + $0x8c] sm:$0xf] }
 0x5ce   :  { %v2634_v10 = vpop.xlane.xlu1 %2633 }
 0x5cf   :  { %v2644_v16 = vmul.f32 %v2634_v10, %v7720_v18  ;;  %v5977_v10 = vor.u32 %v7035_v21, %v5974_v39  ;;  %v6132_v39 = vld [vmem:[#allocation16 + $0x2c8] sm:$0xf] }
 0x5d1   :  { %v8099_v56 = vadd.f32 1e-05, %v2644_v16  ;;  %v6196_v16 = vld [vmem:[#allocation16 + $0x348] sm:$0xf]  ;;  %3631 = vmatpush.bf16.msrb.mxu2 %v5977_v10 }
 0x5d2   :  { %v6197_v26 = vor.u32 %v7095_v29, %v6196_v16  ;;  %v7079_v10 = vld [vmem:[#allocation16 + $0x2e4] sm:$0xf0] }
 0x5d3   :  { %7303 = vrsqrt.f32 %v8099_v56  ;;  %vm2658_vm1 = vweird.f32 %v8099_v56  ;;  %v6133_v13 = vor.u32 %v7079_v10, %v6132_v39  ;;  %v7059_v39 = vld [vmem:[#allocation16 + $0x24c] sm:$0xf] }
 0x5d4   :  { %3613 = vmatpush.bf16.msrb.mxu1 %v6197_v26  ;;  %v5844_v26 = vld [vmem:[#allocation16 + $0x88] sm:$0xf] }
 0x5d5   :  { %3632 = vmatpush.bf16.msrb.mxu2 %v5945_v8  ;;  %v6100_v8 = vld [vmem:[#allocation16 + $0x288] sm:$0xf] }
 0x5d6   :  { %v2637_v57 = vpop.xlane.xlu2 %2636 }
 0x5d7   :  { %v2645_v23 = vmul.f32 %v2637_v57, %v7720_v18  ;;  %v7087_v57 = vld [vmem:[#allocation16 + $0x324] sm:$0xf0] }
 0x5d8   :  { %v6165_v63 = vor.u32 %v7087_v57, %v6164_v50  ;;  %v7067_v50 = vld [vmem:[#allocation16 + $0x28c] sm:$0xf] }
 0x5d9   :  { %v8103_v62 = vpop.eup %7303  ;;  %v8105_v51 = vadd.f32 1e-05, %v2645_v23  ;;  %v5910_v23 = vld [vmem:[#allocation16 + $0x128] sm:$0xf0] }
 0x5da   :  { %v2653_v49 = vmul.f32 %v8103_v62, %v8099_v56  ;;  %vm2659_vm0 = vweird.f32 %v8103_v62  ;;  %v5913_v52 = vor.u32 %v7019_v19, %v5910_v23  ;;  %v6166_v56 = vld [vmem:[#allocation16 + $0x328] sm:$0xf0]  ;;  %3614 = vmatpush.bf16.msrb.mxu1 %v6165_v63  ;;  %v5812_v63 = vld [vmem:[#allocation16 + $0x48] sm:$0xf]  ;;  %v8144_v23 = vperm.slane %v2599_v4, 1 }
 0x5db   :  { %7305 = vrsqrt.f32 %v8105_v51  ;;  %vm2660_vm2 = vmor %vm2658_vm1, %vm2659_vm0  ;;  %v6169_v21 = vor.u32 %v7083_v37, %v6166_v56  ;;  %vm2668_vm4 = vweird.f32 %v8105_v51  ;;  %v6999_v19 = vld [vmem:[#allocation16 + $0x64] sm:$0xf0]  ;;  %v6995_v4 = vld [vmem:[#allocation16 + $0x4c] sm:$0xf] }
 0x5dc   :  { %v2654_v9 = vmul.f32 %v8103_v62, %v2653_v49  ;;  %v5876_v49 = vld [vmem:[#allocation16 + $0xc8] sm:$0xf]  ;;  %3633 = vmatpush.bf16.msrb.mxu2 %v5913_v52  ;;  %v5813_v37 = vor.u32 %v6999_v19, %v5812_v63  ;;  %v7048_v19 = vld [vmem:[#allocation16 + $0x1ec] sm:$0xf0] }
 0x5dd   :  { %v5877_v1 = vor.u32 %v7015_v0, %v5876_v49  ;;  %3652 = vmatpush.bf16.msrb.mxu3 %v6169_v21  ;;  %v6068_v52 = vld [vmem:[#allocation16 + $0x248] sm:$0xf]  ;;  %v5814_v0 = vld [vmem:[#allocation16 + $0x68] sm:$0xf0] }
 0x5de   :  { %v2655_v60 = vmul.f32 0.5, %v2654_v9  ;;  %v2640_v3 = vpop.xlane.xlu0 %2639  ;;  %v5878_v9 = vld [vmem:[#allocation16 + $0xe8] sm:$0xf0]  ;;  %3615 = vmatpush.bf16.msrb.mxu1 %v6133_v13 }
 0x5df   :  { %v2646_v41 = vmul.f32 %v2640_v3, %v7720_v18  ;;  %v5881_v29 = vor.u32 %v7011_v11, %v5878_v9  ;;  %3596 = vmatpush.bf16.msrb.mxu0 %v5877_v1  ;;  %v6137_v3 = vor.u32 %v7075_v17, %v6134_v25  ;;  %v5817_v11 = vor.u32 %v6995_v4, %v5814_v0  ;;  %v6070_v9 = vld [vmem:[#allocation16 + $0x268] sm:$0xf0]  ;;  %v7055_v17 = vld [vmem:[#allocation16 + $0x224] sm:$0xf0]  ;;  %v6270_v4 = vld [vmem:[#allocation16 + $0x3f0] sm:$0xf0] }
 0x5e0   :  { %v2656_v53 = vsub.f32 1.5, %v2655_v60 }
 0x5e1   :  { %v8113_v44 = vpop.eup %7305  ;;  %v8115_v45 = vadd.f32 1e-05, %v2646_v41  ;;  %v7071_v41 = vld [vmem:[#allocation16 + $0x2a4] sm:$0xf0]  ;;  %3634 = vmatpush.bf16.msrb.mxu2 %v5881_v29  ;;  %3653 = vmatpush.bf16.msrb.mxu3 %v6137_v3 }
 0x5e2   :  { %v2657_v31 = vmul.f32 %v8103_v62, %v2656_v53  ;;  %v2663_v58 = vmul.f32 %v8113_v44, %v8105_v51  ;;  %vm2669_vm3 = vweird.f32 %v8113_v44  ;;  %v7063_v51 = vld [vmem:[#allocation16 + $0x264] sm:$0xf0] }
 0x5e3   :  { %7307 = vrsqrt.f32 %v8115_v45  ;;  %vm2670_vm5 = vmor %vm2668_vm4, %vm2669_vm3  ;;  %v6069_v49 = vor.u32 %v7063_v51, %v6068_v52  ;;  %v6036_v29 = vld [vmem:[#allocation16 + $0x208] sm:$0xf]  ;;  %vm2678_vm7 = vweird.f32 %v8115_v45  ;;  %v7112_v52 = vld [vmem:[#allocation16 + $0x3ec] sm:$0xf0] }
 0x5e4   :  { %v2664_v6 = vmul.f32 %v8113_v44, %v2663_v58  ;;  %v2661_v27 = vsel %vm2660_vm2, %v8103_v62, %v2657_v31  ;;  %v7007_v62 = vld [vmem:[#allocation16 + $0xa4] sm:$0xf0]  ;;  %v5849_v31 = vor.u32 %v7003_v59, %v5846_v46  ;;  %v6102_v58 = vld [vmem:[#allocation16 + $0x2a8] sm:$0xf0]  ;;  %v7044_v51 = vld [vmem:[#allocation16 + $0x1d4] sm:$0xf] }
 0x5e5   :  { %v2692_v42 = vmul.f32 %v2661_v27, %v8056_v47  ;;  %v5845_v36 = vor.u32 %v7007_v62, %v5844_v26  ;;  %v2693_v54 = vmul.f32 %v2661_v27, %v8059_v5  ;;  %v6105_v5 = vor.u32 %v7067_v50, %v6102_v58  ;;  %v6987_v26 = vld [vmem:[#allocation16 + $0xc] sm:$0xf] }
 0x5e6   :  { %v2665_v15 = vmul.f32 0.5, %v2664_v6  ;;  %v2643_v16 = vpop.xlane.xlu1 %2642  ;;  %3635 = vmatpush.bf16.msrb.mxu2 %v5849_v31 }
 0x5e7   :  { %v2647_v60 = vmul.f32 %v2643_v16, %v7720_v18  ;;  %v6101_v18 = vor.u32 %v7071_v41, %v6100_v8  ;;  %3597 = vmatpush.bf16.msrb.mxu0 %v5845_v36  ;;  %v2705_v56 = vmul.f32 %v8121_v28, %v2692_v42  ;;  %v2706_v27 = vmul.f32 %v8123_v48, %v2693_v54  ;;  %v6991_v16 = vld [vmem:[#allocation16 + $0x24] sm:$0xf0]  ;;  %v7051_v8 = vld [vmem:[#allocation16 + $0x20c] sm:$0xf] }
 0x5e8   :  { %v2666_v34 = vsub.f32 1.5, %v2665_v15  ;;  %v5780_v15 = vld [vmem:[#allocation16 + $0x8] sm:$0xf]  ;;  %3654 = vmatpush.bf16.msrb.mxu3 %v6105_v5  ;;  %v6038_v42 = vld [vmem:[#allocation16 + $0x228] sm:$0xf0] }
 0x5e9   :  { %v8135_v53 = vpop.eup %7307  ;;  %v8138_v43 = vadd.f32 1e-05, %v2647_v60  ;;  %3616 = vmatpush.bf16.msrb.mxu1 %v6101_v18  ;;  %v5781_v3 = vor.u32 %v6991_v16, %v5780_v15  ;;  %v2718_v36 = vadd.f32 %v8130_v12, %v2705_v56  ;;  %v2719_v41 = vadd.f32 %v8144_v23, %v2706_v27  ;;  %v6268_v5 = vld [vmem:[#allocation16 + $0x3d0] sm:$0xf]  ;;  %v6014_v56 = vld [vmem:[#allocation16 + $0x1f0] sm:$0xf0] }
 0x5ea   :  { %v2667_v57 = vmul.f32 %v8113_v44, %v2666_v34  ;;  %v2673_v47 = vmul.f32 %v8135_v53, %v8115_v45  ;;  %vm2679_vm6 = vweird.f32 %v8135_v53  ;;  %3636 = vmatpush.bf16.msrb.mxu2 %v5817_v11  ;;  %v6041_v31 = vor.u32 %v7051_v8, %v6038_v42  ;;  %v6012_v45 = vld [vmem:[#allocation16 + $0x1d0] sm:$0xf]  ;;  %v5886_v15 = vld [vmem:[#allocation16 + $0xf0] sm:$0xf0] }
 0x5eb   :  { %7309 = vrsqrt.f32 %v8138_v43  ;;  %3598 = vmatpush.bf16.msrb.mxu0 %v5813_v37  ;;  %vm2680_vm8 = vmor %vm2678_vm7, %vm2679_vm6  ;;  %v6013_v37 = vor.u32 %v7048_v19, %v6012_v45  ;;  %vm2688_vm10 = vweird.f32 %v8138_v43  ;;  %v6236_v11 = vld [vmem:[#allocation16 + $0x390] sm:$0xf] }
 0x5ec   :  { %v2671_v6 = vsel %vm2670_vm5, %v8113_v44, %v2667_v57  ;;  %v2674_v21 = vmul.f32 %v8135_v53, %v2673_v47  ;;  %v6073_v44 = vor.u32 %v7059_v39, %v6070_v9  ;;  %v7104_v16 = vld [vmem:[#allocation16 + $0x3ac] sm:$0xf0] }
 0x5ed   :  { %v2694_v1 = vmul.f32 %v2671_v6, %v8067_v14  ;;  %v2695_v10 = vmul.f32 %v2671_v6, %v8070_v30  ;;  %v5782_v14 = vld [vmem:[#allocation16 + $0x28] sm:$0xf0]  ;;  %3617 = vmatpush.bf16.msrb.mxu1 %v6069_v49  ;;  %v6037_v30 = vor.u32 %v7055_v17, %v6036_v29  ;;  %v7108_v49 = vld [vmem:[#allocation16 + $0x3d4] sm:$0xf]  ;;  %v7096_v42 = vld [vmem:[#allocation16 + $0x36c] sm:$0xf0] }
 0x5ee   :  { %v2675_v13 = vmul.f32 0.5, %v2674_v21  ;;  %3655 = vmatpush.bf16.msrb.mxu3 %v6073_v44  ;;  %v5785_v47 = vor.u32 %v6987_v26, %v5782_v14  ;;  %v6017_v21 = vor.u32 %v7044_v51, %v6014_v56  ;;  %v6273_v27 = vor.u32 %v7108_v49, %v6270_v4  ;;  %v7100_v44 = vld [vmem:[#allocation16 + $0x394] sm:$0xf]  ;;  %v7032_v26 = vld [vmem:[#allocation16 + $0x16c] sm:$0xf0] }
 0x5ef   :  { %v2707_v25 = vmul.f32 %v8121_v28, %v2694_v1  ;;  %v2708_v60 = vmul.f32 %v8123_v48, %v2695_v10  ;;  %3599 = vmatpush.bf16.msrb.mxu0 %v5781_v3  ;;  %v5980_v1 = vld [vmem:[#allocation16 + $0x190] sm:$0xf]  ;;  %v6238_v29 = vld [vmem:[#allocation16 + $0x3b0] sm:$0xf0] }
 0x5f0   :  { %v2676_v62 = vsub.f32 1.5, %v2675_v13  ;;  %3637 = vmatpush.bf16.msrb.mxu2 %v5785_v47  ;;  %v7040_v10 = vld [vmem:[#allocation16 + $0x1ac] sm:$0xf0]  ;;  %v5982_v13 = vld [vmem:[#allocation16 + $0x1b0] sm:$0xf0] }
 0x5f1   :  { %v8158_v34 = vpop.eup %7309  ;;  %v2720_v59 = vadd.f32 %v8130_v12, %v2707_v25  ;;  %v2721_v54 = vadd.f32 %v8144_v23, %v2708_v60  ;;  %3618 = vmatpush.bf16.msrb.mxu1 %v6037_v30  ;;  %v6241_v60 = vor.u32 %v7100_v44, %v6238_v29  ;;  %v5948_v3 = vld [vmem:[#allocation16 + $0x150] sm:$0xf]  ;;  %v6206_v47 = vld [vmem:[#allocation16 + $0x370] sm:$0xf0] }
 0x5f2   :  { %v2677_v18 = vmul.f32 %v8135_v53, %v2676_v62  ;;  %v2683_v46 = vmul.f32 %v8158_v34, %v8138_v43  ;;  %vm2689_vm9 = vweird.f32 %v8158_v34  ;;  %3656 = vmatpush.bf16.msrb.mxu3 %v6041_v31  ;;  %v6237_v43 = vor.u32 %v7104_v16, %v6236_v11  ;;  %v6204_v14 = vld [vmem:[#allocation16 + $0x350] sm:$0xf]  ;;  %v7020_v51 = vld [vmem:[#allocation16 + $0x114] sm:$0xf] }
 0x5f3   :  { %v8168_v50 = vpack.c.bf16 %v2720_v59, %v2718_v36  ;;  %v8170_v57 = vpack.c.bf16 %v2721_v54, %v2719_v41  ;;  %vm8186_vm11 = vmor %vm2688_vm10, %vm2689_vm9  ;;  %v5949_v8 = vor.u32 %v7032_v26, %v5948_v3  ;;  %v7028_v36 = vld [vmem:[#allocation16 + $0x154] sm:$0xf]  ;;  %v6205_v54 = vor.u32 %v7096_v42, %v6204_v14  ;;  %v5916_v31 = vld [vmem:[#allocation16 + $0x110] sm:$0xf] }
 0x5f4   :  { %v2681_v58 = vsel %vm2680_vm8, %v8135_v53, %v2677_v18  ;;  %v2684_v63 = vmul.f32 %v8158_v34, %v2683_v46  ;;  %v6269_v53 = vor.u32 %v7112_v52, %v6268_v5  ;;  %v5950_v41 = vld [vmem:[#allocation16 + $0x170] sm:$0xf0]  ;;  %v7024_v19 = vld [vmem:[#allocation16 + $0x12c] sm:$0xf0] }
 0x5f5   :  { %3524 = vmatmul.bf16.vlgmr.msra.gmra.mxu0 %v8168_v50  ;;  %3543 = vmatmul.bf16.vlgmr.msra.gmra.mxu1 %v8170_v57  ;;  %v2696_v0 = vmul.f32 %v2681_v58, %v8078_v22  ;;  %v2697_v39 = vmul.f32 %v2681_v58, %v8081_v7  ;;  %v5981_v22 = vor.u32 %v7040_v10, %v5980_v1  ;;  %v7036_v7 = vld [vmem:[#allocation16 + $0x194] sm:$0xf]  ;;  %v6172_v5 = vld [vmem:[#allocation16 + $0x310] sm:$0xf] }
 0x5f6   :  { %v2685_v6 = vmul.f32 0.5, %v2684_v63  ;;  %3562 = vmatmul.bf16.vlgmr.msra.gmra.mxu2 %v8168_v50  ;;  %3581 = vmatmul.bf16.vlgmr.msra.gmra.mxu3 %v8170_v57  ;;  %v5985_v25 = vor.u32 %v7036_v7, %v5982_v13  ;;  %v5953_v18 = vor.u32 %v7028_v36, %v5950_v41  ;;  %v7092_v46 = vld [vmem:[#allocation16 + $0x354] sm:$0xf]  ;;  %v5884_v1 = vld [vmem:[#allocation16 + $0xd0] sm:$0xf] }
 0x5f7   :  { %3668 = vmatpush.bf16.msra.mxu0 %v6013_v37  ;;  %3687 = vmatpush.bf16.msra.mxu1 %v6269_v53  ;;  %v2709_v62 = vmul.f32 %v8121_v28, %v2696_v0  ;;  %v2710_v30 = vmul.f32 %v8123_v48, %v2697_v39  ;;  %v6209_v45 = vor.u32 %v7092_v46, %v6206_v47  ;;  %v7088_v37 = vld [vmem:[#allocation16 + $0x32c] sm:$0xf0]  ;;  %v7076_v16 = vld [vmem:[#allocation16 + $0x2d4] sm:$0xf] }
 0x5f8   :  { %v2686_v9 = vsub.f32 1.5, %v2685_v6  ;;  %3706 = vmatpush.bf16.msra.mxu2 %v6017_v21  ;;  %3725 = vmatpush.bf16.msra.mxu3 %v6273_v27  ;;  %v5917_v6 = vor.u32 %v7024_v19, %v5916_v31  ;;  %v6173_v53 = vor.u32 %v7088_v37, %v6172_v5  ;;  %v7084_v21 = vld [vmem:[#allocation16 + $0x314] sm:$0xf]  ;;  %v7016_v10 = vld [vmem:[#allocation16 + $0xec] sm:$0xf0] }
 0x5f9   :  { %v2722_v56 = vadd.f32 %v8130_v12, %v2709_v62  ;;  %v2723_v49 = vadd.f32 %v8144_v23, %v2710_v30  ;;  %v6140_v11 = vld [vmem:[#allocation16 + $0x2d0] sm:$0xf]  ;;  %v6142_v7 = vld [vmem:[#allocation16 + $0x2f0] sm:$0xf0] }
 0x5fa   :  { %v2687_v17 = vmul.f32 %v8158_v34, %v2686_v9  ;;  %v7080_v9 = vld [vmem:[#allocation16 + $0x2ec] sm:$0xf0]  ;;  %v6145_v44 = vor.u32 %v7076_v16, %v6142_v7  ;;  %v7004_v26 = vld [vmem:[#allocation16 + $0x94] sm:$0xf]  ;;  %v7041_v7 = vld [vmem:[#allocation16 + $0x1b4] sm:$0xf0] }
 0x5fb   :  { %3669 = vmatpush.bf16.msra.mxu0 %v5981_v22  ;;  %3688 = vmatpush.bf16.msra.mxu1 %v6237_v43  ;;  %v6141_v22 = vor.u32 %v7080_v9, %v6140_v11  ;;  %v5852_v43 = vld [vmem:[#allocation16 + $0x90] sm:$0xf]  ;;  %v5854_v14 = vld [vmem:[#allocation16 + $0xb0] sm:$0xf0]  ;;  %v6022_v11 = vld [vmem:[#allocation16 + $0x1f8] sm:$0xf0] }
 0x5fc   :  { %v2691_v59 = vsel %vm8186_vm11, %v8158_v34, %v2687_v17  ;;  %3707 = vmatpush.bf16.msra.mxu2 %v5985_v25  ;;  %3726 = vmatpush.bf16.msra.mxu3 %v6241_v60  ;;  %v7008_v29 = vld [vmem:[#allocation16 + $0xac] sm:$0xf0]  ;;  %v7068_v62 = vld [vmem:[#allocation16 + $0x294] sm:$0xf] }
 0x5fd   :  { %v2698_v58 = vmul.f32 %v2691_v59, %v8089_v2  ;;  %v2699_v63 = vmul.f32 %v2691_v59, %v8092_v20  ;;  %v5918_v2 = vld [vmem:[#allocation16 + $0x130] sm:$0xf0]  ;;  %v6108_v17 = vld [vmem:[#allocation16 + $0x290] sm:$0xf]  ;;  %v5853_v60 = vor.u32 %v7008_v29, %v5852_v43  ;;  %v5857_v59 = vor.u32 %v7004_v26, %v5854_v14  ;;  %v6244_v43 = vld [vmem:[#allocation16 + $0x398] sm:$0xf] }
 0x5fe   :  { %v6174_v20 = vld [vmem:[#allocation16 + $0x330] sm:$0xf0]  ;;  %v5921_v39 = vor.u32 %v7020_v51, %v5918_v2  ;;  %v7072_v25 = vld [vmem:[#allocation16 + $0x2ac] sm:$0xf0]  ;;  %v6246_v26 = vld [vmem:[#allocation16 + $0x3b8] sm:$0xf0] }
 0x5ff   :  { %v2711_v52 = vmul.f32 %v8121_v28, %v2698_v58  ;;  %v2712_v34 = vmul.f32 %v8123_v48, %v2699_v63  ;;  %3670 = vmatpush.bf16.msra.mxu0 %v5949_v8  ;;  %3689 = vmatpush.bf16.msra.mxu1 %v6205_v54  ;;  %v6177_v27 = vor.u32 %v7084_v21, %v6174_v20  ;;  %v6110_v30 = vld [vmem:[#allocation16 + $0x2b0] sm:$0xf0]  ;;  %v5820_v8 = vld [vmem:[#allocation16 + $0x50] sm:$0xf]  ;;  %v5956_v14 = vld [vmem:[#allocation16 + $0x158] sm:$0xf] }
 0x600   :  { %3708 = vmatpush.bf16.msra.mxu2 %v5953_v18  ;;  %3727 = vmatpush.bf16.msra.mxu3 %v6209_v45  ;;  %v6109_v3 = vor.u32 %v7072_v25, %v6108_v17  ;;  %v7000_v42 = vld [vmem:[#allocation16 + $0x6c] sm:$0xf0]  ;;  %v6113_v54 = vor.u32 %v7068_v62, %v6110_v30  ;;  %v6996_v18 = vld [vmem:[#allocation16 + $0x54] sm:$0xf]  ;;  %v7037_v17 = vld [vmem:[#allocation16 + $0x19c] sm:$0xf] }
 0x601   :  { %v2724_v4 = vadd.f32 %v8130_v12, %v2711_v52  ;;  %v2725_v0 = vadd.f32 %v8144_v23, %v2712_v34  ;;  %v5885_v12 = vor.u32 %v7016_v10, %v5884_v1  ;;  %v7012_v23 = vld [vmem:[#allocation16 + $0xd4] sm:$0xf]  ;;  %v6076_v36 = vld [vmem:[#allocation16 + $0x250] sm:$0xf]  ;;  %v5821_v47 = vor.u32 %v7000_v42, %v5820_v8  ;;  %v7113_v1 = vld [vmem:[#allocation16 + $0x3f4] sm:$0xf0] }
 0x602   :  { %v5889_v13 = vor.u32 %v7012_v23, %v5886_v15  ;;  %v7064_v41 = vld [vmem:[#allocation16 + $0x26c] sm:$0xf0]  ;;  %v5822_v46 = vld [vmem:[#allocation16 + $0x70] sm:$0xf0]  ;;  %v7045_v10 = vld [vmem:[#allocation16 + $0x1dc] sm:$0xf] }
 0x603   :  { %v8204_v28 = vpack.c.bf16 %v2724_v4, %v2722_v56  ;;  %v8206_v48 = vpack.c.bf16 %v2725_v0, %v2723_v49  ;;  %3671 = vmatpush.bf16.msra.mxu0 %v5917_v6  ;;  %3690 = vmatpush.bf16.msra.mxu1 %v6173_v53  ;;  %v6077_v31 = vor.u32 %v7064_v41, %v6076_v36  ;;  %v7060_v58 = vld [vmem:[#allocation16 + $0x254] sm:$0xf]  ;;  %v5788_v45 = vld [vmem:[#allocation16 + $0x10] sm:$0xf]  ;;  %v6020_v4 = vld [vmem:[#allocation16 + $0x1d8] sm:$0xf] }
 0x604   :  { %3709 = vmatpush.bf16.msra.mxu2 %v5921_v39  ;;  %3728 = vmatpush.bf16.msra.mxu3 %v6177_v27  ;;  %v6078_v63 = vld [vmem:[#allocation16 + $0x270] sm:$0xf0]  ;;  %v6992_v19 = vld [vmem:[#allocation16 + $0x2c] sm:$0xf0]  ;;  %v5825_v52 = vor.u32 %v6996_v18, %v5822_v46  ;;  %v7049_v0 = vld [vmem:[#allocation16 + $0x1f4] sm:$0xf0]  ;;  %v6025_v9 = vor.u32 %v7045_v10, %v6022_v11 }
 0x605   :  { %3529 = vmatmul.bf16.gmra.mxu0 %v8204_v28  ;;  %3548 = vmatmul.bf16.gmra.mxu1 %v8206_v48  ;;  %v6044_v5 = vld [vmem:[#allocation16 + $0x210] sm:$0xf]  ;;  %v6081_v34 = vor.u32 %v7060_v58, %v6078_v63  ;;  %v6988_v51 = vld [vmem:[#allocation16 + $0x14] sm:$0xf]  ;;  %v5789_v56 = vor.u32 %v6992_v19, %v5788_v45  ;;  %v6276_v39 = vld [vmem:[#allocation16 + $0x3d8] sm:$0xf]  ;;  %v6021_v27 = vor.u32 %v7049_v0, %v6020_v4 }
 0x606   :  { %3567 = vmatmul.bf16.gmra.mxu2 %v8204_v28  ;;  %3586 = vmatmul.bf16.gmra.mxu3 %v8206_v48  ;;  %v7056_v37 = vld [vmem:[#allocation16 + $0x22c] sm:$0xf0]  ;;  %v5790_v53 = vld [vmem:[#allocation16 + $0x30] sm:$0xf0]  ;;  %v7109_v23 = vld [vmem:[#allocation16 + $0x3dc] sm:$0xf] }
 0x607   :  { %3672 = vmatpush.bf16.msra.mxu0 %v5885_v12  ;;  %3691 = vmatpush.bf16.msra.mxu1 %v6141_v22  ;;  %v6045_v6 = vor.u32 %v7056_v37, %v6044_v5  ;;  %v7052_v2 = vld [vmem:[#allocation16 + $0x214] sm:$0xf]  ;;  %v5793_v20 = vor.u32 %v6988_v51, %v5790_v53  ;;  %v6277_v12 = vor.u32 %v7113_v1, %v6276_v39  ;;  %v6278_v15 = vld [vmem:[#allocation16 + $0x3f8] sm:$0xf0]  ;;  %v5988_v22 = vld [vmem:[#allocation16 + $0x198] sm:$0xf] }
 0x608   :  { %3710 = vmatpush.bf16.msra.mxu2 %v5889_v13  ;;  %3729 = vmatpush.bf16.msra.mxu3 %v6145_v44  ;;  %v6046_v21 = vld [vmem:[#allocation16 + $0x230] sm:$0xf0]  ;;  %v6281_v16 = vor.u32 %v7109_v23, %v6278_v15  ;;  %v7105_v13 = vld [vmem:[#allocation16 + $0x3b4] sm:$0xf0]  ;;  %v5989_v44 = vor.u32 %v7041_v7, %v5988_v22  ;;  %v5990_v25 = vld [vmem:[#allocation16 + $0x1b8] sm:$0xf0] }
 0x609   :  { %v6049_v49 = vor.u32 %v7052_v2, %v6046_v21  ;;  %v6245_v29 = vor.u32 %v7105_v13, %v6244_v43  ;;  %v7033_v62 = vld [vmem:[#allocation16 + $0x174] sm:$0xf0]  ;;  %v7029_v36 = vld [vmem:[#allocation16 + $0x15c] sm:$0xf] }
 0x60a   :  { %v6212_v8 = vld [vmem:[#allocation16 + $0x358] sm:$0xf]  ;;  %v5958_v41 = vld [vmem:[#allocation16 + $0x178] sm:$0xf0]  ;;  %v5957_v18 = vor.u32 %v7033_v62, %v5956_v14 }
 0x60b   :  { %3673 = vmatpush.bf16.msra.mxu0 %v5853_v60  ;;  %3692 = vmatpush.bf16.msra.mxu1 %v6109_v3  ;;  %v7101_v60 = vld [vmem:[#allocation16 + $0x39c] sm:$0xf]  ;;  %v5993_v3 = vor.u32 %v7037_v17, %v5990_v25  ;;  %v7097_v42 = vld [vmem:[#allocation16 + $0x374] sm:$0xf0] }
 0x60c   :  { %3711 = vmatpush.bf16.msra.mxu2 %v5857_v59  ;;  %3730 = vmatpush.bf16.msra.mxu3 %v6113_v54  ;;  %v6249_v30 = vor.u32 %v7101_v60, %v6246_v26  ;;  %v7093_v59 = vld [vmem:[#allocation16 + $0x35c] sm:$0xf]  ;;  %v6213_v46 = vor.u32 %v7097_v42, %v6212_v8  ;;  %v7025_v63 = vld [vmem:[#allocation16 + $0x134] sm:$0xf0] }
 0x60d   :  { %v6214_v54 = vld [vmem:[#allocation16 + $0x378] sm:$0xf0]  ;;  %v6180_v45 = vld [vmem:[#allocation16 + $0x318] sm:$0xf] }
 0x60e   :  { %v6217_v58 = vor.u32 %v7093_v59, %v6214_v54  ;;  %v7089_v19 = vld [vmem:[#allocation16 + $0x334] sm:$0xf0]  ;;  %v7021_v5 = vld [vmem:[#allocation16 + $0x11c] sm:$0xf] }
 0x60f   :  { %3674 = vmatpush.bf16.msra.mxu0 %v5821_v47  ;;  %3693 = vmatpush.bf16.msra.mxu1 %v6077_v31  ;;  %v5924_v47 = vld [vmem:[#allocation16 + $0x118] sm:$0xf]  ;;  %v5961_v31 = vor.u32 %v7029_v36, %v5958_v41  ;;  %v7085_v51 = vld [vmem:[#allocation16 + $0x31c] sm:$0xf] }
 0x610   :  { %3712 = vmatpush.bf16.msra.mxu2 %v5825_v52  ;;  %3731 = vmatpush.bf16.msra.mxu3 %v6081_v34  ;;  %v5925_v37 = vor.u32 %v7025_v63, %v5924_v47  ;;  %v6181_v52 = vor.u32 %v7089_v19, %v6180_v45  ;;  %v5926_v34 = vld [vmem:[#allocation16 + $0x138] sm:$0xf0]  ;;  %v5892_v2 = vld [vmem:[#allocation16 + $0xd8] sm:$0xf] }
 0x611   :  { %v7017_v21 = vld [vmem:[#allocation16 + $0xf4] sm:$0xf0]  ;;  %v7013_v0 = vld [vmem:[#allocation16 + $0xdc] sm:$0xf] }
 0x612   :  { %v7081_v4 = vld [vmem:[#allocation16 + $0x2f4] sm:$0xf0]  ;;  %v5894_v39 = vld [vmem:[#allocation16 + $0xf8] sm:$0xf0] }
 0x613   :  { %3675 = vmatpush.bf16.msra.mxu0 %v5789_v56  ;;  %3694 = vmatpush.bf16.msra.mxu1 %v6045_v6  ;;  %v6182_v56 = vld [vmem:[#allocation16 + $0x338] sm:$0xf0]  ;;  %v5929_v6 = vor.u32 %v7021_v5, %v5926_v34  ;;  %v5860_v11 = vld [vmem:[#allocation16 + $0x98] sm:$0xf] }
 0x614   :  { %3713 = vmatpush.bf16.msra.mxu2 %v5793_v20  ;;  %3732 = vmatpush.bf16.msra.mxu3 %v6049_v49  ;;  %v6185_v53 = vor.u32 %v7085_v51, %v6182_v56  ;;  %v6148_v20 = vld [vmem:[#allocation16 + $0x2d8] sm:$0xf]  ;;  %v5893_v49 = vor.u32 %v7017_v21, %v5892_v2  ;;  %v7077_v1 = vld [vmem:[#allocation16 + $0x2dc] sm:$0xf]  ;;  %v6340_v51 = vld [vmem:[#allocation17 + $0x70] sm:$0xf] }
 0x615   :  { %3600 = vmatmul.bf16.vlgmr.msrb.gmra.mxu0 %v8168_v50  ;;  %3619 = vmatmul.bf16.vlgmr.msrb.gmra.mxu1 %v8170_v57  ;;  %v6150_v10 = vld [vmem:[#allocation16 + $0x2f8] sm:$0xf0]  ;;  %v7009_v23 = vld [vmem:[#allocation16 + $0xb4] sm:$0xf0]  ;;  %v7127_v2 = vld [vmem:[#allocation17 + $0x64] sm:$0xf0] }
 0x616   :  { %3638 = vmatmul.bf16.vlgmr.msrb.gmra.mxu2 %v8168_v50  ;;  %3657 = vmatmul.bf16.vlgmr.msrb.gmra.mxu3 %v8170_v57  ;;  %v6116_v15 = vld [vmem:[#allocation16 + $0x298] sm:$0xf]  ;;  %v7005_v43 = vld [vmem:[#allocation16 + $0x9c] sm:$0xf]  ;;  %v6404_v21 = vld [vmem:[#allocation17 + $0xf0] sm:$0xf] }
 0x617   :  { %3744 = vmatpush.bf16.msrb.mxu0 %v6021_v27  ;;  %3763 = vmatpush.bf16.msrb.mxu1 %v6277_v12  ;;  %v6149_v27 = vor.u32 %v7081_v4, %v6148_v20  ;;  %v5897_v12 = vor.u32 %v7013_v0, %v5894_v39  ;;  %v7073_v22 = vld [vmem:[#allocation16 + $0x2b4] sm:$0xf0]  ;;  %v5862_v13 = vld [vmem:[#allocation16 + $0xb8] sm:$0xf0]  ;;  %v6324_v4 = vld [vmem:[#allocation17 + $0x50] sm:$0xf] }
 0x618   :  { %3782 = vmatpush.bf16.msrb.mxu2 %v6025_v9  ;;  %3801 = vmatpush.bf16.msrb.mxu3 %v6281_v16  ;;  %v6153_v9 = vor.u32 %v7077_v1, %v6150_v10  ;;  %v5861_v16 = vor.u32 %v7009_v23, %v5860_v11  ;;  %v6117_v7 = vor.u32 %v7073_v22, %v6116_v15  ;;  %v5828_v17 = vld [vmem:[#allocation16 + $0x58] sm:$0xf]  ;;  %v6997_v62 = vld [vmem:[#allocation16 + $0x5c] sm:$0xf]  ;;  %v7143_v1 = vld [vmem:[#allocation17 + $0xe4] sm:$0xf0] }
 0x619   :  { %v7001_v25 = vld [vmem:[#allocation16 + $0x74] sm:$0xf0]  ;;  %v5865_v26 = vor.u32 %v7005_v43, %v5862_v13  ;;  %v7061_v36 = vld [vmem:[#allocation16 + $0x25c] sm:$0xf]  ;;  %v6388_v15 = vld [vmem:[#allocation17 + $0xd0] sm:$0xf] }
 0x61a   :  { %v6084_v60 = vld [vmem:[#allocation16 + $0x258] sm:$0xf]  ;;  %v5829_v8 = vor.u32 %v7001_v25, %v5828_v17  ;;  %v6086_v41 = vld [vmem:[#allocation16 + $0x278] sm:$0xf0]  ;;  %v6300_v25 = vld [vmem:[#allocation17 + $0x20] sm:$0xf] }
 0x61b   :  { %3745 = vmatpush.bf16.msrb.mxu0 %v5989_v44  ;;  %3764 = vmatpush.bf16.msrb.mxu1 %v6245_v29  ;;  %v7069_v44 = vld [vmem:[#allocation16 + $0x29c] sm:$0xf]  ;;  %v5796_v59 = vld [vmem:[#allocation16 + $0x18] sm:$0xf] }
 0x61c   :  { %3783 = vmatpush.bf16.msrb.mxu2 %v5993_v3  ;;  %3802 = vmatpush.bf16.msrb.mxu3 %v6249_v30  ;;  %v6118_v29 = vld [vmem:[#allocation16 + $0x2b8] sm:$0xf0]  ;;  %v7065_v3 = vld [vmem:[#allocation16 + $0x274] sm:$0xf0] }
 0x61d   :  { %v6121_v14 = vor.u32 %v7069_v44, %v6118_v29  ;;  %v5830_v30 = vld [vmem:[#allocation16 + $0x78] sm:$0xf0]  ;;  %v6085_v42 = vor.u32 %v7065_v3, %v6084_v60  ;;  %v6993_v54 = vld [vmem:[#allocation16 + $0x34] sm:$0xf0]  ;;  %v6380_v44 = vld [vmem:[#allocation17 + $0xc0] sm:$0xf] }
 0x61e   :  { %v5833_v47 = vor.u32 %v6997_v62, %v5830_v30  ;;  %v5797_v63 = vor.u32 %v6993_v54, %v5796_v59  ;;  %v5798_v19 = vld [vmem:[#allocation16 + $0x38] sm:$0xf0]  ;;  %v7129_v56 = vld [vmem:[#allocation17 + $0x74] sm:$0xf0]  ;;  %v7139_v29 = vld [vmem:[#allocation17 + $0xc4] sm:$0xf0] }
 0x61f   :  { %3746 = vmatpush.bf16.msrb.mxu0 %v5957_v18  ;;  %3765 = vmatpush.bf16.msrb.mxu1 %v6213_v46  ;;  %v6052_v18 = vld [vmem:[#allocation16 + $0x218] sm:$0xf]  ;;  %v7053_v5 = vld [vmem:[#allocation16 + $0x21c] sm:$0xf]  ;;  %v6381_v17 = vor.u32 %v7139_v29, %v6380_v44  ;;  %v7119_v60 = vld [vmem:[#allocation17 + $0x24] sm:$0xf0] }
 0x620   :  { %3784 = vmatpush.bf16.msrb.mxu2 %v5961_v31  ;;  %3803 = vmatpush.bf16.msrb.mxu3 %v6217_v58  ;;  %v7057_v46 = vld [vmem:[#allocation16 + $0x234] sm:$0xf0]  ;;  %v6089_v31 = vor.u32 %v7061_v36, %v6086_v41  ;;  %v6989_v58 = vld [vmem:[#allocation16 + $0x1c] sm:$0xf]  ;;  %v6301_v3 = vor.u32 %v7119_v60, %v6300_v25  ;;  %v6292_v30 = vld [vmem:[#allocation17 + $0x10] sm:$0xf] }
 0x621   :  { %v6053_v45 = vor.u32 %v7057_v46, %v6052_v18  ;;  %v7125_v0 = vld [vmem:[#allocation17 + $0x54] sm:$0xf0]  ;;  %v6364_v36 = vld [vmem:[#allocation17 + $0xa0] sm:$0xf]  ;;  %v7135_v41 = vld [vmem:[#allocation17 + $0xa4] sm:$0xf0] }
 0x622   :  { %v6325_v10 = vor.u32 %v7125_v0, %v6324_v4  ;;  %v7141_v22 = vld [vmem:[#allocation17 + $0xd4] sm:$0xf0]  ;;  %v6365_v59 = vor.u32 %v7135_v41, %v6364_v36  ;;  %v6284_v54 = vld [vmem:[#allocation17] sm:$0xf]  ;;  %v6356_v18 = vld [vmem:[#allocation17 + $0x90] sm:$0xf] }
 0x623   :  { %3747 = vmatpush.bf16.msrb.mxu0 %v5925_v37  ;;  %3766 = vmatpush.bf16.msrb.mxu1 %v6181_v52  ;;  %v6054_v37 = vld [vmem:[#allocation16 + $0x238] sm:$0xf0]  ;;  %v5801_v52 = vor.u32 %v6989_v58, %v5798_v19  ;;  %v7121_v43 = vld [vmem:[#allocation17 + $0x34] sm:$0xf0]  ;;  %v7131_v19 = vld [vmem:[#allocation17 + $0x84] sm:$0xf0] }
 0x624   :  { %3785 = vmatpush.bf16.msrb.mxu2 %v5929_v6  ;;  %3804 = vmatpush.bf16.msrb.mxu3 %v6185_v53  ;;  %v6057_v34 = vor.u32 %v7053_v5, %v6054_v37  ;;  %v6341_v6 = vor.u32 %v7129_v56, %v6340_v51  ;;  %v6332_v53 = vld [vmem:[#allocation17 + $0x60] sm:$0xf]  ;;  %v7133_v46 = vld [vmem:[#allocation17 + $0x94] sm:$0xf0]  ;;  %v6532_v51 = vld [vmem:[#allocation17 + $0x1f0] sm:$0xf] }
 0x625   :  { %3605 = vmatmul.bf16.gmra.mxu0 %v8204_v28  ;;  %3624 = vmatmul.bf16.gmra.mxu1 %v8206_v48  ;;  %v6333_v20 = vor.u32 %v7127_v2, %v6332_v53  ;;  %v7161_v58 = vld [vmem:[#allocation17 + $0x174] sm:$0xf0]  ;;  %v6460_v37 = vld [vmem:[#allocation17 + $0x160] sm:$0xf]  ;;  %v6452_v53 = vld [vmem:[#allocation17 + $0x150] sm:$0xf] }
 0x626   :  { %3643 = vmatmul.bf16.gmra.mxu2 %v8204_v28  ;;  %3662 = vmatmul.bf16.gmra.mxu3 %v8206_v48  ;;  %v7177_v56 = vld [vmem:[#allocation17 + $0x1f4] sm:$0xf0]  ;;  %v6444_v0 = vld [vmem:[#allocation17 + $0x140] sm:$0xf]  ;;  %v7151_v44 = vld [vmem:[#allocation17 + $0x124] sm:$0xf0] }
 0x627   :  { %3748 = vmatpush.bf16.msrb.mxu0 %v5893_v49  ;;  %3767 = vmatpush.bf16.msrb.mxu1 %v6149_v27  ;;  %v7145_v49 = vld [vmem:[#allocation17 + $0xf4] sm:$0xf0]  ;;  %v6396_v27 = vld [vmem:[#allocation17 + $0xe0] sm:$0xf]  ;;  %v6500_v25 = vld [vmem:[#allocation17 + $0x1b0] sm:$0xf] }
 0x628   :  { %3786 = vmatpush.bf16.msrb.mxu2 %v5897_v12  ;;  %3805 = vmatpush.bf16.msrb.mxu3 %v6153_v9  ;;  %v6405_v39 = vor.u32 %v7145_v49, %v6404_v21  ;;  %v6397_v11 = vor.u32 %v7143_v1, %v6396_v27  ;;  %v6316_v12 = vld [vmem:[#allocation17 + $0x40] sm:$0xf]  ;;  %v7123_v9 = vld [vmem:[#allocation17 + $0x44] sm:$0xf0]  ;;  %v7157_v2 = vld [vmem:[#allocation17 + $0x154] sm:$0xf0] }
 0x629   :  { %v6317_v23 = vor.u32 %v7123_v9, %v6316_v12  ;;  %v6453_v21 = vor.u32 %v7157_v2, %v6452_v53  ;;  %v7175_v49 = vld [vmem:[#allocation17 + $0x1e4] sm:$0xf0]  ;;  %v6516_v27 = vld [vmem:[#allocation17 + $0x1d0] sm:$0xf]  ;;  %v7173_v1 = vld [vmem:[#allocation17 + $0x1d4] sm:$0xf0] }
 0x62a   :  { %v6436_v9 = vld [vmem:[#allocation17 + $0x130] sm:$0xf]  ;;  %v7169_v60 = vld [vmem:[#allocation17 + $0x1b4] sm:$0xf0] }
 0x62b   :  { %3749 = vmatpush.bf16.msrb.mxu0 %v5861_v16  ;;  %3768 = vmatpush.bf16.msrb.mxu1 %v6117_v7  ;;  %v6389_v16 = vor.u32 %v7141_v22, %v6388_v15  ;;  %v6308_v7 = vld [vmem:[#allocation17 + $0x30] sm:$0xf]  ;;  %v7149_v36 = vld [vmem:[#allocation17 + $0x114] sm:$0xf0] }
 0x62c   :  { %3787 = vmatpush.bf16.msrb.mxu2 %v5865_v26  ;;  %3806 = vmatpush.bf16.msrb.mxu3 %v6121_v14  ;;  %v6309_v13 = vor.u32 %v7121_v43, %v6308_v7  ;;  %v6372_v26 = vld [vmem:[#allocation17 + $0xb0] sm:$0xf]  ;;  %v7137_v14 = vld [vmem:[#allocation17 + $0xb4] sm:$0xf0]  ;;  %v7171_v7 = vld [vmem:[#allocation17 + $0x1c4] sm:$0xf0] }
 0x62d   :  { %v6373_v62 = vor.u32 %v7137_v14, %v6372_v26  ;;  %v6501_v14 = vor.u32 %v7169_v60, %v6500_v25  ;;  %v6580_v25 = vld [vmem:[#allocation17 + $0x250] sm:$0xf]  ;;  %v7189_v60 = vld [vmem:[#allocation17 + $0x254] sm:$0xf0] }
 0x62f   :  { %3750 = vmatpush.bf16.msrb.mxu0 %v5829_v8  ;;  %3769 = vmatpush.bf16.msrb.mxu1 %v6085_v42  ;;  %v7117_v8 = vld [vmem:[#allocation17 + $0x14] sm:$0xf0] }
 0x630   :  { %3788 = vmatpush.bf16.msrb.mxu2 %v5833_v47  ;;  %3807 = vmatpush.bf16.msrb.mxu3 %v6089_v31  ;;  %v6293_v42 = vor.u32 %v7117_v8, %v6292_v30  ;;  %v6357_v47 = vor.u32 %v7133_v46, %v6356_v18  ;;  %v6468_v31 = vld [vmem:[#allocation17 + $0x170] sm:$0xf] }
 0x633   :  { %3751 = vmatpush.bf16.msrb.mxu0 %v5797_v63  ;;  %3770 = vmatpush.bf16.msrb.mxu1 %v6053_v45  ;;  %v6469_v63 = vor.u32 %v7161_v58, %v6468_v31  ;;  %v6348_v45 = vld [vmem:[#allocation17 + $0x80] sm:$0xf]  ;;  %v7147_v58 = vld [vmem:[#allocation17 + $0x104] sm:$0xf0] }
 0x634   :  { %3789 = vmatpush.bf16.msrb.mxu2 %v5801_v52  ;;  %3808 = vmatpush.bf16.msrb.mxu3 %v6057_v34  ;;  %v6349_v5 = vor.u32 %v7131_v19, %v6348_v45  ;;  %v7159_v52 = vld [vmem:[#allocation17 + $0x164] sm:$0xf0]  ;;  %v6412_v31 = vld [vmem:[#allocation17 + $0x100] sm:$0xf] }
 0x635   :  { %3676 = vmatmul.bf16.vlgmr.msra.gmra.mxu0 %v8168_v50  ;;  %3695 = vmatmul.bf16.vlgmr.msra.gmra.mxu1 %v8170_v57  ;;  %v6461_v34 = vor.u32 %v7159_v52, %v6460_v37  ;;  %v6413_v19 = vor.u32 %v7147_v58, %v6412_v31  ;;  %v7165_v37 = vld [vmem:[#allocation17 + $0x194] sm:$0xf0] }
 0x636   :  { %3714 = vmatmul.bf16.vlgmr.msra.gmra.mxu2 %v8168_v50  ;;  %3733 = vmatmul.bf16.vlgmr.msra.gmra.mxu3 %v8170_v57 }
 0x637   :  { %4642 = vmatpush.bf16.msra.mxu0 %v6341_v6  ;;  %4661 = vmatpush.bf16.msra.mxu1 %v6405_v39  ;;  %v6533_v6 = vor.u32 %v7177_v56, %v6532_v51  ;;  %v8239_v39 = vld [vmem:[%s8387_s9] sm:$0xff] }
 0x638   :  { %4680 = vmatpush.bf16.msra.mxu2 %v6469_v63  ;;  %v8242_v15 = vperm.slane %v8239_v39, 0 }
 0x639   :  { %4699 = vmatpush.bf16.msra.mxu3 %v6533_v6 }
 0x63b   :  { %4643 = vmatpush.bf16.msra.mxu0 %v6333_v20  ;;  %4662 = vmatpush.bf16.msra.mxu1 %v6397_v11  ;;  %v6524_v20 = vld [vmem:[#allocation17 + $0x1e0] sm:$0xf] }
 0x63c   :  { %4681 = vmatpush.bf16.msra.mxu2 %v6461_v34  ;;  %v6525_v4 = vor.u32 %v7175_v49, %v6524_v20  ;;  %v6596_v20 = vld [vmem:[#allocation17 + $0x270] sm:$0xf]  ;;  %v7193_v49 = vld [vmem:[#allocation17 + $0x274] sm:$0xf0] }
 0x63e   :  { %4700 = vmatpush.bf16.msra.mxu3 %v6525_v4  ;;  %v6597_v4 = vor.u32 %v7193_v49, %v6596_v20 }
 0x63f   :  { %4644 = vmatpush.bf16.msra.mxu0 %v6325_v10  ;;  %4663 = vmatpush.bf16.msra.mxu1 %v6389_v16  ;;  %v6517_v10 = vor.u32 %v7173_v1, %v6516_v27  ;;  %v6508_v16 = vld [vmem:[#allocation17 + $0x1c0] sm:$0xf] }
 0x640   :  { %4682 = vmatpush.bf16.msra.mxu2 %v6453_v21  ;;  %v6509_v43 = vor.u32 %v7171_v7, %v6508_v16  ;;  %v6660_v16 = vld [vmem:[#allocation17 + $0x2f0] sm:$0xf]  ;;  %v7209_v7 = vld [vmem:[#allocation17 + $0x2f4] sm:$0xf0] }
 0x642   :  { %4701 = vmatpush.bf16.msra.mxu3 %v6517_v10 }
 0x643   :  { %4645 = vmatpush.bf16.msra.mxu0 %v6317_v23  ;;  %4664 = vmatpush.bf16.msra.mxu1 %v6381_v17  ;;  %v7153_v23 = vld [vmem:[#allocation17 + $0x134] sm:$0xf0] }
 0x644   :  { %v6437_v22 = vor.u32 %v7153_v23, %v6436_v9 }
 0x645   :  { %3681 = vmatmul.bf16.gmra.mxu0 %v8204_v28  ;;  %3700 = vmatmul.bf16.gmra.mxu1 %v8206_v48 }
 0x646   :  { %3719 = vmatmul.bf16.gmra.mxu2 %v8204_v28  ;;  %3738 = vmatmul.bf16.gmra.mxu3 %v8206_v48 }
 0x647   :  { %4646 = vmatpush.bf16.msra.mxu0 %v6309_v13  ;;  %4665 = vmatpush.bf16.msra.mxu1 %v6373_v62  ;;  %v6428_v13 = vld [vmem:[#allocation17 + $0x120] sm:$0xf]  ;;  %v8246_v62 = vperm.slane %v8239_v39, 1 }
 0x648   :  { %4702 = vmatpush.bf16.msra.mxu3 %v6509_v43  ;;  %v6429_v17 = vor.u32 %v7151_v44, %v6428_v13  ;;  %v6661_v44 = vor.u32 %v7209_v7, %v6660_v16 }
 0x64b   :  { %4647 = vmatpush.bf16.msra.mxu0 %v6301_v3  ;;  %4666 = vmatpush.bf16.msra.mxu1 %v6365_v59 }
 0x64c   :  { %4703 = vmatpush.bf16.msra.mxu3 %v6501_v14  ;;  %v6581_v14 = vor.u32 %v7189_v60, %v6580_v25  ;;  %v6620_v25 = vld [vmem:[#allocation17 + $0x2a0] sm:$0xf]  ;;  %v7199_v60 = vld [vmem:[#allocation17 + $0x2a4] sm:$0xf0] }
 0x64f   :  { %4648 = vmatpush.bf16.msra.mxu0 %v6293_v42  ;;  %4667 = vmatpush.bf16.msra.mxu1 %v6357_v47  ;;  %v6420_v42 = vld [vmem:[#allocation17 + $0x110] sm:$0xf] }
 0x653   :  { %4668 = vmatpush.bf16.msra.mxu1 %v6349_v5  ;;  %v6484_v5 = vld [vmem:[#allocation17 + $0x190] sm:$0xf] }
 0x654   :  { %v6485_v56 = vor.u32 %v7165_v37, %v6484_v5 }
 0x655   :  { %3752 = vmatmul.bf16.vlgmr.msrb.gmra.mxu0 %v8168_v50  ;;  %3771 = vmatmul.bf16.vlgmr.msrb.gmra.mxu1 %v8170_v57 }
 0x656   :  { %3790 = vmatmul.bf16.vlgmr.msrb.gmra.mxu2 %v8168_v50  ;;  %3809 = vmatmul.bf16.vlgmr.msrb.gmra.mxu3 %v8170_v57  ;;  %v7115_v50 = vld [vmem:[#allocation17 + $0x4] sm:$0xf0] }
 0x657   :  { %v6285_v57 = vor.u32 %v7115_v50, %v6284_v54  ;;  %v6421_v54 = vor.u32 %v7149_v36, %v6420_v42  ;;  %v6492_v50 = vld [vmem:[#allocation17 + $0x1a0] sm:$0xf]  ;;  %4737 = vmatpush.bf16.msrb.mxu1 %v6661_v44 }
 0x659   :  { %4649 = vmatpush.bf16.msra.mxu0 %v6285_v57  ;;  %v7167_v57 = vld [vmem:[#allocation17 + $0x1a4] sm:$0xf0] }
 0x65a   :  { %v6493_v46 = vor.u32 %v7167_v57, %v6492_v50 }
 0x65c   :  { %4704 = vmatpush.bf16.msra.mxu3 %v6493_v46  ;;  %v6644_v46 = vld [vmem:[#allocation17 + $0x2d0] sm:$0xf] }
 0x65d   :  { %4718 = vmatpush.bf16.msrb.mxu0 %v6597_v4 }
 0x660   :  { %4705 = vmatpush.bf16.msra.mxu3 %v6485_v56  ;;  %v8264_v56 = vperm.slane %v8239_v39, 2 }
 0x665   :  { %3757 = vmatmul.bf16.gmra.mxu0 %v8204_v28  ;;  %3776 = vmatmul.bf16.gmra.mxu1 %v8206_v48 }
 0x666   :  { %3795 = vmatmul.bf16.gmra.mxu2 %v8204_v28  ;;  %3814 = vmatmul.bf16.gmra.mxu3 %v8206_v48  ;;  %v7155_v28 = vld [vmem:[#allocation17 + $0x144] sm:$0xf0] }
 0x667   :  { %v6445_v48 = vor.u32 %v7155_v28, %v6444_v0  ;;  %v6476_v28 = vld [vmem:[#allocation17 + $0x180] sm:$0xf] }
 0x669   :  { %4683 = vmatpush.bf16.msra.mxu2 %v6445_v48  ;;  %v7163_v48 = vld [vmem:[#allocation17 + $0x184] sm:$0xf0] }
 0x66a   :  { %v6477_v27 = vor.u32 %v7163_v48, %v6476_v28 }
 0x66c   :  { %4706 = vmatpush.bf16.msra.mxu3 %v6477_v27 }
 0x66d   :  { %4684 = vmatpush.bf16.msra.mxu2 %v6437_v22 }
 0x671   :  { %4685 = vmatpush.bf16.msra.mxu2 %v6429_v17 }
 0x672   :  { %v3525_v11 = vpop.f32.mrf.mxu0  ;;  %v3544_v12 = vpop.f32.mrf.mxu1 }
 0x673   :  { %v3526_v29 = vadd.f32 %v3525_v11, %v8242_v15  ;;  %v6588_v11 = vld [vmem:[#allocation17 + $0x260] sm:$0xf] }
 0x675   :  { %v3545_v41 = vadd.f32 %v3544_v12, %v3526_v29  ;;  %4686 = vmatpush.bf16.msra.mxu2 %v6421_v54  ;;  %v7191_v12 = vld [vmem:[#allocation17 + $0x264] sm:$0xf0] }
 0x676   :  { %v6589_v23 = vor.u32 %v7191_v12, %v6588_v11  ;;  %v7187_v54 = vld [vmem:[#allocation17 + $0x244] sm:$0xf0] }
 0x677   :  { %v3820_v63 = vmax.f32 %v3545_v41, 0.0 }
 0x678   :  { %4719 = vmatpush.bf16.msrb.mxu0 %v6589_v23  ;;  %v8271_v23 = vperm.slane %v8239_v39, 3 }
 0x679   :  { %v3563_v3 = vpop.f32.mrf.mxu2  ;;  %v3582_v26 = vpop.f32.mrf.mxu3  ;;  %4687 = vmatpush.bf16.msra.mxu2 %v6413_v19 }
 0x67a   :  { %v3527_v30 = vpop.f32.mrf.mxu0  ;;  %v3546_v8 = vpop.f32.mrf.mxu1  ;;  %v3564_v47 = vadd.f32 %v3563_v3, %v8246_v62 }
 0x67b   :  { %v3528_v59 = vadd.f32 %v3527_v30, %v8242_v15  ;;  %v6652_v30 = vld [vmem:[#allocation17 + $0x2e0] sm:$0xf] }
 0x67c   :  { %v3583_v6 = vadd.f32 %v3582_v26, %v3564_v47  ;;  %4720 = vmatpush.bf16.msrb.mxu0 %v6581_v14  ;;  %v7205_v47 = vld [vmem:[#allocation17 + $0x2d4] sm:$0xf0] }
 0x67d   :  { %v3547_v18 = vadd.f32 %v3546_v8, %v3528_v59  ;;  %v7207_v8 = vld [vmem:[#allocation17 + $0x2e4] sm:$0xf0]  ;;  %v6572_v59 = vld [vmem:[#allocation17 + $0x240] sm:$0xf] }
 0x67e   :  { %v3821_v1 = vmax.f32 %v3583_v6, 0.0  ;;  %v6653_v36 = vor.u32 %v7207_v8, %v6652_v30  ;;  %v6540_v30 = vld [vmem:[#allocation17 + $0x200] sm:$0xf]  ;;  %v7179_v8 = vld [vmem:[#allocation17 + $0x204] sm:$0xf0] }
 0x67f   :  { %v3828_v45 = vmax.f32 %v3547_v18, 0.0  ;;  %v6573_v18 = vor.u32 %v7187_v54, %v6572_v59  ;;  %v6612_v59 = vld [vmem:[#allocation17 + $0x290] sm:$0xf]  ;;  %v7197_v54 = vld [vmem:[#allocation17 + $0x294] sm:$0xf0] }
 0x680   :  { %4738 = vmatpush.bf16.msrb.mxu1 %v6653_v36 }
 0x681   :  { %v8250_v52 = vpack.c.bf16 %v3828_v45, %v3820_v63  ;;  %v3565_v34 = vpop.f32.mrf.mxu2  ;;  %v3584_v51 = vpop.f32.mrf.mxu3  ;;  %4721 = vmatpush.bf16.msrb.mxu0 %v6573_v18  ;;  %v6645_v63 = vor.u32 %v7205_v47, %v6644_v46  ;;  %v6613_v46 = vor.u32 %v7197_v54, %v6612_v59  ;;  %v7239_v59 = vld [vmem:[#allocation17 + $0x3e4] sm:$0xf0]  ;;  %v7142_v54 = vld [vmem:[#allocation17 + $0xe4] sm:$0xf] }
 0x682   :  { %v3566_v53 = vadd.f32 %v3565_v34, %v8246_v62  ;;  %v3530_v2 = vpop.f32.mrf.mxu0  ;;  %v3549_v21 = vpop.f32.mrf.mxu1  ;;  %v6564_v34 = vld [vmem:[#allocation17 + $0x230] sm:$0xf] }
 0x683   :  { %4650 = vmatmul.bf16.vlgmr.msra.gmra.mxu0 %v8250_v52  ;;  %v3531_v9 = vadd.f32 %v3530_v2, %v8242_v15  ;;  %v6636_v2 = vld [vmem:[#allocation17 + $0x2c0] sm:$0xf] }
 0x684   :  { %v3585_v0 = vadd.f32 %v3584_v51, %v3566_v53  ;;  %v7185_v51 = vld [vmem:[#allocation17 + $0x234] sm:$0xf0]  ;;  %4739 = vmatpush.bf16.msrb.mxu1 %v6645_v63 }
 0x685   :  { %v3550_v3 = vadd.f32 %v3549_v21, %v3531_v9  ;;  %v6565_v6 = vor.u32 %v7185_v51, %v6564_v34  ;;  %v7203_v21 = vld [vmem:[#allocation17 + $0x2c4] sm:$0xf0]  ;;  %v6342_v34 = vld [vmem:[#allocation17 + $0x78] sm:$0xf0] }
 0x686   :  { %v3829_v10 = vmax.f32 %v3585_v0, 0.0  ;;  %v6637_v20 = vor.u32 %v7203_v21, %v6636_v2  ;;  %v6556_v0 = vld [vmem:[#allocation17 + $0x220] sm:$0xf]  ;;  %v7195_v2 = vld [vmem:[#allocation17 + $0x284] sm:$0xf0] }
 0x687   :  { %v3836_v50 = vmax.f32 %v3550_v3, 0.0  ;;  %4722 = vmatpush.bf16.msrb.mxu0 %v6565_v6 }
 0x688   :  { %v8255_v22 = vpack.c.bf16 %v3829_v10, %v3821_v1  ;;  %4740 = vmatpush.bf16.msrb.mxu1 %v6637_v20  ;;  %v6628_v1 = vld [vmem:[#allocation17 + $0x2b0] sm:$0xf]  ;;  %v7201_v10 = vld [vmem:[#allocation17 + $0x2b4] sm:$0xf0] }
 0x689   :  { %v3568_v43 = vpop.f32.mrf.mxu2  ;;  %v3587_v13 = vpop.f32.mrf.mxu3  ;;  %v6629_v9 = vor.u32 %v7201_v10, %v6628_v1  ;;  %v6334_v1 = vld [vmem:[#allocation17 + $0x68] sm:$0xf0] }
 0x68a   :  { %4669 = vmatmul.bf16.vlgmr.msra.gmra.mxu1 %v8255_v22  ;;  %v3532_v29 = vpop.f32.mrf.mxu0  ;;  %v3551_v17 = vpop.f32.mrf.mxu1  ;;  %v3569_v41 = vadd.f32 %v3568_v43, %v8246_v62  ;;  %v6548_v43 = vld [vmem:[#allocation17 + $0x210] sm:$0xf] }
 0x68b   :  { %v3533_v26 = vadd.f32 %v3532_v29, %v8242_v15 }
 0x68c   :  { %v3588_v45 = vadd.f32 %v3587_v13, %v3569_v41  ;;  %v7181_v13 = vld [vmem:[#allocation17 + $0x214] sm:$0xf0]  ;;  %4741 = vmatpush.bf16.msrb.mxu1 %v6629_v9  ;;  %v6541_v41 = vor.u32 %v7179_v8, %v6540_v30 }
 0x68d   :  { %v3552_v42 = vadd.f32 %v3551_v17, %v3533_v26  ;;  %v6549_v17 = vor.u32 %v7181_v13, %v6548_v43  ;;  %v6621_v26 = vor.u32 %v7199_v60, %v6620_v25  ;;  %v7241_v9 = vld [vmem:[#allocation17 + $0x3f4] sm:$0xf0]  ;;  %v6708_v60 = vld [vmem:[#allocation17 + $0x350] sm:$0xf] }
 0x68e   :  { %v3837_v49 = vmax.f32 %v3588_v45, 0.0  ;;  %v6724_v45 = vld [vmem:[#allocation17 + $0x370] sm:$0xf] }
 0x68f   :  { %v3844_v57 = vmax.f32 %v3552_v42, 0.0 }
 0x690   :  { %4742 = vmatpush.bf16.msrb.mxu1 %v6621_v26  ;;  %v7124_v26 = vld [vmem:[#allocation17 + $0x54] sm:$0xf] }
 0x691   :  { %v3570_v31 = vpop.f32.mrf.mxu2  ;;  %v3589_v58 = vpop.f32.mrf.mxu3  ;;  %v8260_v15 = vpack.c.bf16 %v3844_v57, %v3836_v50 }
 0x692   :  { %v3571_v19 = vadd.f32 %v3570_v31, %v8246_v62  ;;  %v3601_v5 = vpop.f32.mrf.mxu0  ;;  %v3620_v37 = vpop.f32.mrf.mxu1  ;;  %v7183_v62 = vld [vmem:[#allocation17 + $0x224] sm:$0xf0] }
 0x693   :  { %4655 = vmatmul.bf16.gmra.mxu0 %v8260_v15  ;;  %v3602_v28 = vadd.f32 %v3601_v5, %v8264_v56  ;;  %v6557_v48 = vor.u32 %v7183_v62, %v6556_v0  ;;  %v7128_v5 = vld [vmem:[#allocation17 + $0x74] sm:$0xf]  ;;  %v7223_v0 = vld [vmem:[#allocation17 + $0x364] sm:$0xf0] }
 0x694   :  { %v3590_v53 = vadd.f32 %v3589_v58, %v3571_v19  ;;  %v7225_v19 = vld [vmem:[#allocation17 + $0x374] sm:$0xf0]  ;;  %4743 = vmatpush.bf16.msrb.mxu1 %v6613_v46  ;;  %v6345_v6 = vor.u32 %v7128_v5, %v6342_v34  ;;  %v6398_v46 = vld [vmem:[#allocation17 + $0xe8] sm:$0xf0]  ;;  %v7122_v5 = vld [vmem:[#allocation17 + $0x44] sm:$0xf] }
 0x695   :  { %4723 = vmatpush.bf16.msrb.mxu0 %v6557_v48  ;;  %v3621_v44 = vadd.f32 %v3620_v37, %v3602_v28  ;;  %v6725_v37 = vor.u32 %v7225_v19, %v6724_v45  ;;  %v7126_v48 = vld [vmem:[#allocation17 + $0x64] sm:$0xf] }
 0x696   :  { %v3845_v4 = vmax.f32 %v3590_v53, 0.0  ;;  %v6604_v53 = vld [vmem:[#allocation17 + $0x280] sm:$0xf] }
 0x697   :  { %v3822_v42 = vmax.f32 %v3621_v44, 0.0  ;;  %4756 = vmatpush.bf16.msrb.mxu2 %v6725_v37  ;;  %v6605_v21 = vor.u32 %v7195_v2, %v6604_v53  ;;  %v6406_v44 = vld [vmem:[#allocation17 + $0xf8] sm:$0xf0]  ;;  %v6318_v37 = vld [vmem:[#allocation17 + $0x48] sm:$0xf0] }
 0x698   :  { %v8268_v27 = vpack.c.bf16 %v3845_v4, %v3837_v49  ;;  %v6716_v4 = vld [vmem:[#allocation17 + $0x360] sm:$0xf]  ;;  %v6321_v34 = vor.u32 %v7122_v5, %v6318_v37  ;;  %v7140_v53 = vld [vmem:[#allocation17 + $0xd4] sm:$0xf] }
 0x699   :  { %v3639_v11 = vpop.f32.mrf.mxu2  ;;  %v3658_v12 = vpop.f32.mrf.mxu3  ;;  %4724 = vmatpush.bf16.msrb.mxu0 %v6549_v17  ;;  %4744 = vmatpush.bf16.msrb.mxu1 %v6605_v21  ;;  %v6717_v28 = vor.u32 %v7223_v0, %v6716_v4  ;;  %v6390_v4 = vld [vmem:[#allocation17 + $0xd8] sm:$0xf0] }
 0x69a   :  { %4674 = vmatmul.bf16.gmra.mxu1 %v8268_v27  ;;  %v3603_v16 = vpop.f32.mrf.mxu0  ;;  %v3622_v7 = vpop.f32.mrf.mxu1  ;;  %v3640_v14 = vadd.f32 %v3639_v11, %v8271_v23  ;;  %v6337_v11 = vor.u32 %v7126_v48, %v6334_v1  ;;  %v6393_v1 = vor.u32 %v7140_v53, %v6390_v4 }
 0x69b   :  { %v3604_v29 = vadd.f32 %v3603_v16, %v8264_v56  ;;  %v7144_v16 = vld [vmem:[#allocation17 + $0xf4] sm:$0xf]  ;;  %4757 = vmatpush.bf16.msrb.mxu2 %v6717_v28 }
 0x69c   :  { %v3659_v47 = vadd.f32 %v3658_v12, %v3640_v14  ;;  %v6788_v12 = vld [vmem:[#allocation17 + $0x3f0] sm:$0xf]  ;;  %v6409_v25 = vor.u32 %v7144_v16, %v6406_v44 }
 0x69d   :  { %v3623_v3 = vadd.f32 %v3622_v7, %v3604_v29  ;;  %4725 = vmatpush.bf16.msrb.mxu0 %v6541_v41  ;;  %v6789_v13 = vor.u32 %v7241_v9, %v6788_v12  ;;  %v6780_v41 = vld [vmem:[#allocation17 + $0x3e0] sm:$0xf]  ;;  %v7217_v12 = vld [vmem:[#allocation17 + $0x334] sm:$0xf0]  ;;  %v8290_v9 = vperm.slane %v8239_v39, 4 }
 0x69e   :  { %v3823_v20 = vmax.f32 %v3659_v47, 0.0  ;;  %4813 = vmatpush.bf16.msra.mxu1 %v6409_v25 }
 0x69f   :  { %v3830_v36 = vmax.f32 %v3623_v3, 0.0  ;;  %v7221_v3 = vld [vmem:[#allocation17 + $0x354] sm:$0xf0]  ;;  %4775 = vmatpush.bf16.msrb.mxu3 %v6789_v13  ;;  %v6310_v13 = vld [vmem:[#allocation17 + $0x38] sm:$0xf0] }
 0x6a0   :  { %v6709_v8 = vor.u32 %v7221_v3, %v6708_v60  ;;  %v6382_v60 = vld [vmem:[#allocation17 + $0xc8] sm:$0xf0] }
 0x6a1   :  { %v8276_v50 = vpack.c.bf16 %v3830_v36, %v3822_v42  ;;  %v3641_v57 = vpop.f32.mrf.mxu2  ;;  %v3660_v18 = vpop.f32.mrf.mxu3  ;;  %4794 = vmatpush.bf16.msra.mxu0 %v6345_v6  ;;  %v6326_v42 = vld [vmem:[#allocation17 + $0x58] sm:$0xf0]  ;;  %v7237_v6 = vld [vmem:[#allocation17 + $0x3d4] sm:$0xf0] }
 0x6a2   :  { %v3642_v31 = vadd.f32 %v3641_v57, %v8271_v23  ;;  %v3606_v58 = vpop.f32.mrf.mxu0  ;;  %v3625_v63 = vpop.f32.mrf.mxu1  ;;  %v6329_v36 = vor.u32 %v7124_v26, %v6326_v42  ;;  %4758 = vmatpush.bf16.msrb.mxu2 %v6709_v8  ;;  %v7215_v8 = vld [vmem:[#allocation17 + $0x324] sm:$0xf0] }
 0x6a3   :  { %4688 = vmatmul.bf16.vlgmr.msra.gmra.mxu2 %v8276_v50  ;;  %v3607_v62 = vadd.f32 %v3606_v58, %v8264_v56  ;;  %v6700_v58 = vld [vmem:[#allocation17 + $0x340] sm:$0xf] }
 0x6a4   :  { %v3661_v51 = vadd.f32 %v3660_v18, %v3642_v31  ;;  %v6781_v18 = vor.u32 %v7239_v59, %v6780_v41  ;;  %v6401_v31 = vor.u32 %v7142_v54, %v6398_v46  ;;  %v7118_v41 = vld [vmem:[#allocation17 + $0x24] sm:$0xf]  ;;  %v6302_v59 = vld [vmem:[#allocation17 + $0x28] sm:$0xf0]  ;;  %v7233_v46 = vld [vmem:[#allocation17 + $0x3b4] sm:$0xf0] }
 0x6a5   :  { %4795 = vmatpush.bf16.msra.mxu0 %v6337_v11  ;;  %v3626_v14 = vadd.f32 %v3625_v63, %v3607_v62  ;;  %v7219_v63 = vld [vmem:[#allocation17 + $0x344] sm:$0xf0]  ;;  %v6692_v11 = vld [vmem:[#allocation17 + $0x330] sm:$0xf] }
 0x6a6   :  { %v3831_v49 = vmax.f32 %v3661_v51, 0.0  ;;  %4776 = vmatpush.bf16.msrb.mxu3 %v6781_v18  ;;  %v6701_v19 = vor.u32 %v7219_v63, %v6700_v58  ;;  %4814 = vmatpush.bf16.msra.mxu1 %v6401_v31  ;;  %v6772_v51 = vld [vmem:[#allocation17 + $0x3d0] sm:$0xf]  ;;  %v6693_v16 = vor.u32 %v7217_v12, %v6692_v11  ;;  %v6366_v12 = vld [vmem:[#allocation17 + $0xa8] sm:$0xf0] }
 0x6a7   :  { %v3838_v45 = vmax.f32 %v3626_v14, 0.0  ;;  %v6756_v18 = vld [vmem:[#allocation17 + $0x3b0] sm:$0xf] }
 0x6a8   :  { %v8281_v10 = vpack.c.bf16 %v3831_v49, %v3823_v20  ;;  %4759 = vmatpush.bf16.msrb.mxu2 %v6701_v19  ;;  %v6773_v49 = vor.u32 %v7237_v6, %v6772_v51  ;;  %v6757_v63 = vor.u32 %v7233_v46, %v6756_v18  ;;  %v7213_v51 = vld [vmem:[#allocation17 + $0x314] sm:$0xf0]  ;;  %v7116_v6 = vld [vmem:[#allocation17 + $0x14] sm:$0xf] }
 0x6a9   :  { %v3644_v7 = vpop.f32.mrf.mxu2  ;;  %v3663_v43 = vpop.f32.mrf.mxu3  ;;  %4796 = vmatpush.bf16.msra.mxu0 %v6329_v36 }
 0x6aa   :  { %4707 = vmatmul.bf16.vlgmr.msra.gmra.mxu3 %v8281_v10  ;;  %v3608_v29 = vpop.f32.mrf.mxu0  ;;  %v3627_v17 = vpop.f32.mrf.mxu1  ;;  %v3645_v47 = vadd.f32 %v3644_v7, %v8271_v23  ;;  %v7120_v7 = vld [vmem:[#allocation17 + $0x34] sm:$0xf]  ;;  %4815 = vmatpush.bf16.msra.mxu1 %v6393_v1 }
 0x6ab   :  { %v3609_v30 = vadd.f32 %v3608_v29, %v8264_v56  ;;  %4777 = vmatpush.bf16.msrb.mxu3 %v6773_v49  ;;  %v6764_v29 = vld [vmem:[#allocation17 + $0x3c0] sm:$0xf]  ;;  %v6294_v49 = vld [vmem:[#allocation17 + $0x18] sm:$0xf0] }
 0x6ac   :  { %v3664_v0 = vadd.f32 %v3663_v43, %v3645_v47  ;;  %v6313_v43 = vor.u32 %v7120_v7, %v6310_v13  ;;  %4760 = vmatpush.bf16.msrb.mxu2 %v6693_v16  ;;  %v8297_v47 = vperm.slane %v8239_v39, 5  ;;  %v6297_v4 = vor.u32 %v7116_v6, %v6294_v49  ;;  %v6668_v13 = vld [vmem:[#allocation17 + $0x300] sm:$0xf] }
 0x6ad   :  { %v3628_v57 = vadd.f32 %v3627_v17, %v3609_v30  ;;  %4797 = vmatpush.bf16.msra.mxu0 %v6321_v34  ;;  %v7138_v17 = vld [vmem:[#allocation17 + $0xc4] sm:$0xf]  ;;  %v6684_v30 = vld [vmem:[#allocation17 + $0x320] sm:$0xf]  ;;  %v6676_v34 = vld [vmem:[#allocation17 + $0x310] sm:$0xf] }
 0x6ae   :  { %v3839_v3 = vmax.f32 %v3664_v0, 0.0  ;;  %v6385_v14 = vor.u32 %v7138_v17, %v6382_v60  ;;  %v6685_v36 = vor.u32 %v7215_v8, %v6684_v30  ;;  %v6748_v0 = vld [vmem:[#allocation17 + $0x3a0] sm:$0xf]  ;;  %v6286_v17 = vld [vmem:[#allocation17 + $0x8] sm:$0xf0] }
 0x6af   :  { %v3846_v56 = vmax.f32 %v3628_v57, 0.0  ;;  %v6305_v57 = vor.u32 %v7118_v41, %v6302_v59  ;;  %v6740_v60 = vld [vmem:[#allocation17 + $0x390] sm:$0xf] }
 0x6b0   :  { %4816 = vmatpush.bf16.msra.mxu1 %v6385_v14  ;;  %4761 = vmatpush.bf16.msrb.mxu2 %v6685_v36  ;;  %v6358_v36 = vld [vmem:[#allocation17 + $0x98] sm:$0xf0] }
 0x6b1   :  { %v3646_v2 = vpop.f32.mrf.mxu2  ;;  %v3665_v21 = vpop.f32.mrf.mxu3  ;;  %v8286_v20 = vpack.c.bf16 %v3846_v56, %v3838_v45  ;;  %4798 = vmatpush.bf16.msra.mxu0 %v6313_v43  ;;  %v7136_v45 = vld [vmem:[#allocation17 + $0xb4] sm:$0xf]  ;;  %v6374_v56 = vld [vmem:[#allocation17 + $0xb8] sm:$0xf0] }
 0x6b2   :  { %v3647_v62 = vadd.f32 %v3646_v2, %v8271_v23  ;;  %v3677_v28 = vpop.f32.mrf.mxu0  ;;  %v3696_v48 = vpop.f32.mrf.mxu1  ;;  %v7235_v23 = vld [vmem:[#allocation17 + $0x3c4] sm:$0xf0]  ;;  %v6377_v37 = vor.u32 %v7136_v45, %v6374_v56  ;;  %v7192_v45 = vld [vmem:[#allocation17 + $0x274] sm:$0xf] }
 0x6b3   :  { %4693 = vmatmul.bf16.gmra.mxu2 %v8286_v20  ;;  %v6765_v25 = vor.u32 %v7235_v23, %v6764_v29  ;;  %v3678_v42 = vadd.f32 %v3677_v28, %v8290_v9  ;;  %v7134_v28 = vld [vmem:[#allocation17 + $0xa4] sm:$0xf] }
 0x6b4   :  { %v3666_v44 = vadd.f32 %v3665_v21, %v3647_v62  ;;  %v6677_v21 = vor.u32 %v7213_v51, %v6676_v34  ;;  %4817 = vmatpush.bf16.msra.mxu1 %v6377_v37  ;;  %v7231_v62 = vld [vmem:[#allocation17 + $0x3a4] sm:$0xf0]  ;;  %v6369_v7 = vor.u32 %v7134_v28, %v6366_v12  ;;  %v7114_v23 = vld [vmem:[#allocation17 + $0x4] sm:$0xf]  ;;  %v6732_v34 = vld [vmem:[#allocation17 + $0x380] sm:$0xf] }
 0x6b5   :  { %4778 = vmatpush.bf16.msrb.mxu3 %v6765_v25  ;;  %4799 = vmatpush.bf16.msra.mxu0 %v6305_v57  ;;  %v3697_v53 = vadd.f32 %v3696_v48, %v3678_v42  ;;  %v6749_v11 = vor.u32 %v7231_v62, %v6748_v0  ;;  %v7211_v48 = vld [vmem:[#allocation17 + $0x304] sm:$0xf0]  ;;  %v6289_v25 = vor.u32 %v7114_v23, %v6286_v17  ;;  %v6462_v0 = vld [vmem:[#allocation17 + $0x168] sm:$0xf0]  ;;  %v6662_v23 = vld [vmem:[#allocation17 + $0x2f8] sm:$0xf0] }
 0x6b6   :  { %v3847_v26 = vmax.f32 %v3666_v44, 0.0  ;;  %4762 = vmatpush.bf16.msrb.mxu2 %v6677_v21  ;;  %v6669_v29 = vor.u32 %v7211_v48, %v6668_v13  ;;  %v7227_v51 = vld [vmem:[#allocation17 + $0x384] sm:$0xf0]  ;;  %v6534_v13 = vld [vmem:[#allocation17 + $0x1f8] sm:$0xf0] }
 0x6b7   :  { %v3824_v44 = vmax.f32 %v3697_v53, 0.0  ;;  %v6733_v6 = vor.u32 %v7227_v51, %v6732_v34  ;;  %v6350_v53 = vld [vmem:[#allocation17 + $0x88] sm:$0xf0]  ;;  %v7208_v48 = vld [vmem:[#allocation17 + $0x2f4] sm:$0xf] }
 0x6b8   :  { %v8294_v54 = vpack.c.bf16 %v3847_v26, %v3839_v3  ;;  %4818 = vmatpush.bf16.msra.mxu1 %v6369_v7  ;;  %v7229_v3 = vld [vmem:[#allocation17 + $0x394] sm:$0xf0]  ;;  %v7132_v26 = vld [vmem:[#allocation17 + $0x94] sm:$0xf] }
 0x6b9   :  { %v3715_v31 = vpop.f32.mrf.mxu2  ;;  %v3734_v58 = vpop.f32.mrf.mxu3  ;;  %4779 = vmatpush.bf16.msrb.mxu3 %v6757_v63  ;;  %4800 = vmatpush.bf16.msra.mxu0 %v6297_v4  ;;  %v6741_v42 = vor.u32 %v7229_v3, %v6740_v60  ;;  %v6361_v46 = vor.u32 %v7132_v26, %v6358_v36  ;;  %v6470_v63 = vld [vmem:[#allocation17 + $0x178] sm:$0xf0]  ;;  %v7158_v4 = vld [vmem:[#allocation17 + $0x164] sm:$0xf]  ;;  %v7176_v7 = vld [vmem:[#allocation17 + $0x1f4] sm:$0xf]  ;;  %v6665_v60 = vor.u32 %v7208_v48, %v6662_v23 }
 0x6ba   :  { %4712 = vmatmul.bf16.gmra.mxu3 %v8294_v54  ;;  %v3679_v19 = vpop.f32.mrf.mxu0  ;;  %v3698_v5 = vpop.f32.mrf.mxu1  ;;  %v3716_v16 = vadd.f32 %v3715_v31, %v8297_v47  ;;  %4763 = vmatpush.bf16.msrb.mxu2 %v6669_v29  ;;  %v7160_v31 = vld [vmem:[#allocation17 + $0x174] sm:$0xf]  ;;  %v6465_v28 = vor.u32 %v7158_v4, %v6462_v0  ;;  %v6537_v29 = vor.u32 %v7176_v7, %v6534_v13  ;;  %v6454_v26 = vld [vmem:[#allocation17 + $0x158] sm:$0xf0] }
 0x6bb   :  { %v3680_v2 = vadd.f32 %v3679_v19, %v8290_v9  ;;  %v6473_v56 = vor.u32 %v7160_v31, %v6470_v63  ;;  %v6598_v19 = vld [vmem:[#allocation17 + $0x278] sm:$0xf0]  ;;  %v7156_v3 = vld [vmem:[#allocation17 + $0x154] sm:$0xf]  ;;  %v7206_v31 = vld [vmem:[#allocation17 + $0x2e4] sm:$0xf] }
 0x6bc   :  { %v3735_v41 = vadd.f32 %v3734_v58, %v3716_v16  ;;  %4819 = vmatpush.bf16.msra.mxu1 %v6361_v46  ;;  %v6601_v37 = vor.u32 %v7192_v45, %v6598_v19  ;;  %v7130_v58 = vld [vmem:[#allocation17 + $0x84] sm:$0xf]  ;;  %v6457_v36 = vor.u32 %v7156_v3, %v6454_v26  ;;  %v6526_v46 = vld [vmem:[#allocation17 + $0x1e8] sm:$0xf0]  ;;  %v7184_v23 = vld [vmem:[#allocation17 + $0x234] sm:$0xf] }
 0x6bd   :  { %v3699_v1 = vadd.f32 %v3698_v5, %v3680_v2  ;;  %4780 = vmatpush.bf16.msrb.mxu3 %v6749_v11  ;;  %4801 = vmatpush.bf16.msra.mxu0 %v6289_v25  ;;  %v6353_v49 = vor.u32 %v7130_v58, %v6350_v53  ;;  %v6590_v11 = vld [vmem:[#allocation17 + $0x268] sm:$0xf0]  ;;  %v7186_v58 = vld [vmem:[#allocation17 + $0x244] sm:$0xf] }
 0x6be   :  { %4832 = vmatpush.bf16.msra.mxu2 %v6473_v56  ;;  %v3825_v2 = vmax.f32 %v3735_v41, 0.0  ;;  %v6582_v41 = vld [vmem:[#allocation17 + $0x258] sm:$0xf0]  ;;  %v6654_v56 = vld [vmem:[#allocation17 + $0x2e8] sm:$0xf0] }
 0x6bf   :  { %v3832_v43 = vmax.f32 %v3699_v1, 0.0  ;;  %v7190_v1 = vld [vmem:[#allocation17 + $0x264] sm:$0xf] }
 0x6c0   :  { %4820 = vmatpush.bf16.msra.mxu1 %v6353_v49  ;;  %v6593_v16 = vor.u32 %v7190_v1, %v6590_v11  ;;  %v7204_v49 = vld [vmem:[#allocation17 + $0x2d4] sm:$0xf]  ;;  %v6646_v1 = vld [vmem:[#allocation17 + $0x2d8] sm:$0xf0]  ;;  %v7170_v26 = vld [vmem:[#allocation17 + $0x1c4] sm:$0xf] }
 0x6c1   :  { %v8302_v14 = vpack.c.bf16 %v3832_v43, %v3824_v44  ;;  %v3717_v30 = vpop.f32.mrf.mxu2  ;;  %v3736_v8 = vpop.f32.mrf.mxu3  ;;  %4781 = vmatpush.bf16.msrb.mxu3 %v6741_v42  ;;  %v6649_v48 = vor.u32 %v7204_v49, %v6646_v1 }
 0x6c2   :  { %v3718_v59 = vadd.f32 %v3717_v30, %v8297_v47  ;;  %v3682_v57 = vpop.f32.mrf.mxu0  ;;  %v3701_v18 = vpop.f32.mrf.mxu1  ;;  %4833 = vmatpush.bf16.msra.mxu2 %v6465_v28  ;;  %v7188_v30 = vld [vmem:[#allocation17 + $0x254] sm:$0xf] }
 0x6c3   :  { %4726 = vmatmul.bf16.vlgmr.msrb.gmra.mxu0 %v8302_v14  ;;  %v3683_v62 = vadd.f32 %v3682_v57, %v8290_v9  ;;  %v7174_v57 = vld [vmem:[#allocation17 + $0x1e4] sm:$0xf] }
 0x6c4   :  { %v3737_v5 = vadd.f32 %v3736_v8, %v3718_v59  ;;  %4870 = vmatpush.bf16.msrb.mxu0 %v6601_v37  ;;  %v6585_v59 = vor.u32 %v7188_v30, %v6582_v41  ;;  %v6529_v45 = vor.u32 %v7174_v57, %v6526_v46  ;;  %v7154_v37 = vld [vmem:[#allocation17 + $0x144] sm:$0xf]  ;;  %v6430_v46 = vld [vmem:[#allocation17 + $0x128] sm:$0xf0] }
 0x6c5   :  { %4782 = vmatpush.bf16.msrb.mxu3 %v6733_v6  ;;  %v3702_v8 = vadd.f32 %v3701_v18, %v3683_v62  ;;  %v6446_v18 = vld [vmem:[#allocation17 + $0x148] sm:$0xf0]  ;;  %v7202_v30 = vld [vmem:[#allocation17 + $0x2c4] sm:$0xf] }
 0x6c6   :  { %v3833_v21 = vmax.f32 %v3737_v5, 0.0  ;;  %4834 = vmatpush.bf16.msra.mxu2 %v6457_v36  ;;  %v6657_v5 = vor.u32 %v7206_v31, %v6654_v56  ;;  %v6449_v51 = vor.u32 %v7154_v37, %v6446_v18  ;;  %v6574_v6 = vld [vmem:[#allocation17 + $0x248] sm:$0xf0]  ;;  %v7150_v57 = vld [vmem:[#allocation17 + $0x124] sm:$0xf] }
 0x6c7   :  { %v3840_v34 = vmax.f32 %v3702_v8, 0.0  ;;  %v6577_v53 = vor.u32 %v7186_v58, %v6574_v6  ;;  %v6558_v56 = vld [vmem:[#allocation17 + $0x228] sm:$0xf0]  ;;  %v7168_v37 = vld [vmem:[#allocation17 + $0x1b4] sm:$0xf] }
 0x6c8   :  { %v8307_v12 = vpack.c.bf16 %v3833_v21, %v3825_v2  ;;  %4871 = vmatpush.bf16.msrb.mxu0 %v6593_v16  ;;  %v7172_v2 = vld [vmem:[#allocation17 + $0x1d4] sm:$0xf]  ;;  %v6518_v21 = vld [vmem:[#allocation17 + $0x1d8] sm:$0xf0] }
 0x6c9   :  { %v3720_v44 = vpop.f32.mrf.mxu2  ;;  %v3739_v43 = vpop.f32.mrf.mxu3  ;;  %4851 = vmatpush.bf16.msra.mxu3 %v6537_v29  ;;  %v6521_v28 = vor.u32 %v7172_v2, %v6518_v21  ;;  %v6438_v29 = vld [vmem:[#allocation17 + $0x138] sm:$0xf0] }
 0x6ca   :  { %4745 = vmatmul.bf16.vlgmr.msrb.gmra.mxu1 %v8307_v12  ;;  %v3684_v17 = vpop.f32.mrf.mxu0  ;;  %v3703_v25 = vpop.f32.mrf.mxu1  ;;  %v3721_v19 = vadd.f32 %v3720_v44, %v8297_v47  ;;  %4835 = vmatpush.bf16.msra.mxu2 %v6449_v51  ;;  %v7152_v44 = vld [vmem:[#allocation17 + $0x134] sm:$0xf]  ;;  %v6502_v18 = vld [vmem:[#allocation17 + $0x1b8] sm:$0xf0] }
 0x6cb   :  { %v3685_v42 = vadd.f32 %v3684_v17, %v8290_v9  ;;  %4889 = vmatpush.bf16.msrb.mxu1 %v6665_v60  ;;  %v8316_v17 = vperm.slane %v8239_v39, 6  ;;  %v6566_v60 = vld [vmem:[#allocation17 + $0x238] sm:$0xf0]  ;;  %v6505_v6 = vor.u32 %v7168_v37, %v6502_v18 }
 0x6cc   :  { %4872 = vmatpush.bf16.msrb.mxu0 %v6585_v59  ;;  %v3740_v11 = vadd.f32 %v3739_v43, %v3721_v19  ;;  %v6569_v43 = vor.u32 %v7184_v23, %v6566_v60  ;;  %v7198_v23 = vld [vmem:[#allocation17 + $0x2a4] sm:$0xf] }
 0x6cd   :  { %v3704_v63 = vadd.f32 %v3703_v25, %v3685_v42  ;;  %4852 = vmatpush.bf16.msra.mxu3 %v6529_v45  ;;  %v6441_v25 = vor.u32 %v7152_v44, %v6438_v29  ;;  %v6638_v42 = vld [vmem:[#allocation17 + $0x2c8] sm:$0xf0]  ;;  %v7182_v45 = vld [vmem:[#allocation17 + $0x224] sm:$0xf] }
 0x6ce   :  { %v3841_v36 = vmax.f32 %v3740_v11, 0.0  ;;  %v6641_v59 = vor.u32 %v7202_v30, %v6638_v42  ;;  %v7178_v42 = vld [vmem:[#allocation17 + $0x204] sm:$0xf] }
 0x6cf   :  { %v3848_v9 = vmax.f32 %v3704_v63, 0.0  ;;  %4890 = vmatpush.bf16.msrb.mxu1 %v6657_v5  ;;  %4836 = vmatpush.bf16.msra.mxu2 %v6441_v25  ;;  %v6433_v63 = vor.u32 %v7150_v57, %v6430_v46  ;;  %v6561_v5 = vor.u32 %v7182_v45, %v6558_v56  ;;  %v6622_v25 = vld [vmem:[#allocation17 + $0x2a8] sm:$0xf0]  ;;  %v6486_v57 = vld [vmem:[#allocation17 + $0x198] sm:$0xf0] }
 0x6d0   :  { %4873 = vmatpush.bf16.msrb.mxu0 %v6577_v53  ;;  %v6630_v53 = vld [vmem:[#allocation17 + $0x2b8] sm:$0xf0]  ;;  %v7196_v46 = vld [vmem:[#allocation17 + $0x294] sm:$0xf] }
 0x6d1   :  { %v8312_v4 = vpack.c.bf16 %v3848_v9, %v3840_v34  ;;  %v3722_v0 = vpop.f32.mrf.mxu2  ;;  %v3741_v62 = vpop.f32.mrf.mxu3  ;;  %4853 = vmatpush.bf16.msra.mxu3 %v6521_v28  ;;  %v7200_v34 = vld [vmem:[#allocation17 + $0x2b4] sm:$0xf]  ;;  %v8323_v9 = vperm.slane %v8239_v39, 7 }
 0x6d2   :  { %v3723_v16 = vadd.f32 %v3722_v0, %v8297_v47  ;;  %v3753_v7 = vpop.f32.mrf.mxu0  ;;  %v3772_v13 = vpop.f32.mrf.mxu1  ;;  %v6510_v47 = vld [vmem:[#allocation17 + $0x1c8] sm:$0xf0]  ;;  %v6633_v49 = vor.u32 %v7200_v34, %v6630_v53  ;;  %v7148_v0 = vld [vmem:[#allocation17 + $0x114] sm:$0xf] }
 0x6d3   :  { %4731 = vmatmul.bf16.gmra.mxu0 %v8312_v4  ;;  %4891 = vmatpush.bf16.msrb.mxu1 %v6649_v48  ;;  %v6513_v8 = vor.u32 %v7170_v26, %v6510_v47  ;;  %v3754_v31 = vadd.f32 %v3753_v7, %v8316_v17  ;;  %v7180_v28 = vld [vmem:[#allocation17 + $0x214] sm:$0xf]  ;;  %v7166_v7 = vld [vmem:[#allocation17 + $0x1a4] sm:$0xf]  ;;  %v6494_v48 = vld [vmem:[#allocation17 + $0x1a8] sm:$0xf0] }
 0x6d4   :  { %v3742_v3 = vadd.f32 %v3741_v62, %v3723_v16  ;;  %4874 = vmatpush.bf16.msrb.mxu0 %v6569_v43  ;;  %4837 = vmatpush.bf16.msra.mxu2 %v6433_v63  ;;  %v6422_v62 = vld [vmem:[#allocation17 + $0x118] sm:$0xf0]  ;;  %v6497_v29 = vor.u32 %v7166_v7, %v6494_v48  ;;  %v7146_v26 = vld [vmem:[#allocation17 + $0x104] sm:$0xf]  ;;  %v7224_v53 = vld [vmem:[#allocation17 + $0x374] sm:$0xf] }
 0x6d5   :  { %4854 = vmatpush.bf16.msra.mxu3 %v6513_v8  ;;  %v3773_v1 = vadd.f32 %v3772_v13, %v3754_v31  ;;  %v6425_v39 = vor.u32 %v7148_v0, %v6422_v62  ;;  %v6550_v16 = vld [vmem:[#allocation17 + $0x218] sm:$0xf0]  ;;  %v6414_v13 = vld [vmem:[#allocation17 + $0x108] sm:$0xf0]  ;;  %v7162_v0 = vld [vmem:[#allocation17 + $0x184] sm:$0xf] }
 0x6d6   :  { %v3849_v41 = vmax.f32 %v3742_v3, 0.0  ;;  %v6553_v44 = vor.u32 %v7180_v28, %v6550_v16  ;;  %v6625_v3 = vor.u32 %v7198_v23, %v6622_v25  ;;  %v6417_v8 = vor.u32 %v7146_v26, %v6414_v13  ;;  %v6478_v62 = vld [vmem:[#allocation17 + $0x188] sm:$0xf0]  ;;  %v7194_v28 = vld [vmem:[#allocation17 + $0x284] sm:$0xf] }
 0x6d7   :  { %4892 = vmatpush.bf16.msrb.mxu1 %v6641_v59  ;;  %v3826_v47 = vmax.f32 %v3773_v1, 0.0  ;;  %v7164_v59 = vld [vmem:[#allocation17 + $0x194] sm:$0xf]  ;;  %v6606_v1 = vld [vmem:[#allocation17 + $0x288] sm:$0xf0] }
 0x6d8   :  { %v8320_v19 = vpack.c.bf16 %v3849_v41, %v3841_v36  ;;  %4875 = vmatpush.bf16.msrb.mxu0 %v6561_v5  ;;  %4838 = vmatpush.bf16.msra.mxu2 %v6425_v39  ;;  %v6542_v36 = vld [vmem:[#allocation17 + $0x208] sm:$0xf0]  ;;  %v6489_v56 = vor.u32 %v7164_v59, %v6486_v57  ;;  %v6614_v5 = vld [vmem:[#allocation17 + $0x298] sm:$0xf0]  ;;  %v6609_v16 = vor.u32 %v7194_v28, %v6606_v1  ;;  %v7222_v7 = vld [vmem:[#allocation17 + $0x364] sm:$0xf] }
 0x6d9   :  { %v3791_v51 = vpop.f32.mrf.mxu2  ;;  %v3810_v58 = vpop.f32.mrf.mxu3  ;;  %4855 = vmatpush.bf16.msra.mxu3 %v6505_v6  ;;  %v6545_v41 = vor.u32 %v7178_v42, %v6542_v36  ;;  %v6617_v6 = vor.u32 %v7196_v46, %v6614_v5  ;;  %v6718_v48 = vld [vmem:[#allocation17 + $0x368] sm:$0xf0]  ;;  %v6790_v25 = vld [vmem:[#allocation17 + $0x3f8] sm:$0xf0]  ;;  %v7220_v13 = vld [vmem:[#allocation17 + $0x354] sm:$0xf] }
 0x6da   :  { %4750 = vmatmul.bf16.gmra.mxu1 %v8320_v19  ;;  %v3755_v2 = vpop.f32.mrf.mxu0  ;;  %v3774_v21 = vpop.f32.mrf.mxu1  ;;  %v3792_v43 = vadd.f32 %v3791_v51, %v8323_v9  ;;  %v6782_v59 = vld [vmem:[#allocation17 + $0x3e8] sm:$0xf0] }
 0x6db   :  { %v3756_v11 = vadd.f32 %v3755_v2, %v8316_v17  ;;  %4893 = vmatpush.bf16.msrb.mxu1 %v6633_v49  ;;  %v6726_v2 = vld [vmem:[#allocation17 + $0x378] sm:$0xf0]  ;;  %v6766_v1 = vld [vmem:[#allocation17 + $0x3c8] sm:$0xf0] }
 0x6dc   :  { %4876 = vmatpush.bf16.msrb.mxu0 %v6553_v44  ;;  %4839 = vmatpush.bf16.msra.mxu2 %v6417_v8  ;;  %v3811_v37 = vadd.f32 %v3810_v58, %v3792_v43  ;;  %v6481_v58 = vor.u32 %v7162_v0, %v6478_v62 }
 0x6dd   :  { %v3775_v60 = vadd.f32 %v3774_v21, %v3756_v11  ;;  %4856 = vmatpush.bf16.msra.mxu3 %v6497_v29  ;;  %v6729_v21 = vor.u32 %v7224_v53, %v6726_v2  ;;  %v6721_v29 = vor.u32 %v7222_v7, %v6718_v48  ;;  %v7214_v7 = vld [vmem:[#allocation17 + $0x324] sm:$0xf]  ;;  %v6686_v48 = vld [vmem:[#allocation17 + $0x328] sm:$0xf0] }
 0x6de   :  { %v3827_v11 = vmax.f32 %v3811_v37, 0.0 }
 0x6df   :  { %v3834_v30 = vmax.f32 %v3775_v60, 0.0  ;;  %4894 = vmatpush.bf16.msrb.mxu1 %v6625_v3 }
 0x6e0   :  { %4877 = vmatpush.bf16.msrb.mxu0 %v6545_v41  ;;  %v7238_v41 = vld [vmem:[#allocation17 + $0x3e4] sm:$0xf] }
 0x6e1   :  { %v8328_v31 = vpack.c.bf16 %v3834_v30, %v3826_v47  ;;  %v3793_v63 = vpop.f32.mrf.mxu2  ;;  %v3812_v45 = vpop.f32.mrf.mxu3  ;;  %4857 = vmatpush.bf16.msra.mxu3 %v6489_v56  ;;  %v6710_v47 = vld [vmem:[#allocation17 + $0x358] sm:$0xf0]  ;;  %v6785_v46 = vor.u32 %v7238_v41, %v6782_v59  ;;  %v6702_v56 = vld [vmem:[#allocation17 + $0x348] sm:$0xf0] }
 0x6e2   :  { %v3794_v18 = vadd.f32 %v3793_v63, %v8323_v9  ;;  %v3758_v34 = vpop.f32.mrf.mxu0  ;;  %v3777_v51 = vpop.f32.mrf.mxu1  ;;  %v6713_v42 = vor.u32 %v7220_v13, %v6710_v47  ;;  %v7210_v47 = vld [vmem:[#allocation17 + $0x304] sm:$0xf]  ;;  %v6734_v59 = vld [vmem:[#allocation17 + $0x388] sm:$0xf0] }
 0x6e3   :  { %4764 = vmatmul.bf16.vlgmr.msrb.gmra.mxu2 %v8328_v31  ;;  %4802 = vmatmul.bf16.vlgmr.msra.gmra.mxu0 %v8250_v52  ;;  %v3759_v44 = vadd.f32 %v3758_v34, %v8316_v17  ;;  %v7240_v52 = vld [vmem:[#allocation17 + $0x3f4] sm:$0xf]  ;;  %v6774_v34 = vld [vmem:[#allocation17 + $0x3d8] sm:$0xf0] }
 0x6e4   :  { %v3813_v49 = vadd.f32 %v3812_v45, %v3794_v18  ;;  %4895 = vmatpush.bf16.msrb.mxu1 %v6617_v6  ;;  %4908 = vmatpush.bf16.msrb.mxu2 %v6729_v21  ;;  %v6793_v43 = vor.u32 %v7240_v52, %v6790_v25  ;;  %v7218_v45 = vld [vmem:[#allocation17 + $0x344] sm:$0xf]  ;;  %v7236_v18 = vld [vmem:[#allocation17 + $0x3d4] sm:$0xf]  ;;  %v6758_v52 = vld [vmem:[#allocation17 + $0x3b8] sm:$0xf0] }
 0x6e5   :  { %4858 = vmatpush.bf16.msra.mxu3 %v6481_v58  ;;  %v3778_v30 = vadd.f32 %v3777_v51, %v3759_v44  ;;  %v6705_v37 = vor.u32 %v7218_v45, %v6702_v56  ;;  %v6777_v6 = vor.u32 %v7236_v18, %v6774_v34  ;;  %v7216_v21 = vld [vmem:[#allocation17 + $0x334] sm:$0xf]  ;;  %v7234_v58 = vld [vmem:[#allocation17 + $0x3c4] sm:$0xf]  ;;  %v6689_v44 = vor.u32 %v7214_v7, %v6686_v48 }
 0x6e6   :  { %v3835_v39 = vmax.f32 %v3813_v49, 0.0  ;;  %v6694_v49 = vld [vmem:[#allocation17 + $0x338] sm:$0xf0] }
 0x6e7   :  { %v3842_v5 = vmax.f32 %v3778_v30, 0.0  ;;  %v6697_v62 = vor.u32 %v7216_v21, %v6694_v49  ;;  %v6670_v30 = vld [vmem:[#allocation17 + $0x308] sm:$0xf0] }
 0x6e8   :  { %v8334_v23 = vpack.c.bf16 %v3835_v39, %v3827_v11  ;;  %4896 = vmatpush.bf16.msrb.mxu1 %v6609_v16  ;;  %4909 = vmatpush.bf16.msrb.mxu2 %v6721_v29  ;;  %v6769_v11 = vor.u32 %v7234_v58, %v6766_v1  ;;  %v7232_v29 = vld [vmem:[#allocation17 + $0x3b4] sm:$0xf] }
 0x6e9   :  { %v3796_v60 = vpop.f32.mrf.mxu2  ;;  %v3815_v3 = vpop.f32.mrf.mxu3  ;;  %v6761_v25 = vor.u32 %v7232_v29, %v6758_v52 }
 0x6ea   :  { %4783 = vmatmul.bf16.vlgmr.msrb.gmra.mxu3 %v8334_v23  ;;  %4821 = vmatmul.bf16.vlgmr.msra.gmra.mxu1 %v8255_v22  ;;  %v3760_v26 = vpop.f32.mrf.mxu0  ;;  %v3779_v36 = vpop.f32.mrf.mxu1  ;;  %v3797_v63 = vadd.f32 %v3796_v60, %v8323_v9  ;;  %v6678_v60 = vld [vmem:[#allocation17 + $0x318] sm:$0xf0] }
 0x6eb   :  { %v3761_v8 = vadd.f32 %v3760_v26, %v8316_v17  ;;  %4927 = vmatpush.bf16.msrb.mxu3 %v6793_v43  ;;  %v7230_v43 = vld [vmem:[#allocation17 + $0x3a4] sm:$0xf]  ;;  %v6750_v26 = vld [vmem:[#allocation17 + $0x3a8] sm:$0xf0] }
 0x6ec   :  { %4910 = vmatpush.bf16.msrb.mxu2 %v6713_v42  ;;  %v3816_v53 = vadd.f32 %v3815_v3, %v3797_v63  ;;  %v6753_v13 = vor.u32 %v7230_v43, %v6750_v26  ;;  %v7228_v42 = vld [vmem:[#allocation17 + $0x394] sm:$0xf] }
 0x6ed   :  { %v3780_v57 = vadd.f32 %v3779_v36, %v3761_v8  ;;  %v6673_v8 = vor.u32 %v7210_v47, %v6670_v30  ;;  %v6742_v36 = vld [vmem:[#allocation17 + $0x398] sm:$0xf0] }
 0x6ee   :  { %v3843_v39 = vmax.f32 %v3816_v53, 0.0  ;;  %v6745_v41 = vor.u32 %v7228_v42, %v6742_v36 }
 0x6ef   :  { %v3850_v22 = vmax.f32 %v3780_v57, 0.0  ;;  %4928 = vmatpush.bf16.msrb.mxu3 %v6785_v46 }
 0x6f0   :  { %4911 = vmatpush.bf16.msrb.mxu2 %v6705_v37 }
 0x6f1   :  { %v8340_v51 = vpack.c.bf16 %v3850_v22, %v3842_v5  ;;  %v3798_v17 = vpop.f32.mrf.mxu2  ;;  %v3817_v0 = vpop.f32.mrf.mxu3 }
 0x6f2   :  { %v3799_v2 = vadd.f32 %v3798_v17, %v8323_v9 }
 0x6f3   :  { %4769 = vmatmul.bf16.gmra.mxu2 %v8340_v51  ;;  %4807 = vmatmul.bf16.gmra.mxu0 %v8260_v15  ;;  %v7212_v15 = vld [vmem:[#allocation17 + $0x314] sm:$0xf] }
 0x6f4   :  { %v3818_v28 = vadd.f32 %v3817_v0, %v3799_v2  ;;  %4929 = vmatpush.bf16.msrb.mxu3 %v6777_v6  ;;  %4912 = vmatpush.bf16.msrb.mxu2 %v6697_v62  ;;  %v6681_v3 = vor.u32 %v7212_v15, %v6678_v60 }
 0x6f6   :  { %v3851_v16 = vmax.f32 %v3818_v28, 0.0 }
 0x6f8   :  { %v3867_v9 = vpack.c.bf16 %v3851_v16, %v3843_v39  ;;  %4930 = vmatpush.bf16.msrb.mxu3 %v6769_v11  ;;  %4913 = vmatpush.bf16.msrb.mxu2 %v6689_v44 }
 0x6fa   :  { %4788 = vmatmul.bf16.gmra.mxu3 %v3867_v9  ;;  %4826 = vmatmul.bf16.gmra.mxu1 %v8268_v27  ;;  %v7226_v27 = vld [vmem:[#allocation17 + $0x384] sm:$0xf] }
 0x6fb   :  { %v6737_v57 = vor.u32 %v7226_v27, %v6734_v59 }
 0x6fc   :  { %4931 = vmatpush.bf16.msrb.mxu3 %v6761_v25  ;;  %4914 = vmatpush.bf16.msrb.mxu2 %v6681_v3 }
 0x700   :  { %4932 = vmatpush.bf16.msrb.mxu3 %v6753_v13  ;;  %4915 = vmatpush.bf16.msrb.mxu2 %v6673_v8 }
 0x703   :  { %4840 = vmatmul.bf16.vlgmr.msra.gmra.mxu2 %v8276_v50  ;;  %4878 = vmatmul.bf16.vlgmr.msrb.gmra.mxu0 %v8302_v14  ;;  %v4651_v50 = vpop.f32.mrf.mxu0 }
 0x704   :  { %4933 = vmatpush.bf16.msrb.mxu3 %v6745_v41 }
 0x707   :  { %v4670_v14 = vpop.f32.mrf.mxu1 }
 0x708   :  { %4934 = vmatpush.bf16.msrb.mxu3 %v6737_v57 }
 0x70a   :  { %4859 = vmatmul.bf16.vlgmr.msra.gmra.mxu3 %v8281_v10  ;;  %4897 = vmatmul.bf16.vlgmr.msrb.gmra.mxu1 %v8307_v12 }
 0x70b   :  { %v4653_v46 = vpop.f32.mrf.mxu0 }
 0x70f   :  { %v4672_v10 = vpop.f32.mrf.mxu1 }
 0x713   :  { %4845 = vmatmul.bf16.gmra.mxu2 %v8286_v20  ;;  %4883 = vmatmul.bf16.gmra.mxu0 %v8312_v4  ;;  %v4656_v12 = vpop.f32.mrf.mxu0 }
 0x717   :  { %v4675_v20 = vpop.f32.mrf.mxu1 }
 0x71a   :  { %4864 = vmatmul.bf16.gmra.mxu3 %v8294_v54  ;;  %4902 = vmatmul.bf16.gmra.mxu1 %v8320_v19 }
 0x71b   :  { %v4658_v45 = vpop.f32.mrf.mxu0 }
 0x71f   :  { %v4677_v54 = vpop.f32.mrf.mxu1 }
 0x723   :  { %4916 = vmatmul.bf16.vlgmr.msrb.gmra.mxu2 %v8328_v31 }
 0x726   :  { %v4689_v63 = vpop.f32.mrf.mxu2 }
 0x72a   :  { %4935 = vmatmul.bf16.vlgmr.msrb.gmra.mxu3 %v8334_v23  ;;  %v8360_v23 = vld [vmem:[%s8389_s11] sm:$0x3]  ;;  %s7615_s11 = smov [#allocation19]  }
 0x72b   :  { %v3998_v34 = vperm.slane %v8360_v23, 0  ;;  %s4966_s3 = sshll.u32 %s7615_s11, 4  ;;  %s4967_s3 = int_to_ptr.vmem [resolvable:$true] %s4966_s3 }
 0x72d   :  { %v4708_v4 = vpop.f32.mrf.mxu3  ;;  %v4652_v6 = vadd.f32 %v4651_v50, %v3998_v34  ;;  %v4654_v58 = vadd.f32 %v4653_v46, %v3998_v34  ;;  %v4657_v25 = vadd.f32 %v4656_v12, %v3998_v34  ;;  %v4659_v27 = vadd.f32 %v4658_v45, %v3998_v34 }
 0x72e   :  { %v4691_v56 = vpop.f32.mrf.mxu2 }
 0x72f   :  { %v4671_v53 = vadd.f32 %v4670_v14, %v4652_v6  ;;  %v4673_v11 = vadd.f32 %v4672_v10, %v4654_v58  ;;  %v4676_v43 = vadd.f32 %v4675_v20, %v4657_v25  ;;  %v4678_v50 = vadd.f32 %v4677_v54, %v4659_v27 }
 0x731   :  { %v4690_v21 = vadd.f32 %v4689_v63, %v4671_v53  ;;  %v4692_v16 = vadd.f32 %v4691_v56, %v4673_v11 }
 0x733   :  { %4921 = vmatmul.bf16.gmra.mxu2 %v8340_v51  ;;  %v4709_v0 = vadd.f32 %v4708_v4, %v4690_v21 }
 0x735   :  { %v4710_v19 = vpop.f32.mrf.mxu3 }
 0x736   :  { %v4694_v31 = vpop.f32.mrf.mxu2 }
 0x737   :  { %v4695_v13 = vadd.f32 %v4694_v31, %v4676_v43 }
 0x73a   :  { %4940 = vmatmul.bf16.gmra.mxu3 %v3867_v9  ;;  %v4711_v9 = vadd.f32 %v4710_v19, %v4692_v16 }
 0x73d   :  { %v4713_v18 = vpop.f32.mrf.mxu3 }
 0x73e   :  { %v4696_v17 = vpop.f32.mrf.mxu2  ;;  %v4714_v8 = vadd.f32 %v4713_v18, %v4695_v13 }
 0x740   :  { %v4727_v5 = vpop.f32.mrf.mxu0 }
 0x741   :  { %v4728_v1 = vadd.f32 %v4727_v5, %v4709_v0 }
 0x745   :  { %v4715_v49 = vpop.f32.mrf.mxu3 }
 0x747   :  { %v4746_v22 = vpop.f32.mrf.mxu1 }
 0x748   :  { %v4729_v37 = vpop.f32.mrf.mxu0  ;;  %v4747_v39 = vadd.f32 %v4746_v22, %v4728_v1 }
 0x749   :  { %v4730_v15 = vadd.f32 %v4729_v37, %v4711_v9 }
 0x74f   :  { %v4748_v51 = vpop.f32.mrf.mxu1 }
 0x750   :  { %v4732_v2 = vpop.f32.mrf.mxu0  ;;  %v4749_v26 = vadd.f32 %v4748_v51, %v4730_v15 }
 0x751   :  { %v4733_v59 = vadd.f32 %v4732_v2, %v4714_v8 }
 0x757   :  { %v4751_v28 = vpop.f32.mrf.mxu1 }
 0x758   :  { %v4734_v48 = vpop.f32.mrf.mxu0  ;;  %v4752_v14 = vadd.f32 %v4751_v28, %v4733_v59 }
 0x75f   :  { %v4753_v3 = vpop.f32.mrf.mxu1 }
 0x760   :  { %v4803_v41 = vpop.f32.mrf.mxu0 }
 0x766   :  { %v4765_v62 = vpop.f32.mrf.mxu2 }
 0x767   :  { %v4766_v7 = vadd.f32 %v4765_v62, %v4747_v39  ;;  %v4822_v46 = vpop.f32.mrf.mxu1 }
 0x768   :  { %v4805_v19 = vpop.f32.mrf.mxu0 }
 0x76d   :  { %v4784_v44 = vpop.f32.mrf.mxu3 }
 0x76e   :  { %v4785_v29 = vadd.f32 %v4784_v44, %v4766_v7  ;;  %v4767_v52 = vpop.f32.mrf.mxu2 }
 0x76f   :  { %v4768_v47 = vadd.f32 %v4767_v52, %v4749_v26  ;;  %v4824_v31 = vpop.f32.mrf.mxu1 }
 0x770   :  { %v4946_v60 = vadd.f32 %v4785_v29, %v8030_v32  ;;  %v4697_v32 = vadd.f32 %v4696_v17, %v4678_v50  ;;  %v4808_v34 = vpop.f32.mrf.mxu0 }
 0x772   :  { %4954 = vst [vmem:[#allocation19] sm:$0xff] %v4946_v60  ;;  %v4716_v63 = vadd.f32 %v4715_v49, %v4697_v32 }
 0x774   :  { %v4735_v56 = vadd.f32 %v4734_v48, %v4716_v63 }
 0x775   :  { %v4786_v30 = vpop.f32.mrf.mxu3 }
 0x776   :  { %v4787_v42 = vadd.f32 %v4786_v30, %v4768_v47  ;;  %v4770_v36 = vpop.f32.mrf.mxu2  ;;  %v4754_v22 = vadd.f32 %v4753_v3, %v4735_v56 }
 0x777   :  { %v4771_v10 = vadd.f32 %v4770_v36, %v4752_v14  ;;  %v4827_v6 = vpop.f32.mrf.mxu1 }
 0x778   :  { %v4948_v57 = vadd.f32 %v4787_v42, %v8036_v33  ;;  %v4810_v53 = vpop.f32.mrf.mxu0 }
 0x77a   :  { %4956 = vst [vmem:[#allocation19 + $0x10] sm:$0xff] %v4948_v57 }
 0x77d   :  { %v4789_v12 = vpop.f32.mrf.mxu3 }
 0x77e   :  { %v4790_v20 = vadd.f32 %v4789_v12, %v4771_v10  ;;  %v4772_v4 = vpop.f32.mrf.mxu2 }
 0x77f   :  { %v4773_v45 = vadd.f32 %v4772_v4, %v4754_v22  ;;  %v4829_v49 = vpop.f32.mrf.mxu1 }
 0x780   :  { %v4950_v5 = vadd.f32 %v4790_v20, %v8042_v61  ;;  %v3999_v61 = vperm.slane %v8360_v23, 1  ;;  %v4879_v1 = vpop.f32.mrf.mxu0 }
 0x782   :  { %4958 = vst [vmem:[#allocation19 + $0x20] sm:$0xff] %v4950_v5  ;;  %v4804_v0 = vadd.f32 %v4803_v41, %v3999_v61  ;;  %v4809_v60 = vadd.f32 %v4808_v34, %v3999_v61  ;;  %v4811_v59 = vadd.f32 %v4810_v53, %v3999_v61 }
 0x784   :  { %v4823_v28 = vadd.f32 %v4822_v46, %v4804_v0  ;;  %v4828_v26 = vadd.f32 %v4827_v6, %v4809_v60  ;;  %v4830_v14 = vadd.f32 %v4829_v49, %v4811_v59 }
 0x785   :  { %v4791_v37 = vpop.f32.mrf.mxu3 }
 0x786   :  { %v4792_v33 = vadd.f32 %v4791_v37, %v4773_v45  ;;  %v4841_v54 = vpop.f32.mrf.mxu2 }
 0x787   :  { %v4842_v11 = vadd.f32 %v4841_v54, %v4823_v28  ;;  %v4898_v16 = vpop.f32.mrf.mxu1 }
 0x788   :  { %v4952_v18 = vadd.f32 %v4792_v33, %v8048_v24  ;;  %v4806_v24 = vadd.f32 %v4805_v19, %v3999_v61  ;;  %v4881_v52 = vpop.f32.mrf.mxu0 }
 0x78a   :  { %4960 = vst [vmem:[#allocation19 + $0x30] sm:$0xff] %v4952_v18  ;;  %v4825_v48 = vadd.f32 %v4824_v31, %v4806_v24 }
 0x78d   :  { %v4860_v51 = vpop.f32.mrf.mxu3 }
 0x78e   :  { %v4843_v17 = vpop.f32.mrf.mxu2  ;;  %v4861_v39 = vadd.f32 %v4860_v51, %v4842_v11 }
 0x78f   :  { %v4844_v29 = vadd.f32 %v4843_v17, %v4825_v48  ;;  %v4900_v3 = vpop.f32.mrf.mxu1 }
 0x790   :  { %v4880_v44 = vadd.f32 %v4879_v1, %v4861_v39  ;;  %v4884_v27 = vpop.f32.mrf.mxu0 }
 0x792   :  { %v4899_v15 = vadd.f32 %v4898_v16, %v4880_v44 }
 0x795   :  { %v4862_v2 = vpop.f32.mrf.mxu3 }
 0x796   :  { %v4846_v21 = vpop.f32.mrf.mxu2  ;;  %v4863_v25 = vadd.f32 %v4862_v2, %v4844_v29 }
 0x797   :  { %v4847_v8 = vadd.f32 %v4846_v21, %v4828_v26  ;;  %v4903_v10 = vpop.f32.mrf.mxu1 }
 0x798   :  { %v4882_v13 = vadd.f32 %v4881_v52, %v4863_v25 }
 0x79a   :  { %v4901_v41 = vadd.f32 %v4900_v3, %v4882_v13 }
 0x79d   :  { %v4865_v62 = vpop.f32.mrf.mxu3 }
 0x79e   :  { %v4848_v58 = vpop.f32.mrf.mxu2  ;;  %v4866_v36 = vadd.f32 %v4865_v62, %v4847_v8 }
 0x79f   :  { %v4849_v63 = vadd.f32 %v4848_v58, %v4830_v14  ;;  %v4905_v37 = vpop.f32.mrf.mxu1 }
 0x7a0   :  { %v4885_v46 = vadd.f32 %v4884_v27, %v4866_v36 }
 0x7a2   :  { %v4904_v56 = vadd.f32 %v4903_v10, %v4885_v46 }
 0x7a5   :  { %v4867_v7 = vpop.f32.mrf.mxu3 }
 0x7a6   :  { %v4917_v9 = vpop.f32.mrf.mxu2  ;;  %v4868_v4 = vadd.f32 %v4867_v7, %v4849_v63 }
 0x7a7   :  { %v4918_v23 = vadd.f32 %v4917_v9, %v4899_v15 }
 0x7ad   :  { %v4936_v43 = vpop.f32.mrf.mxu3 }
 0x7ae   :  { %v4937_v47 = vadd.f32 %v4936_v43, %v4918_v23  ;;  %v4919_v30 = vpop.f32.mrf.mxu2 }
 0x7af   :  { %v4920_v57 = vadd.f32 %v4919_v30, %v4901_v41 }
 0x7b0   :  { %v4947_v42 = vadd.f32 %v4937_v47, %v8032_v55  ;;  %v4886_v55 = vpop.f32.mrf.mxu0 }
 0x7b1   :  { %v4887_v22 = vadd.f32 %v4886_v55, %v4868_v4 }
 0x7b2   :  { %4955 = vst [vmem:[#allocation19 + $0x8] sm:$0xff] %v4947_v42 }
 0x7b3   :  { %v4906_v54 = vadd.f32 %v4905_v37, %v4887_v22 }
 0x7b5   :  { %v4938_v50 = vpop.f32.mrf.mxu3 }
 0x7b6   :  { %v4939_v32 = vadd.f32 %v4938_v50, %v4920_v57  ;;  %v4922_v12 = vpop.f32.mrf.mxu2 }
 0x7b7   :  { %v4923_v5 = vadd.f32 %v4922_v12, %v4904_v56 }
 0x7b8   :  { %v4949_v20 = vadd.f32 %v4939_v32, %v8038_v35 }
 0x7ba   :  { %4957 = vst [vmem:[#allocation19 + $0x18] sm:$0xff] %v4949_v20 }
 0x7bd   :  { %v4941_v19 = vpop.f32.mrf.mxu3 }
 0x7be   :  { %v4942_v45 = vadd.f32 %v4941_v19, %v4923_v5  ;;  %v4924_v33 = vpop.f32.mrf.mxu2 }
 0x7bf   :  { %v4925_v18 = vadd.f32 %v4924_v33, %v4906_v54 }
 0x7c0   :  { %v4951_v31 = vadd.f32 %v4942_v45, %v8044_v38 }
 0x7c2   :  { %4959 = vst [vmem:[#allocation19 + $0x28] sm:$0xff] %v4951_v31 }
 0x7c5   :  { %v4943_v34 = vpop.f32.mrf.mxu3 }
 0x7c6   :  { %v4944_v35 = vadd.f32 %v4943_v34, %v4925_v18 }
 0x7c8   :  { %v4953_v51 = vadd.f32 %v4944_v35, %v8050_v40 }
 0x7ca   :  { %4961 = vst [vmem:[#allocation19 + $0x38] sm:$0xff] %v4953_v51 }
 0x7cb   :  { %4974 = dma.vmem_to_hbm [thread:$0]  %s4967_s3, 1024, %s4969_s1, [#allocation4], %s7604_s29, %s7604_s29, %s7605_s30  }
 0x7cc   :  { %7595 = dma.done.wait [#allocation4], 1024  }
 0x7cd   :  { %7596 = vsyncadd [#allocation4], 4294966272 }
 0x7ce   :  { %4979 = vsyncpa [#allocation3], 1 }
 0x7cf   :  { %4980 = vsyncpa [#allocation6], 1 }
 0x7d0   :  { %4981 = vsyncpa [#allocation9], 1 }
 0x7d1   :  { %4982 = vsyncpa [#allocation12], 1 }
 0x7d2   :  { %4983 = vsyncpa [#allocation15], 1 }
 0x7d3   :  { %4984 = vsyncpa [#allocation18], 1 }
 0x7d4   :  { %4985 = vsyncpa [#allocation4], 1 }

</bundles_post_ra>
